<compile_context>
chip_gen: v7x
topology: tpu7x:2x2x1
jax: 0.10.0
libtpu: 0.0.40
codegen_flags: <defaults>
</compile_context>

<pallas_src>
import functools

import numpy as np

import jax
import jax.numpy as jnp
from jax.experimental import pallas as pl
from jax.experimental.pallas import tpu as pltpu


# ----------------------------------------------------------------------------
# Fused Pallas kernel: conv stack + pad/concat + bilinear 2x upsample
# ----------------------------------------------------------------------------
def _up_fused_kernel(x1_ref, x2_ref,
                     w1_ref, b1_ref, w2_ref, b2_ref,
                     w3_ref, b3_ref, w4_ref, b4_ref,
                     mask_ref, bt_ref, o_ref,
                     *, H, W, H2, W2, C2, pad_top, pad_left):
    f32 = jnp.float32
    bf16 = jnp.bfloat16
    Wq = W + 2
    HWq = H * Wq

    # ---- build the flat, zero-border-column bf16 layout of x1 (all in VMEM) --
    x1 = x1_ref[0].astype(bf16)                       # (Cin, H, W)
    Cin = x1.shape[0]
    zcol = jnp.zeros((Cin, 1), bf16)
    pieces = []
    for r in range(H):
        pieces += [zcol, x1[:, r, :], zcol]
    x = jnp.concatenate(pieces, axis=1)               # (Cin, H*Wq) bf16

    mask = mask_ref[...]                               # (1, H*Wq) f32

    # ---- 4x (3x3 conv + folded BN + ReLU): one K=9*Cin MXU dot per layer -----
    def conv_bn_relu(xflat, w_ref, b_ref):
        cin = xflat.shape[0]
        zpad = jnp.zeros((cin, Wq + 1), bf16)
        xp = jnp.concatenate([zpad, xflat, zpad], axis=1)       # (cin, HWq+2Wq+2)
        taps = [xp[:, kh * Wq + kw: kh * Wq + kw + HWq]
                for kh in range(3) for kw in range(3)]
        cols = jnp.concatenate(taps, axis=0)                    # (9*cin, HWq)
        y = jnp.dot(w_ref[...], cols,
                    preferred_element_type=jnp.float32)         # (Cout, HWq) f32
        y = jnp.maximum(y + b_ref[...], 0.0) * mask             # bias+ReLU, re-zero border
        return y.astype(bf16)

    x = conv_bn_relu(x, w1_ref, b1_ref)
    x = conv_bn_relu(x, w2_ref, b2_ref)
    x = conv_bn_relu(x, w3_ref, b3_ref)
    a4 = conv_bn_relu(x, w4_ref, b4_ref)              # (C1, HWq) bf16, borders zero
    C1 = a4.shape[0]
    C = C2 + C1

    # ---- assemble cat([pad(x2), crop(conv)], channel) as (H*C, W) rows -------
    # Row index = r*C + c (image-row major, channel minor); channels ordered
    # [x2 channels..., conv channels...] to match torch.cat([x2, x1], dim=1).
    x2v = x2_ref[0].astype(bf16)                      # (C2, H2, W2)
    zrow2 = jnp.zeros((C2, W), bf16)
    pad_right = W - W2 - pad_left
    zl = jnp.zeros((C2, pad_left), bf16) if pad_left > 0 else None
    zr = jnp.zeros((C2, pad_right), bf16) if pad_right > 0 else None
    blocks = []
    for r in range(H):
        if pad_top <= r < pad_top + H2:
            row2 = x2v[:, r - pad_top, :]                       # (C2, W2)
            parts = [p for p in (zl, row2, zr) if p is not None]
            row2 = jnp.concatenate(parts, axis=1) if len(parts) > 1 else row2
        else:
            row2 = zrow2
        row1 = a4[:, r * Wq + 1: r * Wq + 1 + W]                # cropped conv row (C1, W)
        blocks += [row2, row1]
    z = jnp.concatenate(blocks, axis=0)               # (H*C, W) bf16

    # ---- bilinear 2x upsample (align_corners=False) --------------------------
    # Columns: one MXU matmul against the dense (W, 2W) interpolation matrix.
    mid = jnp.dot(z, bt_ref[...],
                  preferred_element_type=jnp.float32)           # (H*C, 2W) f32
    # Rows: exact 2x stencil  out[2r] = .25*in[r-1] + .75*in[r]
    #                         out[2r+1] = .75*in[r] + .25*in[r+1]   (edges clamped).
    # Neighbours are just +-C row shifts in the (r*C + c) layout.
    prev = jnp.concatenate([mid[:C], mid[:-C]], axis=0)
    nxt = jnp.concatenate([mid[C:], mid[-C:]], axis=0)
    even = 0.25 * prev + 0.75 * mid                   # output rows 2r
    odd = 0.75 * mid + 0.25 * nxt                     # output rows 2r+1
    y = jnp.concatenate([even, odd], axis=1)          # (H*C, 4W): [row 2r | row 2r+1]
    y = y.reshape(H, C, 4 * W).astype(f32)
    for c in range(C):                                # per-channel (H, 4W) store
        o_ref[0, c] = y[:, c, :]


# ----------------------------------------------------------------------------
# Host-side precompute (hoisted out of the jitted forward)
# ----------------------------------------------------------------------------
def _bilinear_matrix(n):
    """PyTorch bilinear (align_corners=False) 2x-upsample interpolation matrix."""
    out = 2 * n
    dst = np.arange(out, dtype=np.float64)
    src = np.maximum((dst + 0.5) * 0.5 - 0.5, 0.0)
    i0 = np.minimum(np.floor(src).astype(np.int64), n - 1)
    i1 = np.minimum(i0 + 1, n - 1)
    w1 = src - i0
    w0 = 1.0 - w1
    M = np.zeros((out, n), np.float64)
    M[np.arange(out), i0] += w0
    M[np.arange(out), i1] += w1
    return M


def make_up_constants(H, W):
    """Border-column mask for the flat conv layout + (W, 2W) interp matrix."""
    Wq = W + 2
    col = np.arange(H * Wq) % Wq
    mask = ((col >= 1) & (col <= W)).astype(np.float32).reshape(1, H * Wq)
    bt = _bilinear_matrix(W).T                       # (W, 2W)
    return jnp.asarray(mask, jnp.float32), jnp.asarray(bt, jnp.bfloat16)


def fold_conv_bn(p, eps=1e-5):
    """Fold inference-mode BN into the conv: (Cout, 9*Cin) bf16 weight + f32 bias."""
    cout, cin = p["w"].shape[0], p["w"].shape[1]
    scale = p["gamma"] / jnp.sqrt(p["var"] + eps)                     # (Cout,)
    w = p["w"] * scale[:, None, None, None]                           # (Cout,Cin,3,3)
    w2d = (jnp.transpose(w, (0, 2, 3, 1))                             # (Cout,3,3,Cin)
           .reshape(cout, 9 * cin).astype(jnp.bfloat16))
    bias = (p["beta"] + scale * (p["conv_b"] - p["mean"])
            ).reshape(cout, 1).astype(jnp.float32)
    return w2d, bias


def init_up_params(key, channel_in, channel_out):
    chans = [channel_in, 4 * channel_out, 2 * channel_out, channel_out, channel_out]
    layers = []
    for i in range(4):
        cin, cout = chans[i], chans[i + 1]
        key, k_w, k_b, k_g, k_be, k_m, k_v = jax.random.split(key, 7)
        layers.append(dict(
            w=jax.random.normal(k_w, (cout, cin, 3, 3), jnp.float32) * 0.1,
            conv_b=jax.random.normal(k_b, (cout,), jnp.float32) * 0.1,
            gamma=jax.random.uniform(k_g, (cout,), jnp.float32, 0.5, 1.5),
            beta=jax.random.normal(k_be, (cout,), jnp.float32) * 0.1,
            mean=jax.random.normal(k_m, (cout,), jnp.float32) * 0.1,
            var=jax.random.uniform(k_v, (cout,), jnp.float32, 0.5, 1.5),
        ))
    return layers


# ----------------------------------------------------------------------------
# The Up forward (single fused pallas_call)
# ----------------------------------------------------------------------------
def up_forward(folded, mask, bt, x1, x2):
    (w1, b1), (w2, b2), (w3, b3), (w4, b4) = folded
    N, Cin, H, W = x1.shape
    N2, C2, H2, W2 = x2.shape
    assert N2 == N
    C1 = w4.shape[0]
    C = C2 + C1

    # Mirrors the PyTorch forward: W is padded with the H-size difference and
    # H with the W-size difference (module quirk).
    diff_x = H - H2
    diff_y = W - W2
    pad_left = diff_x // 2
    pad_top = diff_y // 2
    assert W2 + 2 * pad_left == W and H2 + 2 * pad_top == H, \
        "padded x2 must match x1's spatial size"

    kern = functools.partial(
        _up_fused_kernel, H=H, W=W, H2=H2, W2=W2, C2=C2,
        pad_top=pad_top, pad_left=pad_left)

    def full(shape):
        return pl.BlockSpec(shape, lambda n, _s=len(shape): (0,) * _s)

    out = pl.pallas_call(
        kern,
        out_shape=jax.ShapeDtypeStruct((N, C, H, 4 * W), jnp.float32),
        grid=(N,),
        in_specs=[
            pl.BlockSpec((1, Cin, H, W), lambda n: (n, 0, 0, 0)),
            pl.BlockSpec((1, C2, H2, W2), lambda n: (n, 0, 0, 0)),
            full(w1.shape), full(b1.shape),
            full(w2.shape), full(b2.shape),
            full(w3.shape), full(b3.shape),
            full(w4.shape), full(b4.shape),
            full(mask.shape), full(bt.shape),
        ],
        out_specs=pl.BlockSpec((1, C, H, 4 * W), lambda n: (n, 0, 0, 0)),
        compiler_params=pltpu.CompilerParams(
            dimension_semantics=("parallel",),
            vmem_limit_bytes=32 * 1024 * 1024),
    )(x1, x2, w1, b1, w2, b2, w3, b3, w4, b4, mask, bt)

    # (N, C, H, 4W) -> (N, C, 2H, 2W) is a free (contiguous) reshape.
    return out.reshape(N, C, 2 * H, 2 * W)


if __name__ == "__main__":
    channel_in, channel_out = 4, 4
    key = jax.random.PRNGKey(0)
    key, k1, k2 = jax.random.split(key, 3)

    x1 = jax.random.normal(k1, (2, channel_in, 16, 16), jnp.float32)   # NCHW
    x2 = jax.random.normal(k2, (2, channel_out, 14, 14), jnp.float32)  # NCHW

    params = init_up_params(key, channel_in, channel_out)

    # Hoisted out of the jitted forward: BN folding + interp matrix + mask.
    folded = tuple(fold_conv_bn(p) for p in params)
    mask, bt = make_up_constants(16, 16)

    fwd = jax.jit(up_forward)
    out = jax.block_until_ready(fwd(folded, mask, bt, x1, x2))

    expected_shape = (2, channel_out + channel_out, 32, 32)
    assert out.shape == expected_shape, (out.shape, expected_shape)
    assert bool(jnp.all(jnp.isfinite(out)))
    print("KERNEL_OK")
</pallas_src>

<mosaic_0001>
module attributes {stable_mosaic.version = 11 : i64} {
  func.func @_up_fused_kernel(%arg0: i32, %arg1: memref<1x4x16x16xf32, #tpu.memory_space<vmem>>, %arg2: memref<1x4x14x14xf32, #tpu.memory_space<vmem>>, %arg3: memref<16x36xbf16, #tpu.memory_space<vmem>>, %arg4: memref<16x1xf32, #tpu.memory_space<vmem>>, %arg5: memref<8x144xbf16, #tpu.memory_space<vmem>>, %arg6: memref<8x1xf32, #tpu.memory_space<vmem>>, %arg7: memref<4x72xbf16, #tpu.memory_space<vmem>>, %arg8: memref<4x1xf32, #tpu.memory_space<vmem>>, %arg9: memref<4x36xbf16, #tpu.memory_space<vmem>>, %arg10: memref<4x1xf32, #tpu.memory_space<vmem>>, %arg11: memref<1x288xf32, #tpu.memory_space<vmem>>, %arg12: memref<16x32xbf16, #tpu.memory_space<vmem>>, %arg13: memref<1x8x16x64xf32, #tpu.memory_space<vmem>>) attributes {dimension_semantics = [#tpu.dimension_semantics<parallel>], iteration_bounds = array<i64: 2>, scalar_prefetch = 0 : i64, scratch_operands = 0 : i64, tpu.core_type = #tpu.core_type<tc>, window_params = [{transform_indices = @transform_0, window_bounds = array<i64: 1, 4, 16, 16>}, {transform_indices = @transform_1, window_bounds = array<i64: 1, 4, 14, 14>}, {pipeline_mode = #tpu.pipeline_mode<synchronous>, transform_indices = @transform_2, window_bounds = array<i64: 16, 36>}, {pipeline_mode = #tpu.pipeline_mode<synchronous>, transform_indices = @transform_3, window_bounds = array<i64: 16, 1>}, {pipeline_mode = #tpu.pipeline_mode<synchronous>, transform_indices = @transform_4, window_bounds = array<i64: 8, 144>}, {pipeline_mode = #tpu.pipeline_mode<synchronous>, transform_indices = @transform_5, window_bounds = array<i64: 8, 1>}, {pipeline_mode = #tpu.pipeline_mode<synchronous>, transform_indices = @transform_6, window_bounds = array<i64: 4, 72>}, {pipeline_mode = #tpu.pipeline_mode<synchronous>, transform_indices = @transform_7, window_bounds = array<i64: 4, 1>}, {pipeline_mode = #tpu.pipeline_mode<synchronous>, transform_indices = @transform_8, window_bounds = array<i64: 4, 36>}, {pipeline_mode = #tpu.pipeline_mode<synchronous>, transform_indices = @transform_9, window_bounds = array<i64: 4, 1>}, {pipeline_mode = #tpu.pipeline_mode<synchronous>, transform_indices = @transform_10, window_bounds = array<i64: 1, 288>}, {pipeline_mode = #tpu.pipeline_mode<synchronous>, transform_indices = @transform_11, window_bounds = array<i64: 16, 32>}, {transform_indices = @transform_12, window_bounds = array<i64: 1, 8, 16, 64>}]} {
    %c0 = arith.constant 0 : index
    %c0_0 = arith.constant 0 : index
    %c0_1 = arith.constant 0 : index
    %c0_2 = arith.constant 0 : index
    %0 = vector.load %arg1[%c0, %c0_0, %c0_1, %c0_2] : memref<1x4x16x16xf32, #tpu.memory_space<vmem>>, vector<1x4x16x16xf32>
    %1 = vector.shape_cast %0 : vector<1x4x16x16xf32> to vector<4x16x16xf32>
    %2 = arith.truncf %1 : vector<4x16x16xf32> to vector<4x16x16xbf16>
    %cst = arith.constant 0.000000e+00 : bf16
    %3 = vector.broadcast %cst : bf16 to vector<4x1xbf16>
    %4 = vector.extract_strided_slice %2 {offsets = [0, 0, 0], sizes = [4, 1, 16], strides = [1, 1, 1]} : vector<4x16x16xbf16> to vector<4x1x16xbf16>
    %5 = vector.shape_cast %4 : vector<4x1x16xbf16> to vector<4x16xbf16>
    %6 = vector.extract_strided_slice %2 {offsets = [0, 1, 0], sizes = [4, 1, 16], strides = [1, 1, 1]} : vector<4x16x16xbf16> to vector<4x1x16xbf16>
    %7 = vector.shape_cast %6 : vector<4x1x16xbf16> to vector<4x16xbf16>
    %8 = vector.extract_strided_slice %2 {offsets = [0, 2, 0], sizes = [4, 1, 16], strides = [1, 1, 1]} : vector<4x16x16xbf16> to vector<4x1x16xbf16>
    %9 = vector.shape_cast %8 : vector<4x1x16xbf16> to vector<4x16xbf16>
    %10 = vector.extract_strided_slice %2 {offsets = [0, 3, 0], sizes = [4, 1, 16], strides = [1, 1, 1]} : vector<4x16x16xbf16> to vector<4x1x16xbf16>
    %11 = vector.shape_cast %10 : vector<4x1x16xbf16> to vector<4x16xbf16>
    %12 = vector.extract_strided_slice %2 {offsets = [0, 4, 0], sizes = [4, 1, 16], strides = [1, 1, 1]} : vector<4x16x16xbf16> to vector<4x1x16xbf16>
    %13 = vector.shape_cast %12 : vector<4x1x16xbf16> to vector<4x16xbf16>
    %14 = vector.extract_strided_slice %2 {offsets = [0, 5, 0], sizes = [4, 1, 16], strides = [1, 1, 1]} : vector<4x16x16xbf16> to vector<4x1x16xbf16>
    %15 = vector.shape_cast %14 : vector<4x1x16xbf16> to vector<4x16xbf16>
    %16 = vector.extract_strided_slice %2 {offsets = [0, 6, 0], sizes = [4, 1, 16], strides = [1, 1, 1]} : vector<4x16x16xbf16> to vector<4x1x16xbf16>
    %17 = vector.shape_cast %16 : vector<4x1x16xbf16> to vector<4x16xbf16>
    %18 = vector.extract_strided_slice %2 {offsets = [0, 7, 0], sizes = [4, 1, 16], strides = [1, 1, 1]} : vector<4x16x16xbf16> to vector<4x1x16xbf16>
    %19 = vector.shape_cast %18 : vector<4x1x16xbf16> to vector<4x16xbf16>
    %20 = vector.extract_strided_slice %2 {offsets = [0, 8, 0], sizes = [4, 1, 16], strides = [1, 1, 1]} : vector<4x16x16xbf16> to vector<4x1x16xbf16>
    %21 = vector.shape_cast %20 : vector<4x1x16xbf16> to vector<4x16xbf16>
    %22 = vector.extract_strided_slice %2 {offsets = [0, 9, 0], sizes = [4, 1, 16], strides = [1, 1, 1]} : vector<4x16x16xbf16> to vector<4x1x16xbf16>
    %23 = vector.shape_cast %22 : vector<4x1x16xbf16> to vector<4x16xbf16>
    %24 = vector.extract_strided_slice %2 {offsets = [0, 10, 0], sizes = [4, 1, 16], strides = [1, 1, 1]} : vector<4x16x16xbf16> to vector<4x1x16xbf16>
    %25 = vector.shape_cast %24 : vector<4x1x16xbf16> to vector<4x16xbf16>
    %26 = vector.extract_strided_slice %2 {offsets = [0, 11, 0], sizes = [4, 1, 16], strides = [1, 1, 1]} : vector<4x16x16xbf16> to vector<4x1x16xbf16>
    %27 = vector.shape_cast %26 : vector<4x1x16xbf16> to vector<4x16xbf16>
    %28 = vector.extract_strided_slice %2 {offsets = [0, 12, 0], sizes = [4, 1, 16], strides = [1, 1, 1]} : vector<4x16x16xbf16> to vector<4x1x16xbf16>
    %29 = vector.shape_cast %28 : vector<4x1x16xbf16> to vector<4x16xbf16>
    %30 = vector.extract_strided_slice %2 {offsets = [0, 13, 0], sizes = [4, 1, 16], strides = [1, 1, 1]} : vector<4x16x16xbf16> to vector<4x1x16xbf16>
    %31 = vector.shape_cast %30 : vector<4x1x16xbf16> to vector<4x16xbf16>
    %32 = vector.extract_strided_slice %2 {offsets = [0, 14, 0], sizes = [4, 1, 16], strides = [1, 1, 1]} : vector<4x16x16xbf16> to vector<4x1x16xbf16>
    %33 = vector.shape_cast %32 : vector<4x1x16xbf16> to vector<4x16xbf16>
    %34 = vector.extract_strided_slice %2 {offsets = [0, 15, 0], sizes = [4, 1, 16], strides = [1, 1, 1]} : vector<4x16x16xbf16> to vector<4x1x16xbf16>
    %35 = vector.shape_cast %34 : vector<4x1x16xbf16> to vector<4x16xbf16>
    %36 = tpu.concatenate %3, %5, %3, %3, %7, %3, %3, %9, %3, %3, %11, %3, %3, %13, %3, %3 in 1 : vector<4x1xbf16>, vector<4x16xbf16>, vector<4x1xbf16>, vector<4x1xbf16>, vector<4x16xbf16>, vector<4x1xbf16>, vector<4x1xbf16>, vector<4x16xbf16>, vector<4x1xbf16>, vector<4x1xbf16>, vector<4x16xbf16>, vector<4x1xbf16>, vector<4x1xbf16>, vector<4x16xbf16>, vector<4x1xbf16>, vector<4x1xbf16> -> vector<4x91xbf16>
    %37 = tpu.concatenate %15, %3, %3, %17, %3, %3, %19, %3, %3, %21, %3, %3, %23, %3, %3, %25 in 1 : vector<4x16xbf16>, vector<4x1xbf16>, vector<4x1xbf16>, vector<4x16xbf16>, vector<4x1xbf16>, vector<4x1xbf16>, vector<4x16xbf16>, vector<4x1xbf16>, vector<4x1xbf16>, vector<4x16xbf16>, vector<4x1xbf16>, vector<4x1xbf16>, vector<4x16xbf16>, vector<4x1xbf16>, vector<4x1xbf16>, vector<4x16xbf16> -> vector<4x106xbf16>
    %38 = tpu.concatenate %3, %3, %27, %3, %3, %29, %3, %3, %31, %3, %3, %33, %3, %3, %35, %3 in 1 : vector<4x1xbf16>, vector<4x1xbf16>, vector<4x16xbf16>, vector<4x1xbf16>, vector<4x1xbf16>, vector<4x16xbf16>, vector<4x1xbf16>, vector<4x1xbf16>, vector<4x16xbf16>, vector<4x1xbf16>, vector<4x1xbf16>, vector<4x16xbf16>, vector<4x1xbf16>, vector<4x1xbf16>, vector<4x16xbf16>, vector<4x1xbf16> -> vector<4x91xbf16>
    %39 = tpu.concatenate %36, %37, %38 in 1 : vector<4x91xbf16>, vector<4x106xbf16>, vector<4x91xbf16> -> vector<4x288xbf16>
    %c0_3 = arith.constant 0 : index
    %c0_4 = arith.constant 0 : index
    %40 = vector.load %arg11[%c0_3, %c0_4] : memref<1x288xf32, #tpu.memory_space<vmem>>, vector<1x288xf32>
    %cst_5 = arith.constant 0.000000e+00 : bf16
    %41 = vector.broadcast %cst_5 : bf16 to vector<4x19xbf16>
    %42 = tpu.concatenate %41, %39, %41 in 1 : vector<4x19xbf16>, vector<4x288xbf16>, vector<4x19xbf16> -> vector<4x326xbf16>
    %43 = vector.extract_strided_slice %42 {offsets = [0, 0], sizes = [4, 288], strides = [1, 1]} : vector<4x326xbf16> to vector<4x288xbf16>
    %44 = vector.extract_strided_slice %42 {offsets = [0, 1], sizes = [4, 288], strides = [1, 1]} : vector<4x326xbf16> to vector<4x288xbf16>
    %45 = vector.extract_strided_slice %42 {offsets = [0, 2], sizes = [4, 288], strides = [1, 1]} : vector<4x326xbf16> to vector<4x288xbf16>
    %46 = vector.extract_strided_slice %42 {offsets = [0, 18], sizes = [4, 288], strides = [1, 1]} : vector<4x326xbf16> to vector<4x288xbf16>
    %47 = vector.extract_strided_slice %42 {offsets = [0, 19], sizes = [4, 288], strides = [1, 1]} : vector<4x326xbf16> to vector<4x288xbf16>
    %48 = vector.extract_strided_slice %42 {offsets = [0, 20], sizes = [4, 288], strides = [1, 1]} : vector<4x326xbf16> to vector<4x288xbf16>
    %49 = vector.extract_strided_slice %42 {offsets = [0, 36], sizes = [4, 288], strides = [1, 1]} : vector<4x326xbf16> to vector<4x288xbf16>
    %50 = vector.extract_strided_slice %42 {offsets = [0, 37], sizes = [4, 288], strides = [1, 1]} : vector<4x326xbf16> to vector<4x288xbf16>
    %51 = vector.extract_strided_slice %42 {offsets = [0, 38], sizes = [4, 288], strides = [1, 1]} : vector<4x326xbf16> to vector<4x288xbf16>
    %52 = tpu.concatenate %43, %44, %45, %46, %47, %48, %49, %50, %51 in 0 : vector<4x288xbf16>, vector<4x288xbf16>, vector<4x288xbf16>, vector<4x288xbf16>, vector<4x288xbf16>, vector<4x288xbf16>, vector<4x288xbf16>, vector<4x288xbf16>, vector<4x288xbf16> -> vector<36x288xbf16>
    %c0_6 = arith.constant 0 : index
    %c0_7 = arith.constant 0 : index
    %53 = vector.load %arg3[%c0_6, %c0_7] : memref<16x36xbf16, #tpu.memory_space<vmem>>, vector<16x36xbf16>
    %cst_8 = arith.constant dense<0.000000e+00> : vector<16x288xf32>
    %54 = tpu.matmul %53, %52, %cst_8 {dimension_numbers = #tpu.dot_dimension_numbers<[1], [0], [0], [1], [0, 0, 1, 1], [], []>} : vector<16x36xbf16>, vector<36x288xbf16>, vector<16x288xf32> -> vector<16x288xf32>
    %c0_9 = arith.constant 0 : index
    %c0_10 = arith.constant 0 : index
    %55 = vector.load %arg4[%c0_9, %c0_10] : memref<16x1xf32, #tpu.memory_space<vmem>>, vector<16x1xf32>
    %56 = vector.broadcast %55 : vector<16x1xf32> to vector<16x288xf32>
    %57 = arith.addf %54, %56 : vector<16x288xf32>
    %cst_11 = arith.constant 0.000000e+00 : f32
    %58 = vector.broadcast %cst_11 : f32 to vector<16x288xf32>
    %59 = arith.maximumf %57, %58 : vector<16x288xf32>
    %60 = vector.broadcast %40 : vector<1x288xf32> to vector<16x288xf32>
    %61 = arith.mulf %59, %60 : vector<16x288xf32>
    %62 = arith.truncf %61 : vector<16x288xf32> to vector<16x288xbf16>
    %cst_12 = arith.constant 0.000000e+00 : bf16
    %63 = vector.broadcast %cst_12 : bf16 to vector<16x19xbf16>
    %64 = tpu.concatenate %63, %62, %63 in 1 : vector<16x19xbf16>, vector<16x288xbf16>, vector<16x19xbf16> -> vector<16x326xbf16>
    %65 = vector.extract_strided_slice %64 {offsets = [0, 0], sizes = [16, 288], strides = [1, 1]} : vector<16x326xbf16> to vector<16x288xbf16>
    %66 = vector.extract_strided_slice %64 {offsets = [0, 1], sizes = [16, 288], strides = [1, 1]} : vector<16x326xbf16> to vector<16x288xbf16>
    %67 = vector.extract_strided_slice %64 {offsets = [0, 2], sizes = [16, 288], strides = [1, 1]} : vector<16x326xbf16> to vector<16x288xbf16>
    %68 = vector.extract_strided_slice %64 {offsets = [0, 18], sizes = [16, 288], strides = [1, 1]} : vector<16x326xbf16> to vector<16x288xbf16>
    %69 = vector.extract_strided_slice %64 {offsets = [0, 19], sizes = [16, 288], strides = [1, 1]} : vector<16x326xbf16> to vector<16x288xbf16>
    %70 = vector.extract_strided_slice %64 {offsets = [0, 20], sizes = [16, 288], strides = [1, 1]} : vector<16x326xbf16> to vector<16x288xbf16>
    %71 = vector.extract_strided_slice %64 {offsets = [0, 36], sizes = [16, 288], strides = [1, 1]} : vector<16x326xbf16> to vector<16x288xbf16>
    %72 = vector.extract_strided_slice %64 {offsets = [0, 37], sizes = [16, 288], strides = [1, 1]} : vector<16x326xbf16> to vector<16x288xbf16>
    %73 = vector.extract_strided_slice %64 {offsets = [0, 38], sizes = [16, 288], strides = [1, 1]} : vector<16x326xbf16> to vector<16x288xbf16>
    %74 = tpu.concatenate %65, %66, %67, %68, %69, %70, %71, %72, %73 in 0 : vector<16x288xbf16>, vector<16x288xbf16>, vector<16x288xbf16>, vector<16x288xbf16>, vector<16x288xbf16>, vector<16x288xbf16>, vector<16x288xbf16>, vector<16x288xbf16>, vector<16x288xbf16> -> vector<144x288xbf16>
    %c0_13 = arith.constant 0 : index
    %c0_14 = arith.constant 0 : index
    %75 = vector.load %arg5[%c0_13, %c0_14] : memref<8x144xbf16, #tpu.memory_space<vmem>>, vector<8x144xbf16>
    %cst_15 = arith.constant dense<0.000000e+00> : vector<8x288xf32>
    %76 = tpu.matmul %75, %74, %cst_15 {dimension_numbers = #tpu.dot_dimension_numbers<[1], [0], [0], [1], [0, 0, 1, 1], [], []>} : vector<8x144xbf16>, vector<144x288xbf16>, vector<8x288xf32> -> vector<8x288xf32>
    %c0_16 = arith.constant 0 : index
    %c0_17 = arith.constant 0 : index
    %77 = vector.load %arg6[%c0_16, %c0_17] : memref<8x1xf32, #tpu.memory_space<vmem>>, vector<8x1xf32>
    %78 = vector.broadcast %77 : vector<8x1xf32> to vector<8x288xf32>
    %79 = arith.addf %76, %78 : vector<8x288xf32>
    %cst_18 = arith.constant 0.000000e+00 : f32
    %80 = vector.broadcast %cst_18 : f32 to vector<8x288xf32>
    %81 = arith.maximumf %79, %80 : vector<8x288xf32>
    %82 = vector.broadcast %40 : vector<1x288xf32> to vector<8x288xf32>
    %83 = arith.mulf %81, %82 : vector<8x288xf32>
    %84 = arith.truncf %83 : vector<8x288xf32> to vector<8x288xbf16>
    %cst_19 = arith.constant 0.000000e+00 : bf16
    %85 = vector.broadcast %cst_19 : bf16 to vector<8x19xbf16>
    %86 = tpu.concatenate %85, %84, %85 in 1 : vector<8x19xbf16>, vector<8x288xbf16>, vector<8x19xbf16> -> vector<8x326xbf16>
    %87 = vector.extract_strided_slice %86 {offsets = [0, 0], sizes = [8, 288], strides = [1, 1]} : vector<8x326xbf16> to vector<8x288xbf16>
    %88 = vector.extract_strided_slice %86 {offsets = [0, 1], sizes = [8, 288], strides = [1, 1]} : vector<8x326xbf16> to vector<8x288xbf16>
    %89 = vector.extract_strided_slice %86 {offsets = [0, 2], sizes = [8, 288], strides = [1, 1]} : vector<8x326xbf16> to vector<8x288xbf16>
    %90 = vector.extract_strided_slice %86 {offsets = [0, 18], sizes = [8, 288], strides = [1, 1]} : vector<8x326xbf16> to vector<8x288xbf16>
    %91 = vector.extract_strided_slice %86 {offsets = [0, 19], sizes = [8, 288], strides = [1, 1]} : vector<8x326xbf16> to vector<8x288xbf16>
    %92 = vector.extract_strided_slice %86 {offsets = [0, 20], sizes = [8, 288], strides = [1, 1]} : vector<8x326xbf16> to vector<8x288xbf16>
    %93 = vector.extract_strided_slice %86 {offsets = [0, 36], sizes = [8, 288], strides = [1, 1]} : vector<8x326xbf16> to vector<8x288xbf16>
    %94 = vector.extract_strided_slice %86 {offsets = [0, 37], sizes = [8, 288], strides = [1, 1]} : vector<8x326xbf16> to vector<8x288xbf16>
    %95 = vector.extract_strided_slice %86 {offsets = [0, 38], sizes = [8, 288], strides = [1, 1]} : vector<8x326xbf16> to vector<8x288xbf16>
    %96 = tpu.concatenate %87, %88, %89, %90, %91, %92, %93, %94, %95 in 0 : vector<8x288xbf16>, vector<8x288xbf16>, vector<8x288xbf16>, vector<8x288xbf16>, vector<8x288xbf16>, vector<8x288xbf16>, vector<8x288xbf16>, vector<8x288xbf16>, vector<8x288xbf16> -> vector<72x288xbf16>
    %c0_20 = arith.constant 0 : index
    %c0_21 = arith.constant 0 : index
    %97 = vector.load %arg7[%c0_20, %c0_21] : memref<4x72xbf16, #tpu.memory_space<vmem>>, vector<4x72xbf16>
    %cst_22 = arith.constant dense<0.000000e+00> : vector<4x288xf32>
    %98 = tpu.matmul %97, %96, %cst_22 {dimension_numbers = #tpu.dot_dimension_numbers<[1], [0], [0], [1], [0, 0, 1, 1], [], []>} : vector<4x72xbf16>, vector<72x288xbf16>, vector<4x288xf32> -> vector<4x288xf32>
    %c0_23 = arith.constant 0 : index
    %c0_24 = arith.constant 0 : index
    %99 = vector.load %arg8[%c0_23, %c0_24] : memref<4x1xf32, #tpu.memory_space<vmem>>, vector<4x1xf32>
    %100 = vector.broadcast %99 : vector<4x1xf32> to vector<4x288xf32>
    %101 = arith.addf %98, %100 : vector<4x288xf32>
    %cst_25 = arith.constant 0.000000e+00 : f32
    %102 = vector.broadcast %cst_25 : f32 to vector<4x288xf32>
    %103 = arith.maximumf %101, %102 : vector<4x288xf32>
    %104 = vector.broadcast %40 : vector<1x288xf32> to vector<4x288xf32>
    %105 = arith.mulf %103, %104 : vector<4x288xf32>
    %106 = arith.truncf %105 : vector<4x288xf32> to vector<4x288xbf16>
    %cst_26 = arith.constant 0.000000e+00 : bf16
    %107 = vector.broadcast %cst_26 : bf16 to vector<4x19xbf16>
    %108 = tpu.concatenate %107, %106, %107 in 1 : vector<4x19xbf16>, vector<4x288xbf16>, vector<4x19xbf16> -> vector<4x326xbf16>
    %109 = vector.extract_strided_slice %108 {offsets = [0, 0], sizes = [4, 288], strides = [1, 1]} : vector<4x326xbf16> to vector<4x288xbf16>
    %110 = vector.extract_strided_slice %108 {offsets = [0, 1], sizes = [4, 288], strides = [1, 1]} : vector<4x326xbf16> to vector<4x288xbf16>
    %111 = vector.extract_strided_slice %108 {offsets = [0, 2], sizes = [4, 288], strides = [1, 1]} : vector<4x326xbf16> to vector<4x288xbf16>
    %112 = vector.extract_strided_slice %108 {offsets = [0, 18], sizes = [4, 288], strides = [1, 1]} : vector<4x326xbf16> to vector<4x288xbf16>
    %113 = vector.extract_strided_slice %108 {offsets = [0, 19], sizes = [4, 288], strides = [1, 1]} : vector<4x326xbf16> to vector<4x288xbf16>
    %114 = vector.extract_strided_slice %108 {offsets = [0, 20], sizes = [4, 288], strides = [1, 1]} : vector<4x326xbf16> to vector<4x288xbf16>
    %115 = vector.extract_strided_slice %108 {offsets = [0, 36], sizes = [4, 288], strides = [1, 1]} : vector<4x326xbf16> to vector<4x288xbf16>
    %116 = vector.extract_strided_slice %108 {offsets = [0, 37], sizes = [4, 288], strides = [1, 1]} : vector<4x326xbf16> to vector<4x288xbf16>
    %117 = vector.extract_strided_slice %108 {offsets = [0, 38], sizes = [4, 288], strides = [1, 1]} : vector<4x326xbf16> to vector<4x288xbf16>
    %118 = tpu.concatenate %109, %110, %111, %112, %113, %114, %115, %116, %117 in 0 : vector<4x288xbf16>, vector<4x288xbf16>, vector<4x288xbf16>, vector<4x288xbf16>, vector<4x288xbf16>, vector<4x288xbf16>, vector<4x288xbf16>, vector<4x288xbf16>, vector<4x288xbf16> -> vector<36x288xbf16>
    %c0_27 = arith.constant 0 : index
    %c0_28 = arith.constant 0 : index
    %119 = vector.load %arg9[%c0_27, %c0_28] : memref<4x36xbf16, #tpu.memory_space<vmem>>, vector<4x36xbf16>
    %cst_29 = arith.constant dense<0.000000e+00> : vector<4x288xf32>
    %120 = tpu.matmul %119, %118, %cst_29 {dimension_numbers = #tpu.dot_dimension_numbers<[1], [0], [0], [1], [0, 0, 1, 1], [], []>} : vector<4x36xbf16>, vector<36x288xbf16>, vector<4x288xf32> -> vector<4x288xf32>
    %c0_30 = arith.constant 0 : index
    %c0_31 = arith.constant 0 : index
    %121 = vector.load %arg10[%c0_30, %c0_31] : memref<4x1xf32, #tpu.memory_space<vmem>>, vector<4x1xf32>
    %122 = vector.broadcast %121 : vector<4x1xf32> to vector<4x288xf32>
    %123 = arith.addf %120, %122 : vector<4x288xf32>
    %cst_32 = arith.constant 0.000000e+00 : f32
    %124 = vector.broadcast %cst_32 : f32 to vector<4x288xf32>
    %125 = arith.maximumf %123, %124 : vector<4x288xf32>
    %126 = vector.broadcast %40 : vector<1x288xf32> to vector<4x288xf32>
    %127 = arith.mulf %125, %126 : vector<4x288xf32>
    %128 = arith.truncf %127 : vector<4x288xf32> to vector<4x288xbf16>
    %c0_33 = arith.constant 0 : index
    %c0_34 = arith.constant 0 : index
    %c0_35 = arith.constant 0 : index
    %c0_36 = arith.constant 0 : index
    %129 = vector.load %arg2[%c0_33, %c0_34, %c0_35, %c0_36] : memref<1x4x14x14xf32, #tpu.memory_space<vmem>>, vector<1x4x14x14xf32>
    %130 = vector.shape_cast %129 : vector<1x4x14x14xf32> to vector<4x14x14xf32>
    %131 = arith.truncf %130 : vector<4x14x14xf32> to vector<4x14x14xbf16>
    %cst_37 = arith.constant 0.000000e+00 : bf16
    %132 = vector.broadcast %cst_37 : bf16 to vector<4x16xbf16>
    %cst_38 = arith.constant 0.000000e+00 : bf16
    %133 = vector.broadcast %cst_38 : bf16 to vector<4x1xbf16>
    %cst_39 = arith.constant 0.000000e+00 : bf16
    %134 = vector.broadcast %cst_39 : bf16 to vector<4x1xbf16>
    %135 = vector.extract_strided_slice %128 {offsets = [0, 1], sizes = [4, 16], strides = [1, 1]} : vector<4x288xbf16> to vector<4x16xbf16>
    %136 = vector.extract_strided_slice %131 {offsets = [0, 0, 0], sizes = [4, 1, 14], strides = [1, 1, 1]} : vector<4x14x14xbf16> to vector<4x1x14xbf16>
    %137 = vector.shape_cast %136 : vector<4x1x14xbf16> to vector<4x14xbf16>
    %138 = tpu.concatenate %133, %137, %134 in 1 : vector<4x1xbf16>, vector<4x14xbf16>, vector<4x1xbf16> -> vector<4x16xbf16>
    %139 = vector.extract_strided_slice %128 {offsets = [0, 19], sizes = [4, 16], strides = [1, 1]} : vector<4x288xbf16> to vector<4x16xbf16>
    %140 = vector.extract_strided_slice %131 {offsets = [0, 1, 0], sizes = [4, 1, 14], strides = [1, 1, 1]} : vector<4x14x14xbf16> to vector<4x1x14xbf16>
    %141 = vector.shape_cast %140 : vector<4x1x14xbf16> to vector<4x14xbf16>
    %142 = tpu.concatenate %133, %141, %134 in 1 : vector<4x1xbf16>, vector<4x14xbf16>, vector<4x1xbf16> -> vector<4x16xbf16>
    %143 = vector.extract_strided_slice %128 {offsets = [0, 37], sizes = [4, 16], strides = [1, 1]} : vector<4x288xbf16> to vector<4x16xbf16>
    %144 = vector.extract_strided_slice %131 {offsets = [0, 2, 0], sizes = [4, 1, 14], strides = [1, 1, 1]} : vector<4x14x14xbf16> to vector<4x1x14xbf16>
    %145 = vector.shape_cast %144 : vector<4x1x14xbf16> to vector<4x14xbf16>
    %146 = tpu.concatenate %133, %145, %134 in 1 : vector<4x1xbf16>, vector<4x14xbf16>, vector<4x1xbf16> -> vector<4x16xbf16>
    %147 = vector.extract_strided_slice %128 {offsets = [0, 55], sizes = [4, 16], strides = [1, 1]} : vector<4x288xbf16> to vector<4x16xbf16>
    %148 = vector.extract_strided_slice %131 {offsets = [0, 3, 0], sizes = [4, 1, 14], strides = [1, 1, 1]} : vector<4x14x14xbf16> to vector<4x1x14xbf16>
    %149 = vector.shape_cast %148 : vector<4x1x14xbf16> to vector<4x14xbf16>
    %150 = tpu.concatenate %133, %149, %134 in 1 : vector<4x1xbf16>, vector<4x14xbf16>, vector<4x1xbf16> -> vector<4x16xbf16>
    %151 = vector.extract_strided_slice %128 {offsets = [0, 73], sizes = [4, 16], strides = [1, 1]} : vector<4x288xbf16> to vector<4x16xbf16>
    %152 = vector.extract_strided_slice %131 {offsets = [0, 4, 0], sizes = [4, 1, 14], strides = [1, 1, 1]} : vector<4x14x14xbf16> to vector<4x1x14xbf16>
    %153 = vector.shape_cast %152 : vector<4x1x14xbf16> to vector<4x14xbf16>
    %154 = tpu.concatenate %133, %153, %134 in 1 : vector<4x1xbf16>, vector<4x14xbf16>, vector<4x1xbf16> -> vector<4x16xbf16>
    %155 = vector.extract_strided_slice %128 {offsets = [0, 91], sizes = [4, 16], strides = [1, 1]} : vector<4x288xbf16> to vector<4x16xbf16>
    %156 = vector.extract_strided_slice %131 {offsets = [0, 5, 0], sizes = [4, 1, 14], strides = [1, 1, 1]} : vector<4x14x14xbf16> to vector<4x1x14xbf16>
    %157 = vector.shape_cast %156 : vector<4x1x14xbf16> to vector<4x14xbf16>
    %158 = tpu.concatenate %133, %157, %134 in 1 : vector<4x1xbf16>, vector<4x14xbf16>, vector<4x1xbf16> -> vector<4x16xbf16>
    %159 = vector.extract_strided_slice %128 {offsets = [0, 109], sizes = [4, 16], strides = [1, 1]} : vector<4x288xbf16> to vector<4x16xbf16>
    %160 = vector.extract_strided_slice %131 {offsets = [0, 6, 0], sizes = [4, 1, 14], strides = [1, 1, 1]} : vector<4x14x14xbf16> to vector<4x1x14xbf16>
    %161 = vector.shape_cast %160 : vector<4x1x14xbf16> to vector<4x14xbf16>
    %162 = tpu.concatenate %133, %161, %134 in 1 : vector<4x1xbf16>, vector<4x14xbf16>, vector<4x1xbf16> -> vector<4x16xbf16>
    %163 = vector.extract_strided_slice %128 {offsets = [0, 127], sizes = [4, 16], strides = [1, 1]} : vector<4x288xbf16> to vector<4x16xbf16>
    %164 = vector.extract_strided_slice %131 {offsets = [0, 7, 0], sizes = [4, 1, 14], strides = [1, 1, 1]} : vector<4x14x14xbf16> to vector<4x1x14xbf16>
    %165 = vector.shape_cast %164 : vector<4x1x14xbf16> to vector<4x14xbf16>
    %166 = tpu.concatenate %133, %165, %134 in 1 : vector<4x1xbf16>, vector<4x14xbf16>, vector<4x1xbf16> -> vector<4x16xbf16>
    %167 = vector.extract_strided_slice %128 {offsets = [0, 145], sizes = [4, 16], strides = [1, 1]} : vector<4x288xbf16> to vector<4x16xbf16>
    %168 = vector.extract_strided_slice %131 {offsets = [0, 8, 0], sizes = [4, 1, 14], strides = [1, 1, 1]} : vector<4x14x14xbf16> to vector<4x1x14xbf16>
    %169 = vector.shape_cast %168 : vector<4x1x14xbf16> to vector<4x14xbf16>
    %170 = tpu.concatenate %133, %169, %134 in 1 : vector<4x1xbf16>, vector<4x14xbf16>, vector<4x1xbf16> -> vector<4x16xbf16>
    %171 = vector.extract_strided_slice %128 {offsets = [0, 163], sizes = [4, 16], strides = [1, 1]} : vector<4x288xbf16> to vector<4x16xbf16>
    %172 = vector.extract_strided_slice %131 {offsets = [0, 9, 0], sizes = [4, 1, 14], strides = [1, 1, 1]} : vector<4x14x14xbf16> to vector<4x1x14xbf16>
    %173 = vector.shape_cast %172 : vector<4x1x14xbf16> to vector<4x14xbf16>
    %174 = tpu.concatenate %133, %173, %134 in 1 : vector<4x1xbf16>, vector<4x14xbf16>, vector<4x1xbf16> -> vector<4x16xbf16>
    %175 = vector.extract_strided_slice %128 {offsets = [0, 181], sizes = [4, 16], strides = [1, 1]} : vector<4x288xbf16> to vector<4x16xbf16>
    %176 = vector.extract_strided_slice %131 {offsets = [0, 10, 0], sizes = [4, 1, 14], strides = [1, 1, 1]} : vector<4x14x14xbf16> to vector<4x1x14xbf16>
    %177 = vector.shape_cast %176 : vector<4x1x14xbf16> to vector<4x14xbf16>
    %178 = tpu.concatenate %133, %177, %134 in 1 : vector<4x1xbf16>, vector<4x14xbf16>, vector<4x1xbf16> -> vector<4x16xbf16>
    %179 = vector.extract_strided_slice %128 {offsets = [0, 199], sizes = [4, 16], strides = [1, 1]} : vector<4x288xbf16> to vector<4x16xbf16>
    %180 = vector.extract_strided_slice %131 {offsets = [0, 11, 0], sizes = [4, 1, 14], strides = [1, 1, 1]} : vector<4x14x14xbf16> to vector<4x1x14xbf16>
    %181 = vector.shape_cast %180 : vector<4x1x14xbf16> to vector<4x14xbf16>
    %182 = tpu.concatenate %133, %181, %134 in 1 : vector<4x1xbf16>, vector<4x14xbf16>, vector<4x1xbf16> -> vector<4x16xbf16>
    %183 = vector.extract_strided_slice %128 {offsets = [0, 217], sizes = [4, 16], strides = [1, 1]} : vector<4x288xbf16> to vector<4x16xbf16>
    %184 = vector.extract_strided_slice %131 {offsets = [0, 12, 0], sizes = [4, 1, 14], strides = [1, 1, 1]} : vector<4x14x14xbf16> to vector<4x1x14xbf16>
    %185 = vector.shape_cast %184 : vector<4x1x14xbf16> to vector<4x14xbf16>
    %186 = tpu.concatenate %133, %185, %134 in 1 : vector<4x1xbf16>, vector<4x14xbf16>, vector<4x1xbf16> -> vector<4x16xbf16>
    %187 = vector.extract_strided_slice %128 {offsets = [0, 235], sizes = [4, 16], strides = [1, 1]} : vector<4x288xbf16> to vector<4x16xbf16>
    %188 = vector.extract_strided_slice %131 {offsets = [0, 13, 0], sizes = [4, 1, 14], strides = [1, 1, 1]} : vector<4x14x14xbf16> to vector<4x1x14xbf16>
    %189 = vector.shape_cast %188 : vector<4x1x14xbf16> to vector<4x14xbf16>
    %190 = tpu.concatenate %133, %189, %134 in 1 : vector<4x1xbf16>, vector<4x14xbf16>, vector<4x1xbf16> -> vector<4x16xbf16>
    %191 = vector.extract_strided_slice %128 {offsets = [0, 253], sizes = [4, 16], strides = [1, 1]} : vector<4x288xbf16> to vector<4x16xbf16>
    %192 = vector.extract_strided_slice %128 {offsets = [0, 271], sizes = [4, 16], strides = [1, 1]} : vector<4x288xbf16> to vector<4x16xbf16>
    %193 = tpu.concatenate %132, %135, %138, %139, %142, %143, %146, %147, %150, %151, %154, %155, %158, %159, %162, %163 in 0 : vector<4x16xbf16>, vector<4x16xbf16>, vector<4x16xbf16>, vector<4x16xbf16>, vector<4x16xbf16>, vector<4x16xbf16>, vector<4x16xbf16>, vector<4x16xbf16>, vector<4x16xbf16>, vector<4x16xbf16>, vector<4x16xbf16>, vector<4x16xbf16>, vector<4x16xbf16>, vector<4x16xbf16>, vector<4x16xbf16>, vector<4x16xbf16> -> vector<64x16xbf16>
    %194 = tpu.concatenate %166, %167, %170, %171, %174, %175, %178, %179, %182, %183, %186, %187, %190, %191, %132, %192 in 0 : vector<4x16xbf16>, vector<4x16xbf16>, vector<4x16xbf16>, vector<4x16xbf16>, vector<4x16xbf16>, vector<4x16xbf16>, vector<4x16xbf16>, vector<4x16xbf16>, vector<4x16xbf16>, vector<4x16xbf16>, vector<4x16xbf16>, vector<4x16xbf16>, vector<4x16xbf16>, vector<4x16xbf16>, vector<4x16xbf16>, vector<4x16xbf16> -> vector<64x16xbf16>
    %195 = tpu.concatenate %193, %194 in 0 : vector<64x16xbf16>, vector<64x16xbf16> -> vector<128x16xbf16>
    %c0_40 = arith.constant 0 : index
    %c0_41 = arith.constant 0 : index
    %196 = vector.load %arg12[%c0_40, %c0_41] : memref<16x32xbf16, #tpu.memory_space<vmem>>, vector<16x32xbf16>
    %cst_42 = arith.constant dense<0.000000e+00> : vector<128x32xf32>
    %197 = tpu.matmul %195, %196, %cst_42 {dimension_numbers = #tpu.dot_dimension_numbers<[1], [0], [0], [1], [0, 0, 1, 1], [], []>} : vector<128x16xbf16>, vector<16x32xbf16>, vector<128x32xf32> -> vector<128x32xf32>
    %198 = vector.extract_strided_slice %197 {offsets = [0, 0], sizes = [8, 32], strides = [1, 1]} : vector<128x32xf32> to vector<8x32xf32>
    %199 = vector.extract_strided_slice %197 {offsets = [0, 0], sizes = [120, 32], strides = [1, 1]} : vector<128x32xf32> to vector<120x32xf32>
    %200 = tpu.concatenate %198, %199 in 0 : vector<8x32xf32>, vector<120x32xf32> -> vector<128x32xf32>
    %201 = vector.extract_strided_slice %197 {offsets = [8, 0], sizes = [120, 32], strides = [1, 1]} : vector<128x32xf32> to vector<120x32xf32>
    %202 = vector.extract_strided_slice %197 {offsets = [120, 0], sizes = [8, 32], strides = [1, 1]} : vector<128x32xf32> to vector<8x32xf32>
    %203 = tpu.concatenate %201, %202 in 0 : vector<120x32xf32>, vector<8x32xf32> -> vector<128x32xf32>
    %cst_43 = arith.constant 2.500000e-01 : f32
    %204 = vector.broadcast %cst_43 : f32 to vector<128x32xf32>
    %205 = arith.mulf %204, %200 : vector<128x32xf32>
    %cst_44 = arith.constant 7.500000e-01 : f32
    %206 = vector.broadcast %cst_44 : f32 to vector<128x32xf32>
    %207 = arith.mulf %206, %197 : vector<128x32xf32>
    %208 = arith.addf %205, %207 : vector<128x32xf32>
    %cst_45 = arith.constant 7.500000e-01 : f32
    %209 = vector.broadcast %cst_45 : f32 to vector<128x32xf32>
    %210 = arith.mulf %209, %197 : vector<128x32xf32>
    %cst_46 = arith.constant 2.500000e-01 : f32
    %211 = vector.broadcast %cst_46 : f32 to vector<128x32xf32>
    %212 = arith.mulf %211, %203 : vector<128x32xf32>
    %213 = arith.addf %210, %212 : vector<128x32xf32>
    %214 = tpu.concatenate %208, %213 in 1 : vector<128x32xf32>, vector<128x32xf32> -> vector<128x64xf32>
    %215 = vector.shape_cast %214 : vector<128x64xf32> to vector<16x8x64xf32>
    %216 = vector.extract_strided_slice %215 {offsets = [0, 0, 0], sizes = [16, 1, 64], strides = [1, 1, 1]} : vector<16x8x64xf32> to vector<16x1x64xf32>
    %217 = vector.shape_cast %216 : vector<16x1x64xf32> to vector<16x64xf32>
    %c0_47 = arith.constant 0 : index
    %c0_48 = arith.constant 0 : index
    %c0_49 = arith.constant 0 : index
    %c0_50 = arith.constant 0 : index
    %218 = vector.load %arg13[%c0_47, %c0_48, %c0_49, %c0_50] : memref<1x8x16x64xf32, #tpu.memory_space<vmem>>, vector<1x1x16x64xf32>
    %219 = vector.shape_cast %218 : vector<1x1x16x64xf32> to vector<16x64xf32>
    %220 = vector.shape_cast %217 : vector<16x64xf32> to vector<1x1x16x64xf32>
    tpu.vector_store %arg13[%c0_47, %c0_48, %c0_49, %c0_50], %220 {strides = array<i32>} : memref<1x8x16x64xf32, #tpu.memory_space<vmem>>, vector<1x1x16x64xf32>,
    %221 = vector.extract_strided_slice %215 {offsets = [0, 1, 0], sizes = [16, 1, 64], strides = [1, 1, 1]} : vector<16x8x64xf32> to vector<16x1x64xf32>
    %222 = vector.shape_cast %221 : vector<16x1x64xf32> to vector<16x64xf32>
    %c0_51 = arith.constant 0 : index
    %c1 = arith.constant 1 : index
    %c0_52 = arith.constant 0 : index
    %c0_53 = arith.constant 0 : index
    %223 = vector.load %arg13[%c0_51, %c1, %c0_52, %c0_53] : memref<1x8x16x64xf32, #tpu.memory_space<vmem>>, vector<1x1x16x64xf32>
    %224 = vector.shape_cast %223 : vector<1x1x16x64xf32> to vector<16x64xf32>
    %225 = vector.shape_cast %222 : vector<16x64xf32> to vector<1x1x16x64xf32>
    tpu.vector_store %arg13[%c0_51, %c1, %c0_52, %c0_53], %225 {strides = array<i32>} : memref<1x8x16x64xf32, #tpu.memory_space<vmem>>, vector<1x1x16x64xf32>,
    %226 = vector.extract_strided_slice %215 {offsets = [0, 2, 0], sizes = [16, 1, 64], strides = [1, 1, 1]} : vector<16x8x64xf32> to vector<16x1x64xf32>
    %227 = vector.shape_cast %226 : vector<16x1x64xf32> to vector<16x64xf32>
    %c0_54 = arith.constant 0 : index
    %c2 = arith.constant 2 : index
    %c0_55 = arith.constant 0 : index
    %c0_56 = arith.constant 0 : index
    %228 = vector.load %arg13[%c0_54, %c2, %c0_55, %c0_56] : memref<1x8x16x64xf32, #tpu.memory_space<vmem>>, vector<1x1x16x64xf32>
    %229 = vector.shape_cast %228 : vector<1x1x16x64xf32> to vector<16x64xf32>
    %230 = vector.shape_cast %227 : vector<16x64xf32> to vector<1x1x16x64xf32>
    tpu.vector_store %arg13[%c0_54, %c2, %c0_55, %c0_56], %230 {strides = array<i32>} : memref<1x8x16x64xf32, #tpu.memory_space<vmem>>, vector<1x1x16x64xf32>,
    %231 = vector.extract_strided_slice %215 {offsets = [0, 3, 0], sizes = [16, 1, 64], strides = [1, 1, 1]} : vector<16x8x64xf32> to vector<16x1x64xf32>
    %232 = vector.shape_cast %231 : vector<16x1x64xf32> to vector<16x64xf32>
    %c0_57 = arith.constant 0 : index
    %c3 = arith.constant 3 : index
    %c0_58 = arith.constant 0 : index
    %c0_59 = arith.constant 0 : index
    %233 = vector.load %arg13[%c0_57, %c3, %c0_58, %c0_59] : memref<1x8x16x64xf32, #tpu.memory_space<vmem>>, vector<1x1x16x64xf32>
    %234 = vector.shape_cast %233 : vector<1x1x16x64xf32> to vector<16x64xf32>
    %235 = vector.shape_cast %232 : vector<16x64xf32> to vector<1x1x16x64xf32>
    tpu.vector_store %arg13[%c0_57, %c3, %c0_58, %c0_59], %235 {strides = array<i32>} : memref<1x8x16x64xf32, #tpu.memory_space<vmem>>, vector<1x1x16x64xf32>,
    %236 = vector.extract_strided_slice %215 {offsets = [0, 4, 0], sizes = [16, 1, 64], strides = [1, 1, 1]} : vector<16x8x64xf32> to vector<16x1x64xf32>
    %237 = vector.shape_cast %236 : vector<16x1x64xf32> to vector<16x64xf32>
    %c0_60 = arith.constant 0 : index
    %c4 = arith.constant 4 : index
    %c0_61 = arith.constant 0 : index
    %c0_62 = arith.constant 0 : index
    %238 = vector.load %arg13[%c0_60, %c4, %c0_61, %c0_62] : memref<1x8x16x64xf32, #tpu.memory_space<vmem>>, vector<1x1x16x64xf32>
    %239 = vector.shape_cast %238 : vector<1x1x16x64xf32> to vector<16x64xf32>
    %240 = vector.shape_cast %237 : vector<16x64xf32> to vector<1x1x16x64xf32>
    tpu.vector_store %arg13[%c0_60, %c4, %c0_61, %c0_62], %240 {strides = array<i32>} : memref<1x8x16x64xf32, #tpu.memory_space<vmem>>, vector<1x1x16x64xf32>,
    %241 = vector.extract_strided_slice %215 {offsets = [0, 5, 0], sizes = [16, 1, 64], strides = [1, 1, 1]} : vector<16x8x64xf32> to vector<16x1x64xf32>
    %242 = vector.shape_cast %241 : vector<16x1x64xf32> to vector<16x64xf32>
    %c0_63 = arith.constant 0 : index
    %c5 = arith.constant 5 : index
    %c0_64 = arith.constant 0 : index
    %c0_65 = arith.constant 0 : index
    %243 = vector.load %arg13[%c0_63, %c5, %c0_64, %c0_65] : memref<1x8x16x64xf32, #tpu.memory_space<vmem>>, vector<1x1x16x64xf32>
    %244 = vector.shape_cast %243 : vector<1x1x16x64xf32> to vector<16x64xf32>
    %245 = vector.shape_cast %242 : vector<16x64xf32> to vector<1x1x16x64xf32>
    tpu.vector_store %arg13[%c0_63, %c5, %c0_64, %c0_65], %245 {strides = array<i32>} : memref<1x8x16x64xf32, #tpu.memory_space<vmem>>, vector<1x1x16x64xf32>,
    %246 = vector.extract_strided_slice %215 {offsets = [0, 6, 0], sizes = [16, 1, 64], strides = [1, 1, 1]} : vector<16x8x64xf32> to vector<16x1x64xf32>
    %247 = vector.shape_cast %246 : vector<16x1x64xf32> to vector<16x64xf32>
    %c0_66 = arith.constant 0 : index
    %c6 = arith.constant 6 : index
    %c0_67 = arith.constant 0 : index
    %c0_68 = arith.constant 0 : index
    %248 = vector.load %arg13[%c0_66, %c6, %c0_67, %c0_68] : memref<1x8x16x64xf32, #tpu.memory_space<vmem>>, vector<1x1x16x64xf32>
    %249 = vector.shape_cast %248 : vector<1x1x16x64xf32> to vector<16x64xf32>
    %250 = vector.shape_cast %247 : vector<16x64xf32> to vector<1x1x16x64xf32>
    tpu.vector_store %arg13[%c0_66, %c6, %c0_67, %c0_68], %250 {strides = array<i32>} : memref<1x8x16x64xf32, #tpu.memory_space<vmem>>, vector<1x1x16x64xf32>,
    %251 = vector.extract_strided_slice %215 {offsets = [0, 7, 0], sizes = [16, 1, 64], strides = [1, 1, 1]} : vector<16x8x64xf32> to vector<16x1x64xf32>
    %252 = vector.shape_cast %251 : vector<16x1x64xf32> to vector<16x64xf32>
    %c0_69 = arith.constant 0 : index
    %c7 = arith.constant 7 : index
    %c0_70 = arith.constant 0 : index
    %c0_71 = arith.constant 0 : index
    %253 = vector.load %arg13[%c0_69, %c7, %c0_70, %c0_71] : memref<1x8x16x64xf32, #tpu.memory_space<vmem>>, vector<1x1x16x64xf32>
    %254 = vector.shape_cast %253 : vector<1x1x16x64xf32> to vector<16x64xf32>
    %255 = vector.shape_cast %252 : vector<16x64xf32> to vector<1x1x16x64xf32>
    tpu.vector_store %arg13[%c0_69, %c7, %c0_70, %c0_71], %255 {strides = array<i32>} : memref<1x8x16x64xf32, #tpu.memory_space<vmem>>, vector<1x1x16x64xf32>,
    return
  }
  func.func @transform_0(%arg0: i32) -> (i32, i32, i32, i32) {
    %c0_i32 = arith.constant 0 : i32
    %c0_i32_0 = arith.constant 0 : i32
    %c0_i32_1 = arith.constant 0 : i32
    %c0_i32_2 = arith.constant 0 : i32
    return %arg0, %c0_i32, %c0_i32_0, %c0_i32_1 : i32, i32, i32, i32
  }
  func.func @transform_1(%arg0: i32) -> (i32, i32, i32, i32) {
    %c0_i32 = arith.constant 0 : i32
    %c0_i32_0 = arith.constant 0 : i32
    %c0_i32_1 = arith.constant 0 : i32
    %c0_i32_2 = arith.constant 0 : i32
    return %arg0, %c0_i32, %c0_i32_0, %c0_i32_1 : i32, i32, i32, i32
  }
  func.func @transform_2(%arg0: i32) -> (i32, i32) {
    %c0_i32 = arith.constant 0 : i32
    %c0_i32_0 = arith.constant 0 : i32
    %c0_i32_1 = arith.constant 0 : i32
    return %c0_i32, %c0_i32_0 : i32, i32
  }
  func.func @transform_3(%arg0: i32) -> (i32, i32) {
    %c0_i32 = arith.constant 0 : i32
    %c0_i32_0 = arith.constant 0 : i32
    %c0_i32_1 = arith.constant 0 : i32
    return %c0_i32, %c0_i32_0 : i32, i32
  }
  func.func @transform_4(%arg0: i32) -> (i32, i32) {
    %c0_i32 = arith.constant 0 : i32
    %c0_i32_0 = arith.constant 0 : i32
    %c0_i32_1 = arith.constant 0 : i32
    return %c0_i32, %c0_i32_0 : i32, i32
  }
  func.func @transform_5(%arg0: i32) -> (i32, i32) {
    %c0_i32 = arith.constant 0 : i32
    %c0_i32_0 = arith.constant 0 : i32
    %c0_i32_1 = arith.constant 0 : i32
    return %c0_i32, %c0_i32_0 : i32, i32
  }
  func.func @transform_6(%arg0: i32) -> (i32, i32) {
    %c0_i32 = arith.constant 0 : i32
    %c0_i32_0 = arith.constant 0 : i32
    %c0_i32_1 = arith.constant 0 : i32
    return %c0_i32, %c0_i32_0 : i32, i32
  }
  func.func @transform_7(%arg0: i32) -> (i32, i32) {
    %c0_i32 = arith.constant 0 : i32
    %c0_i32_0 = arith.constant 0 : i32
    %c0_i32_1 = arith.constant 0 : i32
    return %c0_i32, %c0_i32_0 : i32, i32
  }
  func.func @transform_8(%arg0: i32) -> (i32, i32) {
    %c0_i32 = arith.constant 0 : i32
    %c0_i32_0 = arith.constant 0 : i32
    %c0_i32_1 = arith.constant 0 : i32
    return %c0_i32, %c0_i32_0 : i32, i32
  }
  func.func @transform_9(%arg0: i32) -> (i32, i32) {
    %c0_i32 = arith.constant 0 : i32
    %c0_i32_0 = arith.constant 0 : i32
    %c0_i32_1 = arith.constant 0 : i32
    return %c0_i32, %c0_i32_0 : i32, i32
  }
  func.func @transform_10(%arg0: i32) -> (i32, i32) {
    %c0_i32 = arith.constant 0 : i32
    %c0_i32_0 = arith.constant 0 : i32
    %c0_i32_1 = arith.constant 0 : i32
    return %c0_i32, %c0_i32_0 : i32, i32
  }
  func.func @transform_11(%arg0: i32) -> (i32, i32) {
    %c0_i32 = arith.constant 0 : i32
    %c0_i32_0 = arith.constant 0 : i32
    %c0_i32_1 = arith.constant 0 : i32
    return %c0_i32, %c0_i32_0 : i32, i32
  }
  func.func @transform_12(%arg0: i32) -> (i32, i32, i32, i32) {
    %c0_i32 = arith.constant 0 : i32
    %c0_i32_0 = arith.constant 0 : i32
    %c0_i32_1 = arith.constant 0 : i32
    %c0_i32_2 = arith.constant 0 : i32
    return %arg0, %c0_i32, %c0_i32_0, %c0_i32_1 : i32, i32, i32, i32
  }
}

</mosaic_0001>

<bundles_post_ra>
// kernel: up_forward.1
= control target key start
LH: loop header
LB: loop body
LE: loop exit
PB: predicated region body
PF: predicated region fallthrough
CT: control target
= control target key end

     0   :  { %s2827_s21 = smov 0   ;;  %s3909_s0 = inlined_call_operand.vmem [shape: f32[2,4,16,16], index: 0, kind: input, shape index: {}]   ;;  %s3910_s1 = inlined_call_operand.vmem [shape: f32[2,4,14,14], index: 1, kind: input, shape index: {}]   ;;  %s3911_s2 = inlined_call_operand.vmem [shape: bf16[16,36], index: 2, kind: input, shape index: {}]   ;;  %s3912_s3 = inlined_call_operand.vmem [shape: f32[16,1], index: 3, kind: input, shape index: {}]   ;;  %s3913_s4 = inlined_call_operand.vmem [shape: bf16[8,144], index: 4, kind: input, shape index: {}]   ;;  %s3914_s5 = inlined_call_operand.vmem [shape: f32[8,1], index: 5, kind: input, shape index: {}]   ;;  %s3915_s6 = inlined_call_operand.vmem [shape: bf16[4,72], index: 6, kind: input, shape index: {}]   ;;  %s3916_s7 = inlined_call_operand.vmem [shape: f32[4,1], index: 7, kind: input, shape index: {}]   ;;  %s3917_s8 = inlined_call_operand.vmem [shape: bf16[4,36], index: 8, kind: input, shape index: {}]   ;;  %s3918_s9 = inlined_call_operand.vmem [shape: f32[4,1], index: 9, kind: input, shape index: {}]   ;;  %s3919_s10 = inlined_call_operand.vmem [shape: f32[1,288], index: 10, kind: input, shape index: {}]   ;;  %s3920_s11 = inlined_call_operand.vmem [shape: bf16[16,32], index: 11, kind: input, shape index: {}]   ;;  %s3921_s12 = inlined_call_operand.vmem [shape: f32[2,8,16,64], index: 12, kind: output, shape index: {}]  }
   0x1 LB: > { %s2531_s22 = sadd.s32 4294967295, %s2725_s21   ;;  %p2535_p0 = scmp.ge.s32.totalorder %s2725_s21, 1  ;;  %s2725_s21 = sphi %s2827_s21, %s22_s21  }
   0x2   : > { %p372_p1 = scmp.lt.s32.totalorder %s2725_s21, 3 }
   0x4   : > { %p373_p2 = pnand %p2535_p0, %p372_p1 }
   0x5   : > { %p419_p3 = scmp.lt.s32.totalorder (!%p373_p2), %s2531_s22, 1  ;;  %vm3923_vm0 = vcmask (!%p373_p2), 1046534   ;;  %vm3922_vm1 = vcmask (!%p373_p2), 1047559   ;;  %vm3926_vm2 = vcmask (!%p373_p2), 1041409   ;;  %vm3925_vm3 = vcmask (!%p373_p2), 1042434   ;;  %s2727_s27 = smov (!%p373_p2), 18  }
   0x6   : > { %376 = sbr.rel (%p373_p2) target bundleno = 2834 (0xb12), region = 68  ;;  %vm3924_vm4 = vcmask (!%p373_p2), 1043459   ;;  %s2728_s28 = smov (!%p373_p2), 54   ;;  %vm3927_vm5 = vcmask (!%p373_p2), 130048   ;;  %vm508_vm6 = vcmask (!%p373_p2), 138240   ;;  %vm510_vm7 = vcmask (!%p373_p2), 146432  }
   0x7   : > { %s2729_s29 = smov (!%p373_p2), 36   ;;  %s2730_s30 = smov (!%p373_p2), 2   ;;  %vm591_vm8 = vcmask (!%p373_p2), 277504   ;;  %vm515_vm9 = vcmask (!%p373_p2), 285696   ;;  %vm3932_vm10 = vcmask (!%p373_p2), 293888   ;;  %vm596_vm11 = vcmask (!%p373_p2), 424960  }
   0x8   : > { %s2731_s13 = smov (!%p373_p2), 20   ;;  %s2732_s14 = smov (!%p373_p2), 72   ;;  %vm649_vm12 = vcmask (!%p373_p2), 15360   ;;  %vm3928_vm13 = vcmask (!%p373_p2), 433152   ;;  %vm512_vm14 = vcmask (!%p373_p2), 154624   ;;  %vm524_vm15 = vcmask (!%p373_p2), 441344  }
   0x9   : > { %s2733_s15 = smov (!%p373_p2), 38   ;;  %s2734_s16 = smov (!%p373_p2), 90  }
   0xa   : > { %s2735_s17 = smov (!%p373_p2), 56   ;;  %s2736_s18 = smov (!%p373_p2), 74  }
   0xb   : > { %s2737_s19 = smov (!%p373_p2), 1   ;;  %s2738_s20 = smov (!%p373_p2), 19  }
   0xc   : > { %s3929_s24 = smov (!%p373_p2), 37   ;;  %s3930_s25 = smov (!%p373_p2), 55  }
   0xd   : > { %s4091_s22 = smov (!%p419_p3, %s2531_s22), 1 }
   0xe   : > { %s2590_s23 = sshll.u32 %s4091_s22, 6 }
   0xf   : > { %s423_s26 = scalar_lea.vmem %s3909_s0, %s2590_s23 }
  0x10   : > { %v435_v0 = vld [vmem:[%s423_s26] sm:$0xff]  ;;  %v436_v1 = vld [vmem:[%s423_s26 + $0x8] sm:$0xff]  ;;  %v437_v2 = vld [vmem:[%s423_s26 + $0x10] sm:$0xff] }
  0x11   : > { %v438_v3 = vld [vmem:[%s423_s26 + $0x18] sm:$0xff]  ;;  %v439_v4 = vld [vmem:[%s423_s26 + $0x20] sm:$0xff]  ;;  %v440_v5 = vld [vmem:[%s423_s26 + $0x28] sm:$0xff]  ;;  %v443_v6 = vpack.c.bf16 %v436_v1, %v435_v0 }
  0x12   : > { %v441_v7 = vld [vmem:[%s423_s26 + $0x30] sm:$0xff]  ;;  %v442_v8 = vld [vmem:[%s423_s26 + $0x38] sm:$0xff]  ;;  %v444_v9 = vpack.c.bf16 %v438_v3, %v437_v2  ;;  %v445_v10 = vpack.c.bf16 %v440_v5, %v439_v4  ;;  %s2741_s26 = smov 73  }
  0x13   : > { %v446_v11 = vpack.c.bf16 %v442_v8, %v441_v7  ;;  %v2843_v12 = vunpack.c.l.b16 %v443_v6  ;;  %v2845_v13 = vunpack.c.h.b16 %v443_v6 }
  0x14   : > { %v2847_v14 = vunpack.c.l.b16 %v444_v9  ;;  %v2849_v15 = vunpack.c.l.b16 %v445_v10  ;;  %v2851_v16 = vunpack.c.h.b16 %v444_v9  ;;  %v2853_v17 = vunpack.c.h.b16 %v445_v10 }
  0x15   : > { %v2855_v18 = vunpack.c.l.b16 %v446_v11  ;;  %v467_v19 = vrot.slane %v2843_v12, 1  ;;  %v2858_v20 = vunpack.c.h.b16 %v446_v11  ;;  %v559_v21 = vrot.slane %v2845_v13, 3 }
  0x16   : > { %v469_v22 = vrot.slane %v2849_v15, 7  ;;  %v560_v23 = vrot.slane %v2851_v16, 2  ;;  %v562_v24 = vrot.slane %v2853_v17, 1  ;;  %v476_v25 = vrot.slane %v2843_v12, 2 }
  0x17   : > { %v471_v26 = vrot.slane %v2855_v18, 6  ;;  %v545_v27 = vsel %vm3923_vm0, %v2847_v14, %v467_v19  ;;  %v477_v28 = vrot.slane %v2847_v14, 1  ;;  %v480_v29 = vrot.slane %v2855_v18, 7 }
  0x18   : > { %v546_v30 = vsel %vm3922_vm1, %v469_v22, %v545_v27  ;;  %v561_v31 = vsel %vm3923_vm0, %v560_v23, %v559_v21  ;;  %v611_v32 = vsel %vm3926_vm2, %v560_v23, %v559_v21  ;;  %v567_v33 = vrot.slane %v2845_v13, 4 }
  0x19   : > { %v547_v34 = vpack.c.b16 %v471_v26, %v546_v30  ;;  %v563_v35 = vsel %vm3922_vm1, %v562_v24, %v561_v31  ;;  %v550_v36 = vsel %vm3923_vm0, %v477_v28, %v476_v25  ;;  %v612_v37 = vsel %vm3925_vm3, %v562_v24, %v611_v32 }
  0x1a   : > { %v564_v38 = vpack.c.b16 %v2858_v20, %v563_v35  ;;  %v551_v39 = vsel %vm3922_vm1, %v2849_v15, %v550_v36  ;;  %v613_v40 = vsel %vm3924_vm4, %v2858_v20, %v612_v37  ;;  %v568_v41 = vrot.slane %v2851_v16, 3 }
  0x1b   : > { %548 = vrot.lane.b32.xlu0 %v547_v34, %s2727_s27  ;;  %v552_v42 = vpack.c.b16 %v480_v29, %v551_v39  ;;  %v614_v43 = vpack.c.b16 %v613_v40, %v613_v40  ;;  %v570_v44 = vrot.slane %v2853_v17, 2  ;;  %v572_v45 = vrot.slane %v2858_v20, 1  ;;  %s2742_s27 = smov 91  }
  0x1c   : > { %565 = vrot.lane.b32.xlu1 %v564_v38, %s2728_s28  ;;  %v617_v46 = vsel %vm3926_vm2, %v568_v41, %v567_v33  ;;  %v569_v47 = vsel %vm3923_vm0, %v568_v41, %v567_v33  ;;  %v576_v48 = vrot.slane %v2845_v13, 5  ;;  %v577_v49 = vrot.slane %v2851_v16, 4  ;;  %s2743_s28 = smov 69  }
  0x1d   : > { %v618_v50 = vsel %vm3925_vm3, %v570_v44, %v617_v46  ;;  %v571_v51 = vsel %vm3922_vm1, %v570_v44, %v569_v47  ;;  %v579_v52 = vrot.slane %v2853_v17, 3  ;;  %v581_v53 = vrot.slane %v2858_v20, 2 }
  0x1e   : > { %v619_v54 = vsel %vm3924_vm4, %v572_v45, %v618_v50  ;;  %v623_v55 = vsel %vm3926_vm2, %v577_v49, %v576_v48  ;;  %v578_v56 = vsel %vm3923_vm0, %v577_v49, %v576_v48  ;;  %v573_v58 = vpack.c.b16 %v572_v45, %v571_v51 }
  0x1f   : > { %553 = vrot.lane.b32.xlu0 %v552_v42, %s2729_s29  ;;  %v620_v57 = vpack.c.b16 %v619_v54, %v619_v54  ;;  %v624_v59 = vsel %vm3925_vm3, %v579_v52, %v623_v55  ;;  %v629_v60 = vrot.slane %v2845_v13, 6  ;;  %v580_v62 = vsel %vm3922_vm1, %v579_v52, %v578_v56  ;;  %s2744_s29 = smov 109  }
  0x20   : > { %615 = vrot.lane.b32.xlu1 %v614_v43, %s2730_s30  ;;  %v625_v61 = vsel %vm3924_vm4, %v581_v53, %v624_v59  ;;  %v630_v63 = vrot.slane %v2851_v16, 5  ;;  %v632_v0 = vrot.slane %v2853_v17, 4  ;;  %v634_v2 = vrot.slane %v2858_v20, 3  ;;  %s2745_s30 = smov 127  }
  0x21   : > { %v626_v1 = vpack.c.b16 %v625_v61, %v625_v61  ;;  %v639_v3 = vrot.slane %v2845_v13, 7  ;;  %v640_v4 = vrot.slane %v2851_v16, 6  ;;  %v642_v6 = vrot.slane %v2853_v17, 5 }
  0x22   : > { %v631_v5 = vsel %vm3926_vm2, %v630_v63, %v629_v60  ;;  %v644_v7 = vrot.slane %v2858_v20, 4  ;;  %v455_v8 = vrot.slane %v2847_v14, 7  ;;  %v458_v11 = vrot.slane %v2849_v15, 6 }
  0x23   : > { %621 = vrot.lane.b32.xlu0 %v620_v57, %s2731_s13  ;;  %v633_v9 = vsel %vm3925_vm3, %v632_v0, %v631_v5  ;;  %v641_v10 = vsel %vm3926_vm2, %v640_v4, %v639_v3  ;;  %v461_v13 = vrot.slane %v2855_v18, 5  ;;  %v582_v16 = vpack.c.b16 %v581_v53, %v580_v62  ;;  %s2746_s13 = smov 126  }
  0x24   : > { %574 = vrot.lane.b32.xlu1 %v573_v58, %s2732_s14  ;;  %v635_v21 = vsel %vm3924_vm4, %v634_v2, %v633_v9  ;;  %v643_v17 = vsel %vm3925_vm3, %v642_v6, %v641_v10  ;;  %v541_v20 = vsel %vm3923_vm0, %v455_v8, %v2843_v12  ;;  %v457_v27 = vsel %vm3926_vm2, %v455_v8, %v2843_v12  ;;  %s2747_s14 = smov 110  }
  0x25   : > { %v645_v23 = vsel %vm3924_vm4, %v644_v7, %v643_v17  ;;  %v543_v24 = vsel %vm3922_vm1, %v458_v11, %v541_v20  ;;  %v460_v31 = vsel %vm3925_vm3, %v458_v11, %v457_v27  ;;  %v636_v32 = vpack.c.b16 %v635_v21, %v635_v21 }
  0x26   : > { %v544_v30 = vpack.c.b16 %v461_v13, %v543_v24  ;;  %v646_v33 = vpack.c.b16 %v645_v23, %v645_v23  ;;  %v463_v34 = vsel %vm3924_vm4, %v461_v13, %v460_v31  ;;  %v468_v35 = vsel %vm3926_vm2, %v2847_v14, %v467_v19 }
  0x27   : > { %627 = vrot.lane.b32.xlu0 %v626_v1, %s2733_s15  ;;  %v470_v36 = vsel %vm3925_vm3, %v469_v22, %v468_v35  ;;  %v478_v37 = vsel %vm3926_vm2, %v477_v28, %v476_v25  ;;  %v464_v38 = vpack.c.b16 %v463_v34, %v463_v34  ;;  %v485_v40 = vrot.slane %v2843_v12, 3  ;;  %s2748_s15 = smov 108  }
  0x28   : > { %583 = vrot.lane.b32.xlu1 %v582_v16, %s2734_s16  ;;  %v472_v39 = vsel %vm3924_vm4, %v471_v26, %v470_v36  ;;  %v479_v19 = vsel %vm3925_vm3, %v2849_v15, %v478_v37  ;;  %v486_v25 = vrot.slane %v2847_v14, 2  ;;  %v488_v28 = vrot.slane %v2849_v15, 1 }
  0x29   : > { %v473_v22 = vpack.c.b16 %v472_v39, %v472_v39  ;;  %v481_v41 = vsel %vm3924_vm4, %v480_v29, %v479_v19  ;;  %v494_v42 = vrot.slane %v2843_v12, 4  ;;  %v495_v43 = vrot.slane %v2847_v14, 3 }
  0x2a   : > { %v487_v26 = vsel %vm3926_vm2, %v486_v25, %v485_v40  ;;  %v497_v44 = vrot.slane %v2849_v15, 2  ;;  %v499_v45 = vrot.slane %v2855_v18, 1  ;;  %v482_v46 = vpack.c.b16 %v481_v41, %v481_v41 }
  0x2b   : > { %637 = vrot.lane.b32.xlu0 %v636_v32, %s2735_s17  ;;  %v489_v29 = vsel %vm3925_vm3, %v488_v28, %v487_v26  ;;  %v496_v47 = vsel %vm3926_vm2, %v495_v43, %v494_v42  ;;  %vm654_vm1 = vcmask 162816   ;;  %vm601_vm0 = vcmask 572416   ;;  %s2750_s17 = smov 92  }
  0x2c   : > { %647 = vrot.lane.b32.xlu1 %v646_v33, %s2736_s18  ;;  %v490_v12 = vsel %vm3924_vm4, %v2855_v18, %v489_v29  ;;  %v498_v14 = vsel %vm3925_vm3, %v497_v44, %v496_v47  ;;  %v587_v18 = vsel %vm3927_vm5, %v544_v30, 0  ;;  %vm531_vm3 = vcmask 588800  }
  0x2d   : > { %v491_v48 = vpack.c.b16 %v490_v12, %v490_v12  ;;  %v500_v15 = vsel %vm3924_vm4, %v499_v45, %v498_v14  ;;  %v588_v50 = vsel %vm508_vm6, %v587_v18, 0  ;;  %vm519_vm4 = vcmask 302080  }
  0x2e   : > { %v501_v49 = vpack.c.b16 %v500_v15, %v500_v15  ;;  %vm606_vm2 = vcmask 719872   ;;  %vm3934_vm5 = vcmask 736256  }
  0x2f   : > { %465 = vrot.lane.b32.xlu0 %v464_v38, %s2737_s19 }
  0x30   : > { %474 = vrot.lane.b32.xlu1 %v473_v22, %s2738_s20 }
  0x33   : > { %483 = vrot.lane.b32.xlu0 %v482_v46, %s3929_s24  ;;  %s2754_s24 = smov 111  }
  0x34   : > { %492 = vrot.lane.b32.xlu1 %v491_v48, %s3930_s25  ;;  %s428_s25 = scalar_lea.vmem %s3910_s1, %s2590_s23 }
  0x37   : > { %502 = vrot.lane.b32.xlu0 %v501_v49, %s2741_s26 }
  0x8d   : > { %v549_v51 = vpop.permute.xlu0 %548 }
  0x8e   : > { %v590_v52 = vsel %vm510_vm7, %v588_v50, %v549_v51  ;;  %v566_v53 = vpop.permute.xlu1 %565 }
  0x8f   : > { %v592_v54 = vsel %vm591_vm8, %v590_v52, 0  ;;  %vm529_vm8 = vcmask 580608  }
  0x90   : > { %v593_v55 = vsel %vm515_vm9, %v592_v54, 0 }
  0x91   : > { %v554_v56 = vpop.permute.xlu0 %553 }
  0x92   : > { %v595_v57 = vsel %vm3932_vm10, %v593_v55, %v554_v56  ;;  %v616_v58 = vpop.permute.xlu1 %615 }
  0x93   : > { %v597_v59 = vsel %vm596_vm11, %v595_v57, 0  ;;  %v651_v60 = vsel %vm649_vm12, 0, %v616_v58  ;;  %vm536_vm11 = vcmask 728064   ;;  %vm659_vm12 = vcmask 310272  }
  0x94   : > { %v598_v61 = vsel %vm3928_vm13, %v597_v59, 0  ;;  %v652_v62 = vsel %vm510_vm7, %v651_v60, 0  ;;  %vm526_vm13 = vcmask 449536  }
  0x95   : > { %v653_v63 = vsel %vm512_vm14, %v652_v62, 0  ;;  %v622_v0 = vpop.permute.xlu0 %621  ;;  %v600_v1 = vsel %vm524_vm15, %v598_v61, %v566_v53 }
  0x96   : > { %v656_v2 = vsel %vm654_vm1, %v653_v63, %v622_v0  ;;  %v575_v3 = vpop.permute.xlu1 %574  ;;  %v602_v4 = vsel %vm601_vm0, %v600_v1, 0  ;;  %vm664_vm0 = vcmask 457728   ;;  %vm533_vm1 = vcmask 596992  }
  0x97   : > { %v657_v5 = vsel %vm3932_vm10, %v656_v2, 0  ;;  %v603_v6 = vsel %vm529_vm8, %v602_v4, 0  ;;  %v2749_v2 = vmov 0.0  }
  0x98   : > { %v658_v7 = vsel %vm519_vm4, %v657_v5, 0  ;;  %v605_v8 = vsel %vm531_vm3, %v603_v6, %v575_v3  ;;  %2616 = vmatprep.subr.bf16.mxu1 %v2749_v2  ;;  %v2751_v6 = vmov 0  }
  0x99   : > { %v607_v9 = vsel %vm606_vm2, %v605_v8, 0  ;;  %v628_v10 = vpop.permute.xlu0 %627  ;;  %vm669_vm2 = vcmask 605184   ;;  %903 = vmatprep.mubr.bf16.mxu0 %v2751_v6  ;;  %2713 = vset.pattern.permute.xlu0 %v2751_v6  ;;  %v843_v8 = vld [vmem:[%s3912_s3 + $0x8] sm:$0xff] }
  0x9a   : > { %v608_v11 = vsel %vm536_vm11, %v607_v9, 0  ;;  %v661_v13 = vsel %vm659_vm12, %v658_v7, %v628_v10  ;;  %v584_v16 = vpop.permute.xlu1 %583  ;;  %vm3931_vm12 = vcmask 7168   ;;  %2714 = vset.pattern.permute.xlu1 %v2751_v6  ;;  %v842_v7 = vld [vmem:[%s3912_s3] sm:$0xff] }
  0x9b   : > { %v662_v21 = vsel %vm524_vm15, %v661_v13, 0  ;;  %v610_v17 = vsel %vm3934_vm5, %v608_v11, %v584_v16 }
  0x9c   : > { %v663_v20 = vsel %vm526_vm13, %v662_v21, 0  ;;  %v673_v23 = vshrl.u32 %v610_v17, 16  ;;  %v676_v24 = vshll.u32 %v610_v17, 16 }
  0x9d   : > { %v638_v27 = vpop.permute.xlu0 %637 }
  0x9e   : > { %v675_v30 = vrot.slane %v673_v23, 2  ;;  %v678_v31 = vrot.slane %v676_v24, 3  ;;  %v666_v32 = vsel %vm664_vm0, %v663_v20, %v638_v27  ;;  %v648_v33 = vpop.permute.xlu1 %647  ;;  %vm3936_vm0 = vcmask 433152  }
  0x9f   : > { %v667_v34 = vsel %vm531_vm3, %v666_v32, 0 }
  0xa0   : > { %v668_v35 = vsel %vm533_vm1, %v667_v34, 0  ;;  %v679_v36 = vor.u32 %v678_v31, %v675_v30 }
  0xa1   : > { %v671_v37 = vsel %vm669_vm2, %v668_v35, %v648_v33  ;;  %v466_v38 = vpop.permute.xlu0 %465  ;;  %vm752_vm2 = vcmask 891904  }
  0xa2   : > { %680 = vrot.lane.b32.xlu1 %v679_v36, %s2742_s27  ;;  %v672_v39 = vsel %vm3934_vm5, %v671_v37, 0  ;;  %v507_v19 = vsel %vm3931_vm12, 0, %v466_v38  ;;  %v475_v40 = vpop.permute.xlu1 %474  ;;  %vm770_vm12 = vcmask 752640  }
  0xa3   : > { %683 = vrot.lane.b32.xlu0 %v672_v39, %s2743_s28  ;;  %v509_v22 = vsel %vm508_vm6, %v507_v19, 0  ;;  %vm688_vm6 = vcmask 564224   ;;  %s2753_s28 = smov 3  }
  0xa4   : > { %v511_v41 = vsel %vm510_vm7, %v509_v22, 0  ;;  %vm705_vm7 = vcmask 416768  }
  0xa5   : > { %v514_v25 = vsel %vm512_vm14, %v511_v41, %v475_v40  ;;  %v484_v28 = vpop.permute.xlu0 %483 }
  0xa6   : > { %v516_v42 = vsel %vm515_vm9, %v514_v25, 0  ;;  %v493_v44 = vpop.permute.xlu1 %492  ;;  %vm2752_vm9 = vmmov 0  }
  0xa7   : > { %v518_v26 = vsel %vm3932_vm10, %v516_v42, 0  ;;  %2622 = vmatprep.mubr.msk.bf16.mxu1 %vm2752_vm9, %v2749_v2 }
  0xa8   : > { %v521_v43 = vsel %vm519_vm4, %v518_v26, %v484_v28  ;;  %vm3935_vm4 = vcmask 744448  }
  0xa9   : > { %v523_v45 = vsel %vm3936_vm0, %v521_v43, 0  ;;  %v503_v12 = vpop.permute.xlu0 %502  ;;  %vm761_vm0 = vcmask 883712  }
  0xaa   : > { %v525_v46 = vsel %vm524_vm15, %v523_v45, 0  ;;  %vm731_vm15 = vcmask 1031168  }
  0xab   : > { %v528_v29 = vsel %vm526_vm13, %v525_v46, %v493_v44  ;;  %vm719_vm13 = vcmask 1039360  }
  0xac   : > { %v530_v47 = vsel %vm529_vm8, %v528_v29, 0  ;;  %vm791_vm8 = vcmask 1041408  }
  0xad   : > { %v532_v48 = vsel %vm531_vm3, %v530_v47, 0 }
  0xae   : > { %v535_v14 = vsel %vm533_vm1, %v532_v48, %v503_v12  ;;  %vm799_vm1 = vcmask 1043456  }
  0xaf   : > { %v537_v15 = vsel %vm536_vm11, %v535_v14, 0  ;;  %vm743_vm11 = vcmask 900096  }
  0xb0   : > { %v539_v51 = vsel %vm3934_vm5, %v537_v15, 0 }
 0x114   : > { %v681_v49 = vpop.permute.xlu1 %680 }
 0x115   : > { %v684_v18 = vpop.permute.xlu0 %683  ;;  %v687_v52 = vsel %vm3935_vm4, %v539_v51, %v681_v49 }
 0x116   : > { %698 = vrot.lane.b32.xlu0 %v684_v18, %s2738_s20  ;;  %v690_v50 = vsel %vm688_vm6, %v681_v49, %v684_v18  ;;  %vm3933_vm6 = vcmask 1045504  }
 0x117   : > { %696 = vrot.lane.b32.xlu1 %v690_v50, %s2738_s20 }
 0x11b   : > { %694 = vrot.lane.b32.xlu1 %v687_v52, %s2738_s20 }
 0x188   : > { %v699_v53 = vpop.permute.xlu0 %698 }
 0x189   : > { %v697_v54 = vpop.permute.xlu1 %696 }
 0x18a   : > { %v702_v55 = vsel %vm512_vm14, %v697_v54, %v699_v53 }
 0x18b   : > { %v3017_v56 = vsel %vm705_vm7, %v702_v55, 0 }
 0x18c   : > { %750 = vrot.lane.b32.xlu0 %v3017_v56, %s2744_s29  ;;  %v724_v3 = vrot.slane %v3017_v56, 4  ;;  %v712_v4 = vrot.slane %v3017_v56, 6  ;;  %v736_v5 = vrot.slane %v3017_v56, 2 }
 0x18d   : > { %v695_v57 = vpop.permute.xlu1 %694 }
 0x18e   : > { %v3022_v58 = vsel %vm512_vm14, %v695_v57, %v697_v54  ;;  %v3028_v60 = vsel %vm512_vm14, 0, %v695_v57 }
 0x18f   : > { %748 = vrot.lane.b32.xlu1 %v3022_v58, %s2744_s29  ;;  %v711_v59 = vrot.slane %v3022_v58, 6  ;;  %v710_v61 = vrot.slane %v3028_v60, 6  ;;  %v723_v62 = vrot.slane %v3022_v58, 4  ;;  %v735_v63 = vrot.slane %v3022_v58, 2 }
 0x190   : > { %v722_v0 = vrot.slane %v3028_v60, 4  ;;  %v734_v1 = vrot.slane %v3028_v60, 2 }
 0x191   : > { %715 = vrot.lane.b32.xlu0 %v711_v59, %s2745_s30 }
 0x193   : > { %746 = vrot.lane.b32.xlu1 %v3028_v60, %s2744_s29 }
 0x195   : > { %713 = vrot.lane.b32.xlu0 %v710_v61, %s2745_s30 }
 0x197   : > { %727 = vrot.lane.b32.xlu1 %v723_v62, %s2746_s13 }
 0x199   : > { %739 = vrot.lane.b32.xlu0 %v735_v63, %s2747_s14 }
 0x19b   : > { %725 = vrot.lane.b32.xlu1 %v722_v0, %s2746_s13 }
 0x19d   : > { %737 = vrot.lane.b32.xlu0 %v734_v1, %s2747_s14 }
 0x19f   : > { %757 = vrot.lane.b32.xlu1 %v711_v59, %s2748_s15 }
 0x1a1   : > { %755 = vrot.lane.b32.xlu0 %v710_v61, %s2748_s15 }
 0x1a3   : > { %766 = vrot.lane.b32.xlu1 %v723_v62, %s2750_s17 }
 0x1a5   : > { %775 = vrot.lane.b32.xlu0 %v735_v63, %s2742_s27 }
 0x1a7   : > { %764 = vrot.lane.b32.xlu1 %v722_v0, %s2750_s17 }
 0x1a9   : > { %729 = vrot.lane.b32.xlu0 %v724_v3, %s2746_s13 }
 0x1ab   : > { %717 = vrot.lane.b32.xlu1 %v712_v4, %s2745_s30 }
 0x1ad   : > { %759 = vrot.lane.b32.xlu0 %v712_v4, %s2748_s15 }
 0x1af   : > { %741 = vrot.lane.b32.xlu1 %v736_v5, %s2747_s14 }
 0x1b1   : > { %768 = vrot.lane.b32.xlu0 %v724_v3, %s2750_s17 }
 0x1b3   : > { %777 = vrot.lane.b32.xlu1 %v736_v5, %s2742_s27  ;;  %v2715_v5 = vld [vmem:[%s3911_s2] sm:$0xff]  }
 0x1b5   : > { %773 = vrot.lane.b32.xlu0 %v734_v1, %s2742_s27 }
 0x1b7   : > { %782 = vrot.lane.b32.xlu1 %v3028_v60, %s2734_s16 }
 0x1b9   : > { %784 = vrot.lane.b32.xlu0 %v3022_v58, %s2734_s16 }
 0x1bb   : > { %786 = vrot.lane.b32.xlu1 %v3017_v56, %s2734_s16 }
 0x1bd   : > { %846 = vperm.xlu0 %2713, %v842_v7  }
 0x1bf   : > { %851 = vperm.xlu1 %2714, %v843_v8   ;;  %v962_v8 = vlaneseq }
 0x1fe   : > { %v751_v9 = vpop.permute.xlu0 %750 }
 0x201   : > { %v749_v10 = vpop.permute.xlu1 %748 }
 0x202   : > { %v754_v43 = vsel %vm752_vm2, %v749_v10, %v751_v9 }
 0x203   : > { %v716_v11 = vpop.permute.xlu0 %715 }
 0x205   : > { %v747_v13 = vpop.permute.xlu1 %746 }
 0x206   : > { %v753_v53 = vsel %vm752_vm2, %v747_v13, %v749_v10  ;;  %v691_v13 = vld [vmem:[%s3919_s10] sm:$0x7] }
 0x207   : > { %v714_v16 = vpop.permute.xlu0 %713 }
 0x208   : > { %v720_v34 = vsel %vm719_vm13, %v714_v16, %v716_v11 }
 0x209   : > { %v728_v21 = vpop.permute.xlu1 %727  ;;  %v793_v39 = vsel %vm791_vm8, %v3028_v60, %v720_v34 }
 0x20b   : > { %v740_v17 = vpop.permute.xlu0 %739 }
 0x20d   : > { %v726_v20 = vpop.permute.xlu1 %725 }
 0x20e   : > { %v732_v35 = vsel %vm731_vm15, %v726_v20, %v728_v21 }
 0x20f   : > { %v738_v23 = vpop.permute.xlu0 %737  ;;  %v801_v41 = vsel %vm799_vm1, %v793_v39, %v732_v35 }
 0x210   : > { %v744_v22 = vsel %vm743_vm11, %v738_v23, %v740_v17 }
 0x211   : > { %v758_v24 = vpop.permute.xlu1 %757  ;;  %v808_v14 = vsel %vm3933_vm6, %v801_v41, %v744_v22 }
 0x213   : > { %v756_v27 = vpop.permute.xlu0 %755 }
 0x214   : > { %v762_v29 = vsel %vm761_vm0, %v756_v27, %v758_v24 }
 0x215   : > { %v767_v30 = vpop.permute.xlu1 %766 }
 0x217   : > { %v776_v31 = vpop.permute.xlu0 %775 }
 0x219   : > { %v765_v32 = vpop.permute.xlu1 %764 }
 0x21a   : > { %v771_v50 = vsel %vm770_vm12, %v765_v32, %v767_v30 }
 0x21b   : > { %v730_v33 = vpop.permute.xlu0 %729 }
 0x21c   : > { %v733_v25 = vsel %vm731_vm15, %v728_v21, %v730_v33 }
 0x21d   : > { %v718_v36 = vpop.permute.xlu1 %717 }
 0x21e   : > { %v721_v37 = vsel %vm719_vm13, %v716_v11, %v718_v36  ;;  %v798_v38 = vsel %vm791_vm8, %v3017_v56, %v718_v36  ;;  %v818_v56 = vsel %vm791_vm8, %v753_v53, %v762_v29 }
 0x21f   : > { %v760_v19 = vpop.permute.xlu0 %759  ;;  %v796_v40 = vsel %vm791_vm8, %v3022_v58, %v721_v37  ;;  %v805_v26 = vsel %vm799_vm1, %v798_v38, %v730_v33  ;;  %v826_v60 = vsel %vm799_vm1, %v818_v56, %v771_v50 }
 0x220   : > { %v763_v28 = vsel %vm761_vm0, %v758_v24, %v760_v19  ;;  %v803_v46 = vsel %vm799_vm1, %v796_v40, %v733_v25  ;;  %v824_v12 = vsel %vm791_vm8, %v751_v9, %v760_v19  ;;  %v963_v9 = vshrl.u32 %v962_v8, 7 }
 0x221   : > { %v742_v42 = vpop.permute.xlu1 %741  ;;  %v821_v15 = vsel %vm791_vm8, %v754_v43, %v763_v28 }
 0x222   : > { %v814_v44 = vsel %vm3933_vm6, %v805_v26, %v742_v42  ;;  %v745_v45 = vsel %vm743_vm11, %v740_v17, %v742_v42  ;;  %v972_v10 = vsub.s32 2, %v963_v9  ;;  %v964_v16 = vsub.s32 0, %v963_v9 }
 0x223   : > { %v769_v47 = vpop.permute.xlu0 %768  ;;  %2617 = vmatpush3.bf16.msra.mxu1 %v814_v44  ;;  %v811_v48 = vsel %vm3933_vm6, %v803_v46, %v745_v45  ;;  %v968_v21 = vsub.s32 1, %v963_v9 }
 0x224   : > { %v772_v49 = vsel %vm770_vm12, %v767_v30, %v769_v47  ;;  %v830_v18 = vsel %vm799_vm1, %v824_v12, %v769_v47  ;;  %871 = vmatprep.subr.bf16.mxu0 %v811_v48  ;;  %2618 = vmatprep.subr.bf16.mxu1 %v2749_v2  ;;  %v3127_v27 = vrot.slane %v691_v13, %v972_v10 }
 0x225   : > { %872 = vmatpush1.bf16.msra.mxu0 %v808_v14  ;;  %v778_v51 = vpop.permute.xlu1 %777  ;;  %v828_v52 = vsel %vm799_vm1, %v821_v15, %v772_v49  ;;  %v3129_v19 = vrot.slane %v691_v13, %v964_v16  ;;  %v3131_v40 = vrot.slane %v691_v13, %v968_v21 }
 0x226   : > { %v781_v54 = vsel %vm3935_vm4, %v776_v31, %v778_v51  ;;  %v838_v55 = vsel %vm3933_vm6, %v830_v18, %v778_v51 }
 0x227   : > { %v774_v57 = vpop.permute.xlu0 %773  ;;  %2619 = vmatpush3.bf16.msra.mxu1 %v838_v55  ;;  %v835_v58 = vsel %vm3933_vm6, %v828_v52, %v781_v54  ;;  %v3167_v55 = vld [vmem:[%s3913_s4] sm:$0xff] }
 0x228   : > { %v780_v59 = vsel %vm3935_vm4, %v774_v57, %v776_v31  ;;  %873 = vmatprep.subr.bf16.mxu0 %v835_v58  ;;  %2620 = vmatprep.subr.bf16.mxu1 %v2749_v2  ;;  %v2547_v56 = vcombine.high %v3167_v55, %v3167_v55  ;;  %v1095_v57 = vld [vmem:[%s3914_s5] sm:$0xff] }
 0x229   : > { %v783_v61 = vpop.permute.xlu1 %782  ;;  %v832_v62 = vsel %vm3933_vm6, %v826_v60, %v780_v59 }
 0x22a   : > { %874 = vmatpush1.bf16.msra.mxu0 %v832_v62 }
 0x22b   : > { %v785_v63 = vpop.permute.xlu0 %784 }
 0x22c   : > { %v789_v0 = vsel %vm3934_vm5, %v783_v61, %v785_v63 }
 0x22d   : > { %v787_v1 = vpop.permute.xlu1 %786  ;;  %v863_v7 = vsel %vm791_vm8, %v789_v0, 0 }
 0x22e   : > { %v790_v3 = vsel %vm3934_vm5, %v785_v63, %v787_v1  ;;  %v869_v4 = vsel %vm791_vm8, %v787_v1, 0 }
 0x22f   : > { %2543 = vmatprep.subr.msk.bf16.mxu0 %vm791_vm8, %v790_v3  ;;  %2621 = vmatpush3.bf16.msra.mxu1 %v869_v4 }
 0x230   : > { %876 = vmatpush1.bf16.msra.mxu0 %v863_v7  ;;  %1151 = vmatprep.subr.bf16.mxu1 %v2751_v6 }
 0x232   : > { %2623 = vmatmul.mubr.msk.bf16.vlgmr.msra.gmra.mrb[0].mxu1 %vm3932_vm10, %v2715_v5 }
 0x233   : > { %2544 = vmatmul.mubr.msk.bf16.vlgmr.msra.gmra.mrb[0].mxu0 %vm3932_vm10, %v2715_v5  ;;  %vm2548_vm10 = vmneg %vm512_vm14 }
 0x23c   : > { %v847_v11 = vpop.permute.xlu0 %846 }
 0x23e   : > { %v852_v20 = vpop.permute.xlu1 %851 }
 0x305   : > { %v948_v17 = vpop.f32.mrb[0].mxu1 }
 0x306   : > { %v905_v23 = vpop.f32.mrb[0].mxu0  ;;  %v949_v24 = vadd.f32 %v948_v17, %v847_v11  ;;  %v2624_v30 = vpop.f32.mrb[1].mxu1 }
 0x307   : > { %v906_v31 = vadd.f32 %v905_v23, %v847_v11  ;;  %v907_v32 = vpop.f32.mrb[1].mxu0  ;;  %v951_v33 = vpop.f32.mrb[2].mxu1 }
 0x308   : > { %v908_v34 = vadd.f32 %v907_v32, %v847_v11  ;;  %v957_v35 = vmax.f32 %v949_v24, 0.0  ;;  %v909_v36 = vpop.f32.mrb[2].mxu0  ;;  %v952_v37 = vadd.f32 %v951_v33, %v852_v20  ;;  %v2625_v38 = vpop.f32.mrb[3].mxu1 }
 0x309   : > { %v955_v39 = vmax.f32 %v906_v31, 0.0  ;;  %v910_v22 = vadd.f32 %v909_v36, %v852_v20  ;;  %v911_v41 = vpop.f32.mrb[3].mxu0 }
 0x30a   : > { %v956_v25 = vmax.f32 %v908_v34, 0.0  ;;  %v979_v28 = vmul.f32 %v3127_v27, %v957_v35  ;;  %v912_v42 = vadd.f32 %v911_v41, %v852_v20  ;;  %v960_v26 = vmax.f32 %v952_v37, 0.0 }
 0x30b   : > { %v958_v43 = vmax.f32 %v910_v22, 0.0  ;;  %v977_v46 = vmul.f32 %v3129_v19, %v955_v39 }
 0x30c   : > { %v959_v44 = vmax.f32 %v912_v42, 0.0  ;;  %v982_v45 = vmul.f32 %v3127_v27, %v960_v26  ;;  %v978_v12 = vmul.f32 %v3131_v40, %v956_v25  ;;  %v2546_v26 = vcombine.low %v3167_v55, %v3167_v55 }
 0x30d   : > { %v980_v29 = vmul.f32 %v3129_v19, %v958_v43 }
 0x30e   : > { %v981_v47 = vmul.f32 %v3131_v40, %v959_v44  ;;  %v985_v48 = vpack.c.bf16 %v982_v45, %v979_v28 }
 0x30f   : > { %v983_v14 = vpack.c.bf16 %v980_v29, %v977_v46 }
 0x310   : > { %993 = vrot.lane.b32.xlu0 %v985_v48, %s2738_s20  ;;  %v984_v15 = vpack.c.bf16 %v981_v47, %v978_v12 }
 0x312   : > { %991 = vrot.lane.b32.xlu1 %v984_v15, %s2738_s20 }
 0x316   : > { %989 = vrot.lane.b32.xlu1 %v983_v14, %s2738_s20 }
 0x382   : > { %v994_v49 = vpop.permute.xlu0 %993 }
 0x384   : > { %v992_v18 = vpop.permute.xlu1 %991 }
 0x385   : > { %v996_v50 = vsel %vm512_vm14, %v992_v18, %v994_v49 }
 0x386   : > { %v1002_v51 = vsel %vm705_vm7, %v996_v50, 0 }
 0x387   : > { %1152 = vmatpush1.bf16.msra.mxu1 %v1002_v51 }
 0x388   : > { %v990_v52 = vpop.permute.xlu1 %989  ;;  %1153 = vmatprep.subr.bf16.mxu1 %v2751_v6 }
 0x389   : > { %v995_v53 = vsel %vm512_vm14, %v990_v52, %v992_v18  ;;  %v999_v54 = vsel %vm512_vm14, 0, %v990_v52 }
 0x38a   : > { %1017 = vrot.lane.b32.xlu1 %v999_v54, %s2746_s13  ;;  %1006 = vrot.lane.b32.xlu0 %v999_v54, %s2745_s30 }
 0x38b   : > { %1110 = vmatprep.subr.bf16.mxu0 %v995_v53 }
 0x38c   : > { %2549 = vmatpush1.bf16.msk.msra.mxu0 %vm2548_vm10, %v990_v52  ;;  %vm3937_vm10 = vcmask 130048  }
 0x38d   : > { %2551 = vmatprep.mubr.msk.bf16.mxu1 %vm3937_vm10, %v2547_v56  ;;  %vm3938_vm6 = vmmov %vm3937_vm10 }
 0x38e   : > { %1028 = vrot.lane.b32.xlu0 %v999_v54, %s2747_s14  ;;  %1019 = vrot.lane.b32.xlu1 %v995_v53, %s2746_s13 }
 0x38f   : > { %2550 = vmatprep.mubr.msk.bf16.mxu0 %vm3938_vm6, %v2547_v56 }
 0x392   : > { %1041 = vrot.lane.b32.xlu1 %v995_v53, %s2744_s29  ;;  %1008 = vrot.lane.b32.xlu0 %v995_v53, %s2745_s30 }
 0x396   : > { %1010 = vrot.lane.b32.xlu1 %v1002_v51, %s2745_s30  ;;  %1030 = vrot.lane.b32.xlu0 %v995_v53, %s2747_s14 }
 0x39a   : > { %1039 = vrot.lane.b32.xlu1 %v999_v54, %s2744_s29  ;;  %1052 = vrot.lane.b32.xlu0 %v995_v53, %s2748_s15 }
 0x39e   : > { %1032 = vrot.lane.b32.xlu1 %v1002_v51, %s2747_s14  ;;  %1021 = vrot.lane.b32.xlu0 %v1002_v51, %s2746_s13 }
 0x3a2   : > { %1063 = vrot.lane.b32.xlu1 %v995_v53, %s2750_s17  ;;  %1050 = vrot.lane.b32.xlu0 %v999_v54, %s2748_s15 }
 0x3a6   : > { %1054 = vrot.lane.b32.xlu1 %v1002_v51, %s2748_s15  ;;  %1043 = vrot.lane.b32.xlu0 %v1002_v51, %s2744_s29 }
 0x3aa   : > { %1061 = vrot.lane.b32.xlu1 %v999_v54, %s2750_s17  ;;  %1074 = vrot.lane.b32.xlu0 %v995_v53, %s2742_s27 }
 0x3ae   : > { %1076 = vrot.lane.b32.xlu1 %v1002_v51, %s2742_s27  ;;  %1065 = vrot.lane.b32.xlu0 %v1002_v51, %s2750_s17 }
 0x3b2   : > { %1085 = vrot.lane.b32.xlu1 %v995_v53, %s2734_s16  ;;  %1072 = vrot.lane.b32.xlu0 %v999_v54, %s2742_s27 }
 0x3b6   : > { %1083 = vrot.lane.b32.xlu1 %v999_v54, %s2734_s16  ;;  %1087 = vrot.lane.b32.xlu0 %v1002_v51, %s2734_s16 }
 0x3ba   : > { %1098 = vperm.xlu0 %2713, %v1095_v57  }
 0x3fc   : > { %v1018_v58 = vpop.permute.xlu1 %1017  ;;  %v1007_v59 = vpop.permute.xlu0 %1006 }
 0x400   : > { %v1029_v60 = vpop.permute.xlu0 %1028  ;;  %v1020_v61 = vpop.permute.xlu1 %1019 }
 0x401   : > { %v1023_v11 = vsel %vm731_vm15, %v1018_v58, %v1020_v61 }
 0x404   : > { %v1042_v62 = vpop.permute.xlu1 %1041  ;;  %v1009_v63 = vpop.permute.xlu0 %1008 }
 0x405   : > { %v1012_v4 = vsel %vm719_vm13, %v1007_v59, %v1009_v63 }
 0x408   : > { %v1011_v0 = vpop.permute.xlu1 %1010  ;;  %v1031_v1 = vpop.permute.xlu0 %1030 }
 0x409   : > { %1154 = vmatpush1.bf16.msra.mxu1 %v1011_v0  ;;  %v1013_v3 = vsel %vm719_vm13, %v1009_v63, %v1011_v0  ;;  %v1034_v17 = vsel %vm743_vm11, %v1029_v60, %v1031_v1 }
 0x40a   : > { %1112 = vmatprep.subr.bf16.mxu0 %v1013_v3  ;;  %1155 = vmatprep.subr.bf16.mxu1 %v2751_v6 }
 0x40b   : > { %1113 = vmatpush1.bf16.msra.mxu0 %v1012_v4 }
 0x40c   : > { %v1040_v5 = vpop.permute.xlu1 %1039  ;;  %v1053_v7 = vpop.permute.xlu0 %1052 }
 0x40d   : > { %v1045_v30 = vsel %vm752_vm2, %v1040_v5, %v1042_v62 }
 0x410   : > { %v1033_v8 = vpop.permute.xlu1 %1032  ;;  %v1022_v9 = vpop.permute.xlu0 %1021 }
 0x411   : > { %1156 = vmatpush1.bf16.msra.mxu1 %v1022_v9  ;;  %v1024_v10 = vsel %vm731_vm15, %v1020_v61, %v1022_v9  ;;  %v1035_v13 = vsel %vm743_vm11, %v1031_v1, %v1033_v8  ;;  %v1331_v9 = vld [vmem:[%s3916_s7] sm:$0xf] }
 0x412   : > { %1114 = vmatprep.subr.bf16.mxu0 %v1024_v10  ;;  %1157 = vmatprep.subr.bf16.mxu1 %v2751_v6 }
 0x413   : > { %1115 = vmatpush1.bf16.msra.mxu0 %v1023_v11 }
 0x414   : > { %v1064_v16 = vpop.permute.xlu1 %1063  ;;  %v1051_v21 = vpop.permute.xlu0 %1050  ;;  %1116 = vmatprep.subr.bf16.mxu0 %v1035_v13 }
 0x415   : > { %1158 = vmatpush1.bf16.msra.mxu1 %v1033_v8  ;;  %v1056_v34 = vsel %vm761_vm0, %v1051_v21, %v1053_v7 }
 0x416   : > { %1159 = vmatprep.subr.bf16.mxu1 %v2751_v6 }
 0x417   : > { %1117 = vmatpush1.bf16.msra.mxu0 %v1034_v17 }
 0x418   : > { %v1055_v20 = vpop.permute.xlu1 %1054  ;;  %v1044_v23 = vpop.permute.xlu0 %1043 }
 0x419   : > { %1160 = vmatpush1.bf16.msra.mxu1 %v1044_v23  ;;  %v1046_v24 = vsel %vm752_vm2, %v1042_v62, %v1044_v23  ;;  %v1057_v31 = vsel %vm761_vm0, %v1053_v7, %v1055_v20 }
 0x41a   : > { %1118 = vmatprep.subr.bf16.mxu0 %v1046_v24  ;;  %1161 = vmatprep.subr.bf16.mxu1 %v2751_v6 }
 0x41b   : > { %1119 = vmatpush1.bf16.msra.mxu0 %v1045_v30 }
 0x41c   : > { %v1062_v32 = vpop.permute.xlu1 %1061  ;;  %v1075_v33 = vpop.permute.xlu0 %1074  ;;  %1120 = vmatprep.subr.bf16.mxu0 %v1057_v31 }
 0x41d   : > { %1162 = vmatpush1.bf16.msra.mxu1 %v1055_v20  ;;  %v1067_v38 = vsel %vm770_vm12, %v1062_v32, %v1064_v16 }
 0x41e   : > { %1163 = vmatprep.subr.bf16.mxu1 %v2751_v6 }
 0x41f   : > { %1121 = vmatpush1.bf16.msra.mxu0 %v1056_v34 }
 0x420   : > { %v1077_v35 = vpop.permute.xlu1 %1076  ;;  %v1066_v36 = vpop.permute.xlu0 %1065 }
 0x421   : > { %1164 = vmatpush1.bf16.msra.mxu1 %v1066_v36  ;;  %v1068_v37 = vsel %vm770_vm12, %v1064_v16, %v1066_v36  ;;  %v1079_v39 = vsel %vm3935_vm4, %v1075_v33, %v1077_v35 }
 0x422   : > { %1122 = vmatprep.subr.bf16.mxu0 %v1068_v37  ;;  %1165 = vmatprep.subr.bf16.mxu1 %v2751_v6 }
 0x423   : > { %1123 = vmatpush1.bf16.msra.mxu0 %v1067_v38 }
 0x424   : > { %v1086_v22 = vpop.permute.xlu1 %1085  ;;  %v1073_v41 = vpop.permute.xlu0 %1072  ;;  %1124 = vmatprep.subr.bf16.mxu0 %v1079_v39 }
 0x425   : > { %v1078_v25 = vsel %vm3935_vm4, %v1073_v41, %v1075_v33  ;;  %1166 = vmatpush1.bf16.msra.mxu1 %v1077_v35 }
 0x426   : > { %1167 = vmatprep.subr.bf16.mxu1 %v2751_v6 }
 0x427   : > { %1125 = vmatpush1.bf16.msra.mxu0 %v1078_v25 }
 0x428   : > { %v1084_v28 = vpop.permute.xlu1 %1083  ;;  %v1088_v42 = vpop.permute.xlu0 %1087 }
 0x429   : > { %v1089_v43 = vsel %vm3934_vm5, %v1084_v28, %v1086_v22  ;;  %1168 = vmatpush1.bf16.msra.mxu1 %v1088_v42  ;;  %v1090_v44 = vsel %vm3934_vm5, %v1086_v22, %v1088_v42 }
 0x42a   : > { %1126 = vmatprep.subr.bf16.mxu0 %v1090_v44  ;;  %2626 = vmatprep.subr.bf16.mxu1 %v2749_v2 }
 0x42b   : > { %1127 = vmatpush1.bf16.msra.mxu0 %v1089_v43 }
 0x42c   : > { %1184 = vmatmul.mubr.bf16.vlgmr.msra.gmra.mrb[4].mxu1 %v2546_v26 }
 0x42d   : > { %2636 = vmatprep.mubr.msk.bf16.mxu1 %vm2752_vm9, %v2749_v2 }
 0x42e   : > { %1143 = vmatmul.mubr.bf16.vlgmr.msra.gmra.mrb[4].mxu0 %v2546_v26 }
 0x42f   : > { %1381 = vmatprep.mubr.bf16.mxu0 %v2751_v6 }
 0x439   : > { %v1099_v45 = vpop.permute.xlu0 %1098 }
 0x4ff   : > { %v1185_v46 = vpop.f32.mrb[4].mxu1 }
 0x500   : > { %v1186_v29 = vadd.f32 %v1185_v46, %v1099_v45  ;;  %v1187_v12 = vpop.f32.mrb[5].mxu1 }
 0x501   : > { %v1144_v47 = vpop.f32.mrb[4].mxu0  ;;  %v1188_v48 = vpop.f32.mrb[6].mxu1 }
 0x502   : > { %v1193_v14 = vmax.f32 %v1186_v29, 0.0  ;;  %v1145_v15 = vadd.f32 %v1144_v47, %v1099_v45  ;;  %v1146_v49 = vpop.f32.mrb[5].mxu0  ;;  %v1189_v18 = vpop.f32.mrb[7].mxu1 }
 0x503   : > { %v1147_v50 = vadd.f32 %v1146_v49, %v1099_v45  ;;  %v1148_v51 = vpop.f32.mrb[6].mxu0 }
 0x504   : > { %v1196_v52 = vmul.f32 %v1193_v14, %v3127_v27  ;;  %v1149_v53 = vpop.f32.mrb[7].mxu0  ;;  %v1191_v54 = vmax.f32 %v1145_v15, 0.0 }
 0x505   : > { %v1192_v55 = vmax.f32 %v1147_v50, 0.0 }
 0x506   : > { %v1199_v56 = vpack.c.bf16 %v1196_v52, %v1196_v52  ;;  %v1194_v58 = vmul.f32 %v1191_v54, %v3129_v19 }
 0x507   : > { %v1195_v57 = vmul.f32 %v1192_v55, %v3131_v40 }
 0x508   : > { %1207 = vrot.lane.b32.xlu0 %v1199_v56, %s2738_s20  ;;  %v1197_v60 = vpack.c.bf16 %v1194_v58, %v1194_v58 }
 0x509   : > { %v1198_v59 = vpack.c.bf16 %v1195_v57, %v1195_v57 }
 0x50b   : > { %1205 = vrot.lane.b32.xlu1 %v1198_v59, %s2738_s20 }
 0x50f   : > { %1203 = vrot.lane.b32.xlu1 %v1197_v60, %s2738_s20 }
 0x57a   : > { %v1208_v1 = vpop.permute.xlu0 %1207 }
 0x57d   : > { %v1206_v61 = vpop.permute.xlu1 %1205 }
 0x57e   : > { %v1210_v3 = vsel %vm512_vm14, %v1206_v61, %v1208_v1 }
 0x57f   : > { %v1214_v4 = vsel %vm705_vm7, %v1210_v3, 0 }
 0x580   : > { %v1219_v8 = vrot.slane %v1214_v4, 4 }
 0x581   : > { %v1204_v62 = vpop.permute.xlu1 %1203 }
 0x582   : > { %v1212_v63 = vsel %vm512_vm14, 0, %v1204_v62  ;;  %v1209_v5 = vsel %vm512_vm14, %v1204_v62, %v1206_v61 }
 0x583   : > { %1228 = vrot.lane.b32.xlu1 %v1212_v63, %s2746_s13  ;;  %v1217_v0 = vrot.slane %v1212_v63, 4  ;;  %v1218_v7 = vrot.slane %v1209_v5, 4 }
 0x585   : > { %1220 = vrot.lane.b32.xlu0 %v1217_v0, %s2745_s30 }
 0x587   : > { %1244 = vrot.lane.b32.xlu1 %v1212_v63, %s2744_s29 }
 0x589   : > { %1232 = vrot.lane.b32.xlu0 %v1214_v4, %s2746_s13 }
 0x58b   : > { %1230 = vrot.lane.b32.xlu1 %v1209_v5, %s2746_s13 }
 0x58d   : > { %1236 = vrot.lane.b32.xlu0 %v1217_v0, %s2747_s14 }
 0x58f   : > { %1246 = vrot.lane.b32.xlu1 %v1209_v5, %s2744_s29 }
 0x591   : > { %1248 = vrot.lane.b32.xlu0 %v1214_v4, %s2744_s29 }
 0x593   : > { %1238 = vrot.lane.b32.xlu1 %v1218_v7, %s2747_s14 }
 0x595   : > { %1252 = vrot.lane.b32.xlu0 %v1217_v0, %s2748_s15 }
 0x597   : > { %1254 = vrot.lane.b32.xlu1 %v1218_v7, %s2748_s15 }
 0x599   : > { %1222 = vrot.lane.b32.xlu0 %v1218_v7, %s2745_s30 }
 0x59b   : > { %1224 = vrot.lane.b32.xlu1 %v1219_v8, %s2745_s30 }
 0x59d   : > { %1264 = vrot.lane.b32.xlu0 %v1214_v4, %s2750_s17 }
 0x59f   : > { %1262 = vrot.lane.b32.xlu1 %v1209_v5, %s2750_s17 }
 0x5a1   : > { %1240 = vrot.lane.b32.xlu0 %v1219_v8, %s2747_s14 }
 0x5a3   : > { %1270 = vrot.lane.b32.xlu1 %v1218_v7, %s2742_s27 }
 0x5a5   : > { %1256 = vrot.lane.b32.xlu0 %v1219_v8, %s2748_s15 }
 0x5a7   : > { %1260 = vrot.lane.b32.xlu1 %v1212_v63, %s2750_s17 }
 0x5a9   : > { %1272 = vrot.lane.b32.xlu0 %v1219_v8, %s2742_s27 }
 0x5ab   : > { %1276 = vrot.lane.b32.xlu1 %v1212_v63, %s2734_s16 }
 0x5ad   : > { %1268 = vrot.lane.b32.xlu0 %v1217_v0, %s2742_s27  ;;  %v1330_v0 = vld [vmem:[%s3915_s6] sm:$0x3] }
 0x5af   : > { %1280 = vrot.lane.b32.xlu1 %v1214_v4, %s2734_s16 }
 0x5b1   : > { %1278 = vrot.lane.b32.xlu0 %v1209_v5, %s2734_s16 }
 0x5b5   : > { %1334 = vperm.xlu0 %2713, %v1331_v9  }
 0x5f5   : > { %v1229_v10 = vpop.permute.xlu1 %1228 }
 0x5f7   : > { %v1221_v11 = vpop.permute.xlu0 %1220 }
 0x5f9   : > { %v1245_v13 = vpop.permute.xlu1 %1244 }
 0x5fb   : > { %v1233_v16 = vpop.permute.xlu0 %1232 }
 0x5fd   : > { %v1231_v21 = vpop.permute.xlu1 %1230 }
 0x5fe   : > { %v1235_v28 = vsel %vm731_vm15, %v1231_v21, %v1233_v16  ;;  %v1234_v43 = vsel %vm731_vm15, %v1229_v10, %v1231_v21 }
 0x5ff   : > { %v1237_v17 = vpop.permute.xlu0 %1236 }
 0x601   : > { %v1247_v20 = vpop.permute.xlu1 %1246 }
 0x602   : > { %v1250_v15 = vsel %vm752_vm2, %v1245_v13, %v1247_v20 }
 0x603   : > { %v1249_v23 = vpop.permute.xlu0 %1248 }
 0x604   : > { %v1251_v47 = vsel %vm752_vm2, %v1247_v20, %v1249_v23 }
 0x605   : > { %v1239_v24 = vpop.permute.xlu1 %1238 }
 0x606   : > { %v1242_v41 = vsel %vm743_vm11, %v1237_v17, %v1239_v24 }
 0x607   : > { %v1253_v30 = vpop.permute.xlu0 %1252  ;;  %v1296_v46 = vsel %vm799_vm1, %v1234_v43, %v1242_v41 }
 0x609   : > { %v1255_v31 = vpop.permute.xlu1 %1254 }
 0x60a   : > { %v1258_v29 = vsel %vm761_vm0, %v1253_v30, %v1255_v31 }
 0x60b   : > { %v1223_v32 = vpop.permute.xlu0 %1222  ;;  %v1308_v50 = vsel %vm799_vm1, %v1250_v15, %v1258_v29  ;;  %v1685_v15 = vld [vmem:[%s428_s25 + $0x8] sm:$0x3f] }
 0x60c   : > { %v1226_v33 = vsel %vm719_vm13, %v1221_v11, %v1223_v32 }
 0x60d   : > { %v1225_v34 = vpop.permute.xlu1 %1224  ;;  %v1285_v39 = vsel %vm799_vm1, %v1212_v63, %v1226_v33 }
 0x60e   : > { %v1227_v35 = vsel %vm719_vm13, %v1223_v32, %v1225_v34  ;;  %v1292_v36 = vsel %vm799_vm1, %v1214_v4, %v1225_v34 }
 0x60f   : > { %2627 = vmatpush3.bf16.msra.mxu1 %v1292_v36  ;;  %v1265_v37 = vpop.permute.xlu0 %1264  ;;  %v1289_v38 = vsel %vm799_vm1, %v1209_v5, %v1227_v35 }
 0x610   : > { %1349 = vmatprep.subr.bf16.mxu0 %v1289_v38  ;;  %2628 = vmatprep.subr.bf16.mxu1 %v2749_v2 }
 0x611   : > { %v1263_v22 = vpop.permute.xlu1 %1262  ;;  %1350 = vmatpush1.bf16.msra.mxu0 %v1285_v39 }
 0x612   : > { %v1267_v52 = vsel %vm770_vm12, %v1263_v22, %v1265_v37 }
 0x613   : > { %v1241_v25 = vpop.permute.xlu0 %1240 }
 0x614   : > { %v1243_v42 = vsel %vm743_vm11, %v1239_v24, %v1241_v25  ;;  %v1304_v26 = vsel %vm799_vm1, %v1233_v16, %v1241_v25 }
 0x615   : > { %v1271_v44 = vpop.permute.xlu1 %1270  ;;  %2629 = vmatpush3.bf16.msra.mxu1 %v1304_v26  ;;  %v1300_v45 = vsel %vm799_vm1, %v1235_v28, %v1243_v42 }
 0x616   : > { %1351 = vmatprep.subr.bf16.mxu0 %v1300_v45  ;;  %2630 = vmatprep.subr.bf16.mxu1 %v2749_v2 }
 0x617   : > { %1352 = vmatpush1.bf16.msra.mxu0 %v1296_v46  ;;  %v1257_v12 = vpop.permute.xlu0 %1256 }
 0x618   : > { %v1259_v48 = vsel %vm761_vm0, %v1255_v31, %v1257_v12  ;;  %v1316_v14 = vsel %vm799_vm1, %v1249_v23, %v1257_v12 }
 0x619   : > { %v1261_v49 = vpop.permute.xlu1 %1260  ;;  %2631 = vmatpush3.bf16.msra.mxu1 %v1316_v14  ;;  %v1312_v18 = vsel %vm799_vm1, %v1251_v47, %v1259_v48  ;;  %v1576_v48 = vld [vmem:[%s3918_s9] sm:$0xf] }
 0x61a   : > { %1353 = vmatprep.subr.bf16.mxu0 %v1312_v18  ;;  %2632 = vmatprep.subr.bf16.mxu1 %v2749_v2  ;;  %v1266_v58 = vsel %vm770_vm12, %v1261_v49, %v1263_v22  ;;  %v1684_v14 = vld [vmem:[%s428_s25] sm:$0xff]  ;;  %v1686_v49 = vld [vmem:[%s428_s25 + $0x10] sm:$0xff]  ;;  %v1687_v18 = vld [vmem:[%s428_s25 + $0x18] sm:$0x3f] }
 0x61b   : > { %1354 = vmatpush1.bf16.msra.mxu0 %v1308_v50  ;;  %v1273_v51 = vpop.permute.xlu0 %1272  ;;  %v1688_v50 = vld [vmem:[%s428_s25 + $0x20] sm:$0xff] }
 0x61c   : > { %v1275_v53 = vsel %vm3935_vm4, %v1271_v44, %v1273_v51  ;;  %v1328_v54 = vsel %vm799_vm1, %v1265_v37, %v1273_v51  ;;  %v1689_v51 = vld [vmem:[%s428_s25 + $0x28] sm:$0x3f] }
 0x61d   : > { %v1277_v55 = vpop.permute.xlu1 %1276  ;;  %2633 = vmatpush3.bf16.msra.mxu1 %v1328_v54  ;;  %v1324_v56 = vsel %vm799_vm1, %v1267_v52, %v1275_v53  ;;  %v1692_v52 = vpack.c.bf16 %v1685_v15, %v1684_v14  ;;  %v1690_v53 = vld [vmem:[%s428_s25 + $0x30] sm:$0xff]  ;;  %v1691_v54 = vld [vmem:[%s428_s25 + $0x38] sm:$0x3f]  ;;  %s2756_s25 = smov 75  }
 0x61e   : > { %1355 = vmatprep.subr.bf16.mxu0 %v1324_v56  ;;  %2634 = vmatprep.subr.bf16.mxu1 %v2749_v2  ;;  %v1694_v56 = vpack.c.bf16 %v1689_v51, %v1688_v50 }
 0x61f   : > { %v1269_v57 = vpop.permute.xlu0 %1268 }
 0x620   : > { %v1274_v59 = vsel %vm3935_vm4, %v1269_v57, %v1271_v44  ;;  %v1695_v57 = vpack.c.bf16 %v1691_v54, %v1690_v53 }
 0x621   : > { %v1281_v60 = vpop.permute.xlu1 %1280  ;;  %v1320_v61 = vsel %vm799_vm1, %v1266_v58, %v1274_v59  ;;  %v3357_v58 = vunpack.c.l.b16 %v1692_v52  ;;  %v3359_v59 = vunpack.c.h.b16 %v1692_v52 }
 0x622   : > { %v1347_v62 = vsel %vm799_vm1, %v1281_v60, 0  ;;  %1356 = vmatpush1.bf16.msra.mxu0 %v1320_v61  ;;  %v3363_v61 = vunpack.c.l.b16 %v1694_v56 }
 0x623   : > { %2635 = vmatpush3.bf16.msra.mxu1 %v1347_v62  ;;  %v1279_v63 = vpop.permute.xlu0 %1278  ;;  %v1833_v52 = vrot.slane %v3359_v59, 2 }
 0x624   : > { %v1282_v1 = vsel %vm3934_vm5, %v1277_v55, %v1279_v63  ;;  %v1283_v3 = vsel %vm3934_vm5, %v1279_v63, %v1281_v60  ;;  %2640 = vmatprep.subr.bf16.mxu1 %v2749_v2  ;;  %v1693_v55 = vpack.c.bf16 %v1687_v18, %v1686_v49  ;;  %v3367_v63 = vunpack.c.h.b16 %v1694_v56 }
 0x625   : > { %v1341_v4 = vsel %vm799_vm1, %v1282_v1, 0  ;;  %2552 = vmatprep.subr.msk.bf16.mxu0 %vm799_vm1, %v1283_v3  ;;  %v1729_v1 = vrot.slane %v3357_v58, 2  ;;  %v3372_v3 = vunpack.c.h.b16 %v1695_v57  ;;  %vm3945_vm5 = vcmask 1043459  }
 0x626   : > { %1358 = vmatpush1.bf16.msra.mxu0 %v1341_v4  ;;  %2637 = vmatmul.mubr.msk.bf16.vlgmr.msra.gmra.mrb[8].mxu1 %vm531_vm3, %v1330_v0  ;;  %v3361_v60 = vunpack.c.l.b16 %v1693_v55  ;;  %v3365_v62 = vunpack.c.h.b16 %v1693_v55  ;;  %v1792_v4 = vrot.slane %v3357_v58, 7  ;;  %vm3946_vm4 = vmmov %vm3945_vm5  ;;  %v1744_v18 = vrot.slane %v3363_v61, 1 }
 0x627   : > { %2646 = vmatprep.mubr.msk.bf16.mxu1 %vm2752_vm9, %v2749_v2  ;;  %vm3942_vm9 = vcmask 1042434  }
 0x628   : > { %vm3943_vm6 = vmmov %vm3942_vm9  ;;  %v1834_v55 = vrot.slane %v3365_v62, 1 }
 0x629   : > { %2553 = vmatmul.mubr.msk.bf16.vlgmr.msra.gmra.mrb[8].mxu0 %vm531_vm3, %v1330_v0  ;;  %v3369_v0 = vunpack.c.l.b16 %v1695_v57  ;;  %vm3939_vm3 = vcmask 1041409   ;;  %vm3944_vm10 = vmmov %vm3943_vm6 }
 0x62a   : > { %1626 = vmatprep.mubr.bf16.mxu0 %v2751_v6 }
 0x634   : > { %v1335_v5 = vpop.permute.xlu0 %1334 }
 0x6f9   : > { %v1424_v7 = vpop.f32.mrb[8].mxu1 }
 0x6fa   : > { %v1425_v8 = vadd.f32 %v1424_v7, %v1335_v5  ;;  %v2638_v9 = vpop.f32.mrb[9].mxu1  ;;  %v1809_v7 = vrot.slane %v3365_v62, 7 }
 0x6fb   : > { %v1427_v10 = vpop.f32.mrb[10].mxu1  ;;  %v1793_v9 = vrot.slane %v3361_v60, 6 }
 0x6fc   : > { %v1432_v11 = vmax.f32 %v1425_v8, 0.0  ;;  %v1383_v13 = vpop.f32.mrb[8].mxu0  ;;  %v2639_v16 = vpop.f32.mrb[11].mxu1  ;;  %v1811_v8 = vrot.slane %v3367_v63, 6  ;;  %v1733_v10 = vrot.slane %v3369_v0, 7 }
 0x6fd   : > { %v1384_v21 = vadd.f32 %v1383_v13, %v1335_v5  ;;  %v1385_v17 = vpop.f32.mrb[9].mxu0  ;;  %v1795_v13 = vrot.slane %v3363_v61, 5  ;;  %v1797_v16 = vrot.slane %v3369_v0, 4 }
 0x6fe   : > { %v1435_v20 = vmul.f32 %v1432_v11, %v3127_v27  ;;  %v1386_v23 = vadd.f32 %v1385_v17, %v1335_v5  ;;  %v1387_v24 = vpop.f32.mrb[10].mxu0  ;;  %v1730_v5 = vrot.slane %v3361_v60, 1  ;;  %v1813_v11 = vrot.slane %v3372_v3, 5 }
 0x6ff   : > { %v1388_v30 = vpop.f32.mrb[11].mxu0  ;;  %v1430_v32 = vmax.f32 %v1384_v21, 0.0 }
 0x700   : > { %v1438_v31 = vpack.c.bf16 %v1435_v20, %v1435_v20  ;;  %v1431_v33 = vmax.f32 %v1386_v23, 0.0  ;;  %v1731_v21 = vsel %vm3939_vm3, %v1730_v5, %v1729_v1  ;;  %v1704_v23 = vrot.slane %v3361_v60, 7 }
 0x701   : > { %v1433_v34 = vmul.f32 %v1430_v32, %v3129_v19  ;;  %v1732_v24 = vsel %vm3942_vm9, %v3363_v61, %v1731_v21  ;;  %v1706_v32 = vrot.slane %v3363_v61, 6  ;;  %vm3951_vm9 = vmmov %vm3943_vm6  ;;  %v1837_v1 = vrot.slane %v3372_v3, 7 }
 0x702   : > { %v1434_v6 = vmul.f32 %v1431_v33, %v3131_v40  ;;  %1446 = vrot.lane.b32.xlu0 %v1438_v31, %s2738_s20  ;;  %v1734_v33 = vsel %vm3945_vm5, %v1733_v10, %v1732_v24  ;;  %vm3949_vm5 = vmmov %vm3946_vm4 }
 0x703   : > { %v1436_v36 = vpack.c.bf16 %v1433_v34, %v1433_v34  ;;  %v1705_v34 = vsel %vm3939_vm3, %v1704_v23, %v3357_v58 }
 0x704   : > { %v1437_v35 = vpack.c.bf16 %v1434_v6, %v1434_v6 }
 0x706   : > { %1444 = vrot.lane.b32.xlu1 %v1437_v35, %s2738_s20  ;;  %v1735_v35 = vpack.c.b16 %v1734_v33, %v1734_v33 }
 0x70a   : > { %1442 = vrot.lane.b32.xlu1 %v1436_v36, %s2738_s20 }
 0x774   : > { %v1447_v28 = vpop.permute.xlu0 %1446 }
 0x778   : > { %v1445_v37 = vpop.permute.xlu1 %1444 }
 0x779   : > { %v1449_v42 = vsel %vm512_vm14, %v1445_v37, %v1447_v28  ;;  %v1754_v28 = vrot.slane %v3361_v60, 3 }
 0x77a   : > { %v3318_v43 = vsel %vm705_vm7, %v1449_v42, 0  ;;  %vm3941_vm7 = vmmov %vm3939_vm3  ;;  %v1756_v42 = vrot.slane %v3363_v61, 2 }
 0x77b   : > { %v1458_v29 = vrot.slane %v3318_v43, 6  ;;  %v1469_v12 = vrot.slane %v3318_v43, 4  ;;  %v1480_v47 = vrot.slane %v3318_v43, 2  ;;  %v1794_v20 = vsel %vm3941_vm7, %v1793_v9, %v1792_v4  ;;  %vm3948_vm7 = vmmov %vm3943_vm6 }
 0x77c   : > { %v1443_v38 = vpop.permute.xlu1 %1442  ;;  %v1796_v31 = vsel %vm3944_vm10, %v1795_v13, %v1794_v20  ;;  %vm3953_vm10 = vmmov %vm3948_vm7  ;;  %v1857_v4 = vrot.slane %v3359_v59, 4  ;;  %v1860_v9 = vrot.slane %v3367_v63, 2  ;;  %v1862_v20 = vrot.slane %v3372_v3, 1 }
 0x77d   : > { %v3301_v39 = vsel %vm512_vm14, 0, %v1443_v38  ;;  %v3308_v41 = vsel %vm512_vm14, %v1443_v38, %v1445_v37  ;;  %vm3940_vm14 = vmmov %vm3939_vm3  ;;  %v1707_v38 = vsel %vm3948_vm7, %v1706_v32, %v1705_v34 }
 0x77e   : > { %1489 = vrot.lane.b32.xlu1 %v3301_v39, %s2744_s29  ;;  %v1456_v22 = vrot.slane %v3301_v39, 6  ;;  %v1478_v25 = vrot.slane %v3301_v39, 2  ;;  %v1467_v26 = vrot.slane %v3301_v39, 4  ;;  %v1468_v44 = vrot.slane %v3308_v41, 4  ;;  %vm3955_vm7 = vmmov %vm3949_vm5 }
 0x77f   : > { %v1457_v45 = vrot.slane %v3308_v41, 6  ;;  %v1479_v46 = vrot.slane %v3308_v41, 2  ;;  %v1810_v17 = vsel %vm3940_vm14, %v1809_v7, %v3359_v59  ;;  %vm3947_vm14 = vmmov %vm3946_vm4 }
 0x780   : > { %1459 = vrot.lane.b32.xlu0 %v1456_v22, %s2745_s30  ;;  %v1812_v30 = vsel %vm3943_vm6, %v1811_v8, %v1810_v17  ;;  %v1798_v37 = vsel %vm3947_vm14, %v1797_v16, %v1796_v31  ;;  %vm3952_vm6 = vmmov %vm3939_vm3  ;;  %v1858_v8 = vrot.slane %v3365_v62, 3 }
 0x781   : > { %v1814_v6 = vsel %vm3946_vm4, %v1813_v11, %v1812_v30  ;;  %vm3950_vm4 = vmmov %vm3939_vm3  ;;  %v1799_v53 = vpack.c.b16 %v1798_v37, %v1798_v37 }
 0x782   : > { %1491 = vrot.lane.b32.xlu1 %v3308_v41, %s2744_s29  ;;  %v1815_v36 = vpack.c.b16 %v1814_v6, %v1814_v6  ;;  %vm3954_vm14 = vmmov %vm3949_vm5 }
 0x784   : > { %1481 = vrot.lane.b32.xlu0 %v1478_v25, %s2747_s14 }
 0x786   : > { %1470 = vrot.lane.b32.xlu1 %v1467_v26, %s2746_s13 }
 0x788   : > { %1493 = vrot.lane.b32.xlu0 %v3318_v43, %s2744_s29 }
 0x78a   : > { %1505 = vrot.lane.b32.xlu1 %v1467_v26, %s2750_s17  ;;  %v1758_v26 = vrot.slane %v3369_v0, 1 }
 0x78c   : > { %1497 = vrot.lane.b32.xlu0 %v1456_v22, %s2748_s15  ;;  %v1708_v22 = vrot.slane %v3369_v0, 5 }
 0x78e   : > { %1472 = vrot.lane.b32.xlu1 %v1468_v44, %s2746_s13 }
 0x790   : > { %1461 = vrot.lane.b32.xlu0 %v1457_v45, %s2745_s30 }
 0x792   : > { %1499 = vrot.lane.b32.xlu1 %v1457_v45, %s2748_s15  ;;  %v1719_v45 = vrot.slane %v3363_v61, 7 }
 0x794   : > { %1483 = vrot.lane.b32.xlu0 %v1479_v46, %s2747_s14 }
 0x796   : > { %1507 = vrot.lane.b32.xlu1 %v1468_v44, %s2750_s17  ;;  %v1717_v44 = vrot.slane %v3357_v58, 1 }
 0x798   : > { %1515 = vrot.lane.b32.xlu0 %v1479_v46, %s2742_s27  ;;  %v1721_v46 = vrot.slane %v3369_v0, 6  ;;  %v1718_v49 = vsel %vm3952_vm6, %v3361_v60, %v1717_v44  ;;  %vm3959_vm6 = vmmov %vm3955_vm7 }
 0x799   : > { %v1720_v50 = vsel %vm3953_vm10, %v1719_v45, %v1718_v49  ;;  %vm3960_vm10 = vmmov %vm3939_vm3 }
 0x79a   : > { %1463 = vrot.lane.b32.xlu1 %v1458_v29, %s2745_s30  ;;  %v1722_v54 = vsel %vm3954_vm14, %v1721_v46, %v1720_v50  ;;  %v1859_v16 = vsel %vm3960_vm10, %v1858_v8, %v1857_v4  ;;  %vm3974_vm10 = vcmask 293888  }
 0x79b   : > { %v1723_v57 = vpack.c.b16 %v1722_v54, %v1722_v54 }
 0x79c   : > { %1474 = vrot.lane.b32.xlu0 %v1469_v12, %s2746_s13  ;;  %s3991_s13 = smov 55  }
 0x79e   : > { %1485 = vrot.lane.b32.xlu1 %v1480_v47, %s2747_s14  ;;  %s2759_s14 = smov 113  }
 0x7a0   : > { %1501 = vrot.lane.b32.xlu0 %v1458_v29, %s2748_s15  ;;  %v1709_v29 = vsel %vm3949_vm5, %v1708_v22, %v1707_v38  ;;  %vm3956_vm5 = vmmov %vm3951_vm9  ;;  %s2592_s15 = sshll.u32 %s4091_s22, 7 }
 0x7a1   : > { %v1710_v14 = vpack.c.b16 %v1709_v29, %v1709_v29  ;;  %vm3962_vm14 = vmmov %vm3956_vm5 }
 0x7a2   : > { %1517 = vrot.lane.b32.xlu1 %v1480_v47, %s2742_s27  ;;  %v1741_v47 = vrot.slane %v3357_v58, 3  ;;  %v1861_v23 = vsel %vm3962_vm14, %v1860_v9, %v1859_v16  ;;  %vm3976_vm14 = vcmask 1041409  }
 0x7a4   : > { %1509 = vrot.lane.b32.xlu0 %v1469_v12, %s2750_s17  ;;  %s3678_s17 = scalar_lea.vmem %s3921_s12, %s2592_s15 }
 0x7a6   : > { %1521 = vrot.lane.b32.xlu1 %v3301_v39, %s2734_s16 }
 0x7a8   : > { %1513 = vrot.lane.b32.xlu0 %v1478_v25, %s2742_s27  ;;  %v1753_v25 = vrot.slane %v3357_v58, 4 }
 0x7aa   : > { %1525 = vrot.lane.b32.xlu1 %v3318_v43, %s2734_s16  ;;  %v1755_v12 = vsel %vm3950_vm4, %v1754_v28, %v1753_v25  ;;  %vm3957_vm4 = vmmov %vm3939_vm3 }
 0x7ab   : > { %v1757_v15 = vsel %vm3951_vm9, %v1756_v42, %v1755_v12  ;;  %v1835_v7 = vsel %vm3957_vm4, %v1834_v55, %v1833_v52  ;;  %vm3958_vm9 = vmmov %vm3956_vm5 }
 0x7ac   : > { %1523 = vrot.lane.b32.xlu0 %v3308_v41, %s2734_s16  ;;  %v1759_v56 = vsel %vm3955_vm7, %v1758_v26, %v1757_v15  ;;  %v1836_v10 = vsel %vm3958_vm9, %v3367_v63, %v1835_v7 }
 0x7ad   : > { %v1760_v11 = vpack.c.b16 %v1759_v56, %v1759_v56  ;;  %v1838_v13 = vsel %vm3959_vm6, %v1837_v1, %v1836_v10 }
 0x7ae   : > { %1711 = vrot.lane.b32.xlu1 %v1710_v14, %s2737_s19  ;;  %v1839_v17 = vpack.c.b16 %v1838_v13, %v1838_v13 }
 0x7b0   : > { %1579 = vperm.xlu0 %2713, %v1576_v48   ;;  %v1742_v48 = vrot.slane %v3361_v60, 2 }
 0x7b2   : > { %v1743_v51 = vsel %vm3939_vm3, %v1742_v48, %v1741_v47  ;;  %1724 = vrot.lane.b32.xlu1 %v1723_v57, %s2737_s19  ;;  %vm3961_vm3 = vmmov %vm3959_vm6 }
 0x7b3   : > { %v1745_v5 = vsel %vm3956_vm5, %v1744_v18, %v1743_v51  ;;  %vm3963_vm7 = vmmov %vm3961_vm3 }
 0x7b4   : > { %1736 = vrot.lane.b32.xlu0 %v1735_v35, %s2737_s19  ;;  %v1746_v21 = vsel %vm3961_vm3, %v3369_v0, %v1745_v5  ;;  %v1863_v30 = vsel %vm3963_vm7, %v1862_v20, %v1861_v23  ;;  %vm3975_vm3 = vmmov %vm3974_vm10  ;;  %vm3977_vm7 = vcmask 1042434  }
 0x7b5   : > { %v1747_v24 = vpack.c.b16 %v1746_v21, %v1746_v21  ;;  %v1864_v31 = vpack.c.b16 %v1863_v30, %v1863_v30 }
 0x7b6   : > { %1840 = vrot.lane.b32.xlu1 %v1839_v17, %s2737_s19 }
 0x7b8   : > { %1816 = vrot.lane.b32.xlu0 %v1815_v36, %s2737_s19 }
 0x7bc   : > { %1800 = vrot.lane.b32.xlu0 %v1799_v53, %s2737_s19 }
 0x7c0   : > { %1761 = vrot.lane.b32.xlu0 %v1760_v11, %s2737_s19 }
 0x7c4   : > { %1748 = vrot.lane.b32.xlu0 %v1747_v24, %s2737_s19 }
 0x7c8   : > { %1865 = vrot.lane.b32.xlu0 %v1864_v31, %s2737_s19 }
 0x7f0   : > { %v1490_v32 = vpop.permute.xlu1 %1489 }
 0x7f2   : > { %v1460_v33 = vpop.permute.xlu0 %1459 }
 0x7f4   : > { %v1492_v6 = vpop.permute.xlu1 %1491 }
 0x7f5   : > { %v1495_v20 = vsel %vm752_vm2, %v1490_v32, %v1492_v6 }
 0x7f6   : > { %v1482_v34 = vpop.permute.xlu0 %1481 }
 0x7f8   : > { %v1471_v35 = vpop.permute.xlu1 %1470 }
 0x7fa   : > { %v1494_v36 = vpop.permute.xlu0 %1493 }
 0x7fb   : > { %v1496_v1 = vsel %vm752_vm2, %v1492_v6, %v1494_v36  ;;  %v1575_v6 = vld [vmem:[%s3917_s8] sm:$0x3]  ;;  %vm3972_vm2 = vcmask 736256  }
 0x7fc   : > { %v1506_v37 = vpop.permute.xlu1 %1505  ;;  %vm3973_vm6 = vmmov %vm3972_vm2 }
 0x7fe   : > { %v1498_v38 = vpop.permute.xlu0 %1497 }
 0x800   : > { %v1473_v22 = vpop.permute.xlu1 %1472 }
 0x801   : > { %v1476_v52 = vsel %vm731_vm15, %v1471_v35, %v1473_v22 }
 0x802   : > { %v1462_v25 = vpop.permute.xlu0 %1461 }
 0x803   : > { %v1465_v45 = vsel %vm719_vm13, %v1460_v33, %v1462_v25 }
 0x804   : > { %v1500_v28 = vpop.permute.xlu1 %1499  ;;  %v1530_v14 = vsel %vm791_vm8, %v3301_v39, %v1465_v45  ;;  %v1848_v45 = vrot.slane %v3367_v63, 1 }
 0x805   : > { %v1537_v39 = vsel %vm799_vm1, %v1530_v14, %v1476_v52  ;;  %v1503_v7 = vsel %vm761_vm0, %v1498_v38, %v1500_v28  ;;  %v1780_v14 = vrot.slane %v3361_v60, 5 }
 0x806   : > { %v1484_v42 = vpop.permute.xlu0 %1483  ;;  %v1553_v24 = vsel %vm791_vm8, %v1495_v20, %v1503_v7 }
 0x807   : > { %v1487_v18 = vsel %vm743_vm11, %v1482_v34, %v1484_v42 }
 0x808   : > { %v1508_v26 = vpop.permute.xlu1 %1507 }
 0x809   : > { %v1511_v11 = vsel %vm770_vm12, %v1506_v37, %v1508_v26 }
 0x80a   : > { %v1516_v44 = vpop.permute.xlu0 %1515  ;;  %v1561_v31 = vsel %vm799_vm1, %v1553_v24, %v1511_v11 }
 0x80c   : > { %v1464_v46 = vpop.permute.xlu1 %1463 }
 0x80d   : > { %v1466_v29 = vsel %vm719_vm13, %v1462_v25, %v1464_v46  ;;  %v1535_v12 = vsel %vm791_vm8, %v3318_v43, %v1464_v46  ;;  %vm3964_vm13 = vcmask 1045504   ;;  %v1823_v25 = vrot.slane %v3367_v63, 7 }
 0x80e   : > { %v1533_v47 = vsel %vm791_vm8, %v3308_v41, %v1466_v29  ;;  %v1475_v48 = vpop.permute.xlu0 %1474  ;;  %vm3965_vm5 = vmmov %vm3964_vm13 }
 0x80f   : > { %v1477_v15 = vsel %vm731_vm15, %v1473_v22, %v1475_v48  ;;  %v1541_v49 = vsel %vm799_vm1, %v1535_v12, %v1475_v48  ;;  %vm3966_vm4 = vmmov %vm3965_vm5  ;;  %vm3967_vm15 = vcmask 744448   ;;  %v1821_v22 = vrot.slane %v3359_v59, 1 }
 0x810   : > { %v1486_v50 = vpop.permute.xlu1 %1485  ;;  %v1539_v51 = vsel %vm799_vm1, %v1533_v47, %v1477_v15  ;;  %v1543_v55 = vsel %vm3966_vm4, %v1537_v39, %v1487_v18  ;;  %vm3969_vm9 = vmmov %vm3966_vm4  ;;  %v1779_v48 = vrot.slane %v3357_v58, 6  ;;  %v1782_v18 = vrot.slane %v3363_v61, 4 }
 0x811   : > { %v1488_v43 = vsel %vm743_vm11, %v1484_v42, %v1486_v50  ;;  %v1549_v53 = vsel %vm3964_vm13, %v1541_v49, %v1486_v50  ;;  %vm3968_vm11 = vmmov %vm3966_vm4  ;;  %v1846_v42 = vrot.slane %v3365_v62, 2  ;;  %v1870_v50 = vrot.slane %v3359_v59, 5 }
 0x812   : > { %2641 = vmatpush3.bf16.msra.mxu1 %v1549_v53  ;;  %v1502_v41 = vpop.permute.xlu0 %1501  ;;  %v1546_v54 = vsel %vm3965_vm5, %v1539_v51, %v1488_v43  ;;  %vm3978_vm13 = vmmov %vm3976_vm14  ;;  %vm3979_vm5 = vcmask 1043459   ;;  %v1784_v43 = vrot.slane %v3369_v0, 3  ;;  %v1871_v53 = vrot.slane %v3365_v62, 4 }
 0x813   : > { %1594 = vmatprep.subr.bf16.mxu0 %v1546_v54  ;;  %2642 = vmatprep.subr.bf16.mxu1 %v2749_v2  ;;  %v1504_v56 = vsel %vm761_vm0, %v1500_v28, %v1502_v41  ;;  %v1559_v4 = vsel %vm791_vm8, %v1494_v36, %v1502_v41  ;;  %vm3971_vm0 = vmmov %vm3966_vm4  ;;  %v1845_v28 = vrot.slane %v3359_v59, 3  ;;  %v1873_v54 = vrot.slane %v3367_v63, 3 }
 0x814   : > { %v1518_v57 = vpop.permute.xlu1 %1517  ;;  %1595 = vmatpush1.bf16.msra.mxu0 %v1543_v55  ;;  %v1556_v8 = vsel %vm791_vm8, %v1496_v1, %v1504_v56  ;;  %vm3980_vm4 = vmmov %vm3977_vm7  ;;  %v1875_v39 = vrot.slane %v3372_v3, 2  ;;  %v1766_v56 = vrot.slane %v3357_v58, 5 }
 0x815   : > { %v1520_v13 = vsel %vm3967_vm15, %v1516_v44, %v1518_v57  ;;  %v1847_v29 = vsel %vm3978_vm13, %v1846_v42, %v1845_v28 }
 0x816   : > { %v1510_v5 = vpop.permute.xlu0 %1509  ;;  %v1849_v47 = vsel %vm3980_vm4, %v1848_v45, %v1847_v29 }
 0x817   : > { %v1512_v9 = vsel %vm770_vm12, %v1508_v26, %v1510_v5  ;;  %v1565_v10 = vsel %vm799_vm1, %v1559_v4, %v1510_v5  ;;  %vm3970_vm12 = vmmov %vm3967_vm15  ;;  %v1822_v26 = vsel %vm3976_vm14, %v3365_v62, %v1821_v22  ;;  %v1769_v4 = vrot.slane %v3363_v61, 3 }
 0x818   : > { %v1522_v16 = vpop.permute.xlu1 %1521  ;;  %v1573_v21 = vsel %vm3968_vm11, %v1565_v10, %v1518_v57  ;;  %v1563_v17 = vsel %vm799_vm1, %v1556_v8, %v1512_v9  ;;  %v1824_v46 = vsel %vm3977_vm7, %v1823_v25, %v1822_v26  ;;  %vm3981_vm15 = vmmov %vm3979_vm5  ;;  %v1767_v57 = vrot.slane %v3361_v60, 4 }
 0x819   : > { %2643 = vmatpush3.bf16.msra.mxu1 %v1573_v21  ;;  %v1570_v23 = vsel %vm3969_vm9, %v1563_v17, %v1520_v13  ;;  %v1850_v49 = vsel %vm3981_vm15, %v3372_v3, %v1849_v47  ;;  %vm3982_vm11 = vmmov %vm3978_vm13  ;;  %vm1715_vm7 = vcmask 121856   ;;  %vm3993_vm13 = vcmask 7168  }
 0x81a   : > { %1596 = vmatprep.subr.bf16.mxu0 %v1570_v23  ;;  %v1514_v30 = vpop.permute.xlu0 %1513  ;;  %2644 = vmatprep.subr.bf16.mxu1 %v2749_v2  ;;  %v1851_v51 = vpack.c.b16 %v1850_v49, %v1850_v49  ;;  %v1781_v52 = vsel %vm3982_vm11, %v1780_v14, %v1779_v48  ;;  %vm3983_vm9 = vmmov %vm3980_vm4  ;;  %vm3996_vm15 = vcmask 1045504  }
 0x81b   : > { %v1519_v33 = vsel %vm3970_vm12, %v1514_v30, %v1516_v44  ;;  %v1825_v44 = vrot.slane %v3372_v3, 6  ;;  %v1783_v41 = vsel %vm3983_vm9, %v1782_v18, %v1781_v52  ;;  %vm3984_vm12 = vmmov %vm3979_vm5  ;;  %v1771_v3 = vrot.slane %v3369_v0, 2  ;;  %v2718_v0 = vld [vmem:[%s3920_s11] sm:$0xff]  }
 0x81c   : > { %v1526_v34 = vpop.permute.xlu1 %1525  ;;  %v1567_v35 = vsel %vm3971_vm0, %v1561_v31, %v1519_v33  ;;  %1852 = vrot.lane.b32.xlu0 %v1851_v51, %s2737_s19  ;;  %v1785_v55 = vsel %vm3984_vm12, %v1784_v43, %v1783_v41  ;;  %vm3985_vm0 = vmmov %vm3982_vm11  ;;  %vm3998_vm9 = vcmask 130048  }
 0x81d   : > { %v1592_v36 = vsel %vm791_vm8, %v1526_v34, 0  ;;  %1597 = vmatpush1.bf16.msra.mxu0 %v1567_v35  ;;  %v1826_v12 = vsel %vm3979_vm5, %v1825_v44, %v1824_v46  ;;  %v1872_v59 = vsel %vm3985_vm0, %v1871_v53, %v1870_v50  ;;  %v1786_v1 = vpack.c.b16 %v1785_v55, %v1785_v55  ;;  %vm3990_vm14 = vmmov %vm3979_vm5 }
 0x81e   : > { %2645 = vmatpush3.bf16.msra.mxu1 %v1592_v36  ;;  %v1524_v32 = vpop.permute.xlu0 %1523  ;;  %v1827_v15 = vpack.c.b16 %v1826_v12, %v1826_v12  ;;  %vm3997_vm11 = vmmov %vm3996_vm15 }
 0x81f   : > { %v1527_v37 = vsel %vm3972_vm2, %v1522_v16, %v1524_v32  ;;  %v1528_v2 = vsel %vm3973_vm6, %v1524_v32, %v1526_v34  ;;  %vm3986_vm2 = vmmov %vm3980_vm4  ;;  %2668 = vmatprep.subr.bf16.mxu1 %v2718_v0 }
 0x820   : > { %v1586_v38 = vsel %vm791_vm8, %v1527_v37, 0  ;;  %2555 = vmatprep.subr.msk.bf16.mxu0 %vm791_vm8, %v1528_v2  ;;  %1828 = vrot.lane.b32.xlu1 %v1827_v15, %s2737_s19  ;;  %v1874_v62 = vsel %vm3986_vm2, %v1873_v54, %v1872_v59  ;;  %vm3987_vm6 = vmmov %vm3979_vm5  ;;  %v1712_v44 = vpop.permute.xlu1 %1711 }
 0x821   : > { %1599 = vmatpush1.bf16.msra.mxu0 %v1586_v38  ;;  %2647 = vmatmul.mubr.msk.bf16.vlgmr.msra.gmra.mrb[12].mxu1 %vm3974_vm10, %v1575_v6  ;;  %v1876_v5 = vsel %vm3987_vm6, %v1875_v39, %v1874_v62  ;;  %vm3988_vm10 = vmmov %vm3985_vm0 }
 0x822   : > { %v1768_v63 = vsel %vm3988_vm10, %v1767_v57, %v1766_v56  ;;  %v1877_v7 = vpack.c.b16 %v1876_v5, %v1876_v5  ;;  %2650 = vmatprep.subr.bf16.mxu0 %v2718_v0  ;;  %2669 = vmatpush3.bf16.msra.mxu1 %v2718_v0  ;;  %vm3994_vm5 = vmmov %vm3993_vm13 }
 0x823   : > { %v1714_v51 = vsel %vm3994_vm5, 0, %v1712_v44  ;;  %vm3995_vm4 = vmmov %vm3994_vm5 }
 0x824   : > { %2556 = vmatmul.mubr.msk.bf16.vlgmr.msra.gmra.mrb[12].mxu0 %vm3975_vm3, %v1575_v6  ;;  %1787 = vrot.lane.b32.xlu1 %v1786_v1, %s2737_s19  ;;  %vm3989_vm3 = vmmov %vm3986_vm2  ;;  %v1725_v46 = vpop.permute.xlu1 %1724  ;;  %v1716_v41 = vsel %vm1715_vm7, %v1714_v51, 0 }
 0x825   : > { %v1770_v8 = vsel %vm3989_vm3, %v1769_v4, %v1768_v63  ;;  %1878 = vrot.lane.b32.xlu0 %v1877_v7, %s2737_s19  ;;  %2651 = vmatpush3.bf16.msra.mxu0 %v2718_v0  ;;  %v1727_v43 = vsel %vm3995_vm4, 0, %v1725_v46  ;;  %v1888_v1 = vrot.slane %v1716_v41, 4  ;;  %vm3999_vm12 = vmmov %vm3995_vm4 }
 0x826   : > { %v1772_v58 = vsel %vm3990_vm14, %v1771_v3, %v1770_v8  ;;  %v1728_v39 = vsel %vm1715_vm7, %v1727_v43, 0  ;;  %vm4000_vm0 = vmmov %vm3998_vm9 }
 0x827   : > { %v1773_v60 = vpack.c.b16 %v1772_v58, %v1772_v58  ;;  %vm4001_vm2 = vmmov %vm3995_vm4 }
 0x828   : > { %v1841_v12 = vpop.permute.xlu1 %1840  ;;  %vm4002_vm6 = vmmov %vm4001_vm2 }
 0x829   : > { %1774 = vrot.lane.b32.xlu1 %v1773_v60, %s2737_s19  ;;  %vm4003_vm10 = vmmov %vm4001_vm2 }
 0x82a   : > { %vm4004_vm3 = vmmov %vm4001_vm2 }
 0x82b   : > { %vm4005_vm14 = vmmov %vm4001_vm2 }
 0x82c   : > { %vm4007_vm5 = vmmov %vm4000_vm0 }
 0x82d   : > { %vm4008_vm4 = vmmov %vm4001_vm2 }
 0x82f   : > { %v1580_v9 = vpop.permute.xlu0 %1579 }
 0x833   : > { %v1737_v28 = vpop.permute.xlu0 %1736 }
 0x834   : > { %v1739_v50 = vsel %vm3993_vm13, 0, %v1737_v28  ;;  %vm4006_vm13 = vmmov %vm3997_vm11 }
 0x835   : > { %v1740_v53 = vsel %vm1715_vm7, %v1739_v50, 0 }
 0x836   : > { %v1895_v59 = vrot.slane %v1740_v53, 4 }
 0x837   : > { %v1817_v42 = vpop.permute.xlu0 %1816 }
 0x83b   : > { %v1801_v26 = vpop.permute.xlu0 %1800 }
 0x83f   : > { %v1762_v45 = vpop.permute.xlu0 %1761 }
 0x840   : > { %v1764_v8 = vsel %vm3999_vm12, 0, %v1762_v45  ;;  %vm4011_vm12 = vmmov %vm3997_vm11 }
 0x843   : > { %v1749_v29 = vpop.permute.xlu0 %1748 }
 0x844   : > { %v1751_v60 = vsel %vm4001_vm2, 0, %v1749_v29 }
 0x847   : > { %v3549_v47 = vpop.permute.xlu0 %1865 }
 0x88e   : > { %v3551_v14 = vpop.permute.xlu0 %1852 }
 0x892   : > { %v1829_v48 = vpop.permute.xlu1 %1828 }
 0x896   : > { %v1788_v15 = vpop.permute.xlu1 %1787 }
 0x897   : > { %v3553_v49 = vpop.permute.xlu0 %1878 }
 0x89b   : > { %v1775_v18 = vpop.permute.xlu1 %1774 }
 0x8f4   : > { %v1669_v61 = vpop.f32.mrb[12].mxu1 }
 0x8f5   : > { %v1670_v10 = vadd.f32 %v1669_v61, %v1580_v9  ;;  %v2648_v11 = vpop.f32.mrb[13].mxu1  ;;  %v1752_v61 = vsel %vm1715_vm7, %v1751_v60, 0 }
 0x8f6   : > { %v1672_v13 = vpop.f32.mrb[14].mxu1 }
 0x8f7   : > { %v1677_v16 = vmax.f32 %v1670_v10, 0.0  ;;  %v1628_v21 = vpop.f32.mrb[12].mxu0  ;;  %v2649_v17 = vpop.f32.mrb[15].mxu1 }
 0x8f8   : > { %v1629_v20 = vadd.f32 %v1628_v21, %v1580_v9  ;;  %v1630_v23 = vpop.f32.mrb[13].mxu0  ;;  %v1819_v21 = vsel %vm4003_vm10, 0, %v1817_v42  ;;  %vm4013_vm10 = vmmov %vm4001_vm2 }
 0x8f9   : > { %v1680_v24 = vmul.f32 %v1677_v16, %v3127_v27  ;;  %v1632_v30 = vpop.f32.mrb[14].mxu0  ;;  %v1631_v32 = vadd.f32 %v1630_v23, %v1580_v9  ;;  %v1765_v9 = vsel %vm1715_vm7, %v1764_v8, 0  ;;  %v1843_v16 = vsel %vm4002_vm6, 0, %v1841_v12  ;;  %vm4012_vm6 = vmmov %vm4001_vm2 }
 0x8fa   : > { %v1675_v31 = vmax.f32 %v1629_v20, 0.0  ;;  %v1633_v33 = vpop.f32.mrb[15].mxu0  ;;  %v1901_v0 = vrot.slane %v1765_v9, 4  ;;  %v1803_v23 = vsel %vm4004_vm3, 0, %v1801_v26  ;;  %v1868_v12 = vsel %vm4001_vm2, 0, %v3549_v47  ;;  %vm4014_vm3 = vmmov %vm4001_vm2 }
 0x8fb   : > { %v1683_v34 = vpack.c.bf16 %v1680_v24, %v1680_v24  ;;  %v1676_v2 = vmax.f32 %v1631_v32, 0.0  ;;  %v1831_v24 = vsel %vm4005_vm14, 0, %v1829_v48  ;;  %v1881_v51 = vsel %vm4014_vm3, 0, %v3553_v49  ;;  %vm4015_vm14 = vmmov %vm3997_vm11 }
 0x8fc   : > { %v1678_v35 = vmul.f32 %v1675_v31, %v3129_v19  ;;  %v1844_v31 = vsel %vm1715_vm7, %v1843_v16, 0  ;;  %v1869_v41 = vsel %vm1715_vm7, %v1868_v12, 0  ;;  %vm4023_vm3 = vcmask 1042434  }
 0x8fd   : > { %v1960_v36 = vrot.slane %v1683_v34, 6  ;;  %v1679_v38 = vmul.f32 %v1676_v2, %v3131_v40  ;;  %v1967_v40 = vrot.slane %v1683_v34, 2  ;;  %v1820_v34 = vsel %vm1715_vm7, %v1819_v21, 0 }
 0x8fe   : > { %v1681_v6 = vpack.c.bf16 %v1678_v35, %v1678_v35  ;;  %v1804_v35 = vsel %vm1715_vm7, %v1803_v23, 0 }
 0x8ff   : > { %1963 = vrot.lane.b32.xlu0 %v1960_v36, %s2753_s28  ;;  %v1682_v19 = vpack.c.bf16 %v1679_v38, %v1679_v38  ;;  %v1832_v36 = vsel %vm1715_vm7, %v1831_v24, 0  ;;  %v1944_v38 = vrot.slane %v1820_v34, 4 }
 0x900   : > { %v1884_v37 = vrot.slane %v1681_v6, 6  ;;  %v1889_v27 = vrot.slane %v1681_v6, 2  ;;  %v1950_v6 = vrot.slane %v1844_v31, 4 }
 0x901   : > { %v1940_v22 = vrot.slane %v1682_v19, 6  ;;  %v1909_v25 = vrot.slane %v1682_v19, 2 }
 0x902   : > { %1885 = vrot.lane.b32.xlu1 %v1884_v37, %s2745_s30  ;;  %s3992_s30 = smov 37  }
 0x903   : > { %1892 = vrot.lane.b32.xlu0 %v1884_v37, %s2742_s27  ;;  %s2755_s27 = smov 57  }
 0x906   : > { %1896 = vrot.lane.b32.xlu1 %v1889_v27, %s2741_s26  ;;  %s2757_s26 = smov 39  }
 0x907   : > { %1890 = vrot.lane.b32.xlu0 %v1889_v27, %s2744_s29  ;;  %s2758_s29 = smov 93  }
 0x90a   : > { %1898 = vrot.lane.b32.xlu1 %v1884_v37, %s3991_s13 }
 0x90b   : > { %1910 = vrot.lane.b32.xlu0 %v1889_v27, %s2737_s19 }
 0x90e   : > { %1904 = vrot.lane.b32.xlu1 %v1884_v37, %s2738_s20  ;;  %s2760_s20 = smov 21   ;;  %v1790_v37 = vsel %vm4008_vm4, 0, %v1788_v15  ;;  %v1855_v15 = vsel %vm4012_vm6, 0, %v3551_v14  ;;  %v1882_v14 = vsel %vm1715_vm7, %v1881_v51, 0  ;;  %vm4017_vm4 = vmmov %vm3997_vm11  ;;  %vm2437_vm6 = vcmask 523270  }
 0x90f   : > { %1941 = vrot.lane.b32.xlu0 %v1940_v22, %s2754_s24  ;;  %v1856_v47 = vsel %vm1715_vm7, %v1855_v15, 0 }
 0x912   : > { %1902 = vrot.lane.b32.xlu1 %v1889_v27, %s3992_s30 }
 0x913   : > { %1951 = vrot.lane.b32.xlu0 %v1909_v25, %s2755_s27 }
 0x916   : > { %1947 = vrot.lane.b32.xlu1 %v1940_v22, %s2756_s25 }
 0x917   : > { %1953 = vrot.lane.b32.xlu0 %v1940_v22, %s2757_s26 }
 0x91a   : > { %1945 = vrot.lane.b32.xlu1 %v1909_v25, %s2758_s29 }
 0x91b   : > { %1968 = vrot.lane.b32.xlu0 %v1967_v40, %s2759_s14 }
 0x91e   : > { %1912 = vrot.lane.b32.xlu1 %v1909_v25, %s2737_s19  ;;  %s2761_s19 = smov 32  }
 0x922   : > { %1961 = vrot.lane.b32.xlu1 %v1940_v22, %s2753_s28 }
 0x926   : > { %1957 = vrot.lane.b32.xlu1 %v1909_v25, %s2760_s20  ;;  %v1791_v25 = vsel %vm1715_vm7, %v1790_v37, 0 }
 0x927   : > { %v1907_v29 = vrot.slane %v1791_v25, 4 }
 0x971   : > { %v3557_v52 = vpop.permute.xlu0 %1963 }
 0x974   : > { %v1886_v54 = vpop.permute.xlu1 %1885 }
 0x975   : > { %v1893_v55 = vpop.permute.xlu0 %1892  ;;  %v1917_v56 = vsel %vm791_vm8, 0, %v1886_v54 }
 0x976   : > { %v1923_v57 = vsel %vm791_vm8, %v1728_v39, %v1893_v55  ;;  %v1919_v5 = vsel %vm799_vm1, %v1917_v56, %v1888_v1 }
 0x977   : > { %v1925_v4 = vsel %vm799_vm1, %v1923_v57, %v1895_v59  ;;  %v1956_v59 = vrot.slane %v1869_v41, 4 }
 0x978   : > { %v1897_v62 = vpop.permute.xlu1 %1896 }
 0x979   : > { %v1891_v63 = vpop.permute.xlu0 %1890  ;;  %v1927_v7 = vsel %vm3997_vm11, %v1925_v4, %v1897_v62 }
 0x97a   : > { %v1921_v3 = vsel %vm3996_vm15, %v1919_v5, %v1891_v63  ;;  %vm4009_vm15 = vmmov %vm4001_vm2  ;;  %vm2415_vm2 = vcmask 523269  }
 0x97b   : > { %2652 = vmatprep.mubr.msk.bf16.mxu0 %vm3998_vm9, %v1921_v3  ;;  %v1777_v19 = vsel %vm4009_vm15, 0, %v1775_v18  ;;  %vm4010_vm9 = vmmov %vm4000_vm0 }
 0x97c   : > { %v1899_v58 = vpop.permute.xlu1 %1898  ;;  %2653 = vmatmul.mubr.msk.bf16.vlgmr.msra.gmra.mrb[16].mxu0 %vm4000_vm0, %v1927_v7  ;;  %v1778_v26 = vsel %vm1715_vm7, %v1777_v19, 0  ;;  %vm4018_vm15 = vmmov %vm4000_vm0 }
 0x97d   : > { %v1911_v10 = vpop.permute.xlu0 %1910  ;;  %v1929_v13 = vsel %vm791_vm8, %v1752_v61, %v1899_v58  ;;  %vm4020_vm7 = vmmov %vm4000_vm0 }
 0x97e   : > { %v1931_v20 = vsel %vm799_vm1, %v1929_v13, %v1901_v0 }
 0x980   : > { %v1905_v11 = vpop.permute.xlu1 %1904 }
 0x981   : > { %v1942_v33 = vpop.permute.xlu0 %1941  ;;  %v1935_v45 = vsel %vm791_vm8, %v1778_v26, %v1905_v11 }
 0x982   : > { %v1971_v2 = vsel %vm791_vm8, %v1804_v35, %v1942_v33  ;;  %v1937_v18 = vsel %vm799_vm1, %v1935_v45, %v1907_v29 }
 0x983   : > { %v1973_v42 = vsel %vm799_vm1, %v1971_v2, %v1944_v38 }
 0x984   : > { %v1903_v17 = vpop.permute.xlu1 %1902 }
 0x985   : > { %v1933_v30 = vsel %vm4006_vm13, %v1931_v20, %v1903_v17  ;;  %v1952_v40 = vpop.permute.xlu0 %1951  ;;  %vm1965_vm13 = vcmask 23552  }
 0x986   : > { %2656 = vmatprep.mubr.msk.bf16.mxu0 %vm4007_vm5, %v1933_v30  ;;  %vm4016_vm5 = vmmov %vm4000_vm0 }
 0x988   : > { %v1948_v32 = vpop.permute.xlu1 %1947 }
 0x989   : > { %v1977_v27 = vsel %vm791_vm8, %v1832_v36, %v1948_v32  ;;  %v1954_v43 = vpop.permute.xlu0 %1953 }
 0x98a   : > { %v1979_v22 = vsel %vm799_vm1, %v1977_v27, %v1950_v6  ;;  %v1983_v39 = vsel %vm791_vm8, %v1856_v47, %v1954_v43 }
 0x98b   : > { %v1981_v46 = vsel %vm4011_vm12, %v1979_v22, %v1952_v40  ;;  %v1985_v1 = vsel %vm799_vm1, %v1983_v39, %v1956_v59  ;;  %vm2285_vm12 = vcmask 1045509  }
 0x98c   : > { %v1946_v28 = vpop.permute.xlu1 %1945 }
 0x98d   : > { %v1975_v44 = vsel %vm3997_vm11, %v1973_v42, %v1946_v28  ;;  %v1969_v62 = vpop.permute.xlu0 %1968  ;;  %vm4019_vm11 = vmmov %vm4017_vm4 }
 0x98e   : > { %2660 = vmatprep.mubr.msk.bf16.mxu1 %vm4010_vm9, %v1975_v44  ;;  %vm2459_vm9 = vcmask 523271  }
 0x98f   : > { %2661 = vmatmul.mubr.msk.bf16.vlgmr.msra.gmra.mrb[16].mxu1 %vm4000_vm0, %v1981_v46  ;;  %vm4021_vm0 = vcmask 1041409  }
 0x990   : > { %v1913_v48 = vpop.permute.xlu1 %1912 }
 0x991   : > { %v1915_v50 = vsel %vm4013_vm10, %v1911_v10, %v1913_v48  ;;  %vm4022_vm10 = vmmov %vm4021_vm0 }
 0x992   : > { %v1939_v53 = vsel %vm4015_vm14, %v1937_v18, %v1915_v50  ;;  %vm4024_vm14 = vcmask 1043459  }
 0x993   : > { %2657 = vmatmul.mubr.msk.bf16.gmra.mrb[20].mxu0 %vm4016_vm5, %v1939_v53  ;;  %vm4026_vm5 = vmmov %vm4024_vm14 }
 0x994   : > { %v1962_v54 = vpop.permute.xlu1 %1961 }
 0x995   : > { %v1966_v55 = vsel %vm1965_vm13, %v1962_v54, %v3557_v52  ;;  %vm4025_vm13 = vmmov %vm4023_vm3 }
 0x996   : > { %v1989_v49 = vsel %vm791_vm8, %v1882_v14, %v1966_v55  ;;  %vm2242_vm8 = vcmask 261120  }
 0x997   : > { %v1990_v56 = vsel %vm799_vm1, %v1989_v49, 0  ;;  %vm2282_vm1 = vcmask 1044484  }
 0x998   : > { %v1958_v57 = vpop.permute.xlu1 %1957  ;;  %v1992_v5 = vsel %vm4019_vm11, %v1990_v56, %v1969_v62 }
 0x999   : > { %v1987_v4 = vsel %vm4017_vm4, %v1985_v1, %v1958_v57  ;;  %vm4027_vm4 = vcmask 1046534  }
 0x99a   : > { %2664 = vmatprep.mubr.msk.bf16.mxu1 %vm4018_vm15, %v1987_v4  ;;  %vm4028_vm15 = vcmask 1047559   ;;  %vm4029_vm11 = vmmov %vm4027_vm4 }
 0x99b   : > { %2665 = vmatmul.mubr.msk.bf16.gmra.mrb[20].mxu1 %vm4020_vm7, %v1992_v5  ;;  %vm4030_vm7 = vmmov %vm4028_vm15 }
 0xa4f   : > { %v2654_v63 = vpop.f32.mrb[16].mxu0 }
 0xa50   : > { %v2051_v3 = vpop.f32.mrb[17].mxu0  ;;  %v2116_v58 = vmul.f32 0.25, %v2654_v63  ;;  %v2131_v60 = vmul.f32 0.75, %v2654_v63 }
 0xa51   : > { %v2114_v52 = vmul.f32 0.25, %v2051_v3  ;;  %v2129_v7 = vmul.f32 0.75, %v2051_v3  ;;  %v2655_v8 = vpop.f32.mrb[18].mxu0 }
 0xa52   : > { %v2117_v9 = vmul.f32 0.25, %v2655_v8  ;;  %v2132_v61 = vmul.f32 0.75, %v2655_v8  ;;  %v2054_v10 = vpop.f32.mrb[19].mxu0 }
 0xa53   : > { %v3622_v11 = vadd.f32 %v2129_v7, %v2114_v52  ;;  %v2115_v13 = vmul.f32 0.25, %v2054_v10  ;;  %v2130_v0 = vmul.f32 0.75, %v2054_v10 }
 0xa54   : > { %v3624_v16 = vadd.f32 %v2132_v61, %v2116_v58  ;;  %v2164_v21 = vadd.f32 %v2131_v60, %v2117_v9 }
 0xa55   : > { %v3626_v17 = vadd.f32 %v2130_v0, %v2114_v52  ;;  %v3628_v20 = vadd.f32 %v2131_v60, %v2115_v13  ;;  %v2162_v23 = vadd.f32 %v2129_v7, %v2115_v13  ;;  %v2163_v24 = vadd.f32 %v2130_v0, %v2116_v58 }
 0xa56   : > { %2198 = vrot.lane.b32.xlu0 %v2164_v21, %s2761_s19 }
 0xa57   : > { %2196 = vrot.lane.b32.xlu1 %v2163_v24, %s2761_s19 }
 0xa5a   : > { %2194 = vrot.lane.b32.xlu0 %v2162_v23, %s2761_s19 }
 0xa62   : > { %v2662_v30 = vpop.f32.mrb[16].mxu1 }
 0xa63   : > { %v2083_v31 = vpop.f32.mrb[17].mxu1  ;;  %v2124_v34 = vmul.f32 0.25, %v2662_v30  ;;  %v2139_v35 = vmul.f32 0.75, %v2662_v30 }
 0xa64   : > { %v2663_v33 = vpop.f32.mrb[18].mxu1  ;;  %v2122_v37 = vmul.f32 0.25, %v2083_v31  ;;  %v2137_v2 = vmul.f32 0.75, %v2083_v31 }
 0xa65   : > { %v2125_v36 = vmul.f32 0.25, %v2663_v33  ;;  %v2140_v32 = vmul.f32 0.75, %v2663_v33  ;;  %v2086_v6 = vpop.f32.mrb[19].mxu1 }
 0xa66   : > { %v2123_v27 = vmul.f32 0.25, %v2086_v6  ;;  %v2138_v38 = vmul.f32 0.75, %v2086_v6  ;;  %v2658_v19 = vpop.f32.mrb[20].mxu0 }
 0xa67   : > { %v3633_v22 = vadd.f32 %v2140_v32, %v2124_v34  ;;  %v2172_v25 = vadd.f32 %v2139_v35, %v2125_v36  ;;  %v2120_v40 = vmul.f32 0.25, %v2658_v19  ;;  %v2067_v28 = vpop.f32.mrb[21].mxu0  ;;  %v2135_v50 = vmul.f32 0.75, %v2658_v19 }
 0xa68   : > { %v3635_v42 = vadd.f32 %v2138_v38, %v2122_v37  ;;  %v3637_v26 = vadd.f32 %v2139_v35, %v2123_v27  ;;  %v2170_v44 = vadd.f32 %v2137_v2, %v2123_v27  ;;  %v2171_v45 = vadd.f32 %v2138_v38, %v2124_v34  ;;  %v2659_v46 = vpop.f32.mrb[22].mxu0 }
 0xa69   : > { %v2118_v29 = vmul.f32 0.25, %v2067_v28  ;;  %v2133_v12 = vmul.f32 0.75, %v2067_v28  ;;  %v2121_v48 = vmul.f32 0.25, %v2659_v46  ;;  %v2136_v15 = vmul.f32 0.75, %v2659_v46  ;;  %v2070_v18 = vpop.f32.mrb[23].mxu0  ;;  %2214 = vrot.lane.b32.xlu1 %v2172_v25, %s2761_s19 }
 0xa6a   : > { %v2119_v51 = vmul.f32 0.25, %v2070_v18  ;;  %v2134_v43 = vmul.f32 0.75, %v2070_v18  ;;  %2212 = vrot.lane.b32.xlu0 %v2171_v45, %s2761_s19 }
 0xa6b   : > { %v3641_v53 = vadd.f32 %v2133_v12, %v2117_v9  ;;  %v2165_v41 = vadd.f32 %v2132_v61, %v2118_v29  ;;  %v3643_v47 = vadd.f32 %v2136_v15, %v2120_v40  ;;  %v3645_v54 = vadd.f32 %v2137_v2, %v2121_v48 }
 0xa6c   : > { %v2168_v14 = vadd.f32 %v2135_v50, %v2121_v48  ;;  %v2169_v39 = vadd.f32 %v2136_v15, %v2122_v37  ;;  %v3647_v55 = vadd.f32 %v2134_v43, %v2118_v29  ;;  %v3649_v59 = vadd.f32 %v2135_v50, %v2119_v51 }
 0xa6d   : > { %v2166_v49 = vadd.f32 %v2133_v12, %v2119_v51  ;;  %v2167_v56 = vadd.f32 %v2134_v43, %v2120_v40  ;;  %2210 = vrot.lane.b32.xlu1 %v2170_v44, %s2761_s19 }
 0xa6e   : > { %2206 = vrot.lane.b32.xlu0 %v2168_v14, %s2761_s19  ;;  %v2666_v57 = vpop.f32.mrb[20].mxu1 }
 0xa6f   : > { %v2099_v1 = vpop.f32.mrb[21].mxu1  ;;  %v2128_v63 = vmul.f32 0.25, %v2666_v57  ;;  %v2143_v3 = vmul.f32 0.75, %v2666_v57 }
 0xa70   : > { %v2126_v62 = vmul.f32 0.25, %v2099_v1  ;;  %v2141_v4 = vmul.f32 0.75, %v2099_v1  ;;  %v2667_v5 = vpop.f32.mrb[22].mxu1 }
 0xa71   : > { %v2144_v52 = vmul.f32 0.75, %v2667_v5  ;;  %v2161_v7 = vmul.f32 0.25, %v2667_v5  ;;  %2200 = vrot.lane.b32.xlu1 %v2165_v41, %s2761_s19  ;;  %v2102_v8 = vpop.f32.mrb[23].mxu1 }
 0xa72   : > { %v3654_v58 = vadd.f32 %v2141_v4, %v2125_v36  ;;  %v2173_v60 = vadd.f32 %v2140_v32, %v2126_v62  ;;  %v2127_v9 = vmul.f32 0.25, %v2102_v8  ;;  %v2142_v61 = vmul.f32 0.75, %v2102_v8 }
 0xa73   : > { %v3656_v10 = vadd.f32 %v2144_v52, %v2128_v63  ;;  %v2176_v13 = vadd.f32 %v2161_v7, %v2143_v3  ;;  %v2177_v30 = vadd.f32 %v2161_v7, %v2144_v52 }
 0xa74   : > { %v3658_v0 = vadd.f32 %v2142_v61, %v2126_v62  ;;  %v3660_v21 = vadd.f32 %v2143_v3, %v2127_v9  ;;  %v2174_v23 = vadd.f32 %v2141_v4, %v2127_v9  ;;  %v2175_v24 = vadd.f32 %v2142_v61, %v2128_v63  ;;  %2216 = vrot.lane.b32.xlu0 %v2173_v60, %s2761_s19 }
 0xa75   : > { %2208 = vrot.lane.b32.xlu1 %v2169_v39, %s2761_s19 }
 0xa78   : > { %2202 = vrot.lane.b32.xlu0 %v2166_v49, %s2761_s19 }
 0xa79   : > { %2204 = vrot.lane.b32.xlu1 %v2167_v56, %s2761_s19 }
 0xa7c   : > { %2220 = vrot.lane.b32.xlu0 %v2175_v24, %s2761_s19 }
 0xa7d   : > { %2218 = vrot.lane.b32.xlu1 %v2174_v23, %s2761_s19 }
 0xa80   : > { %2224 = vrot.lane.b32.xlu0 %v2177_v30, %s2761_s19 }
 0xa81   : > { %2222 = vrot.lane.b32.xlu1 %v2176_v13, %s2761_s19 }
 0xac8   : > { %v2199_v31 = vpop.permute.xlu0 %2198 }
 0xac9   : > { %v2245_v33 = vsel %vm2242_vm8, %v3628_v20, %v2199_v31  ;;  %v2197_v34 = vpop.permute.xlu1 %2196 }
 0xaca   : > { %v2277_v35 = vrot.slane %v2245_v33, 6  ;;  %v2244_v36 = vsel %vm2242_vm8, %v3626_v17, %v2197_v34 }
 0xacb   : > { %v2275_v32 = vrot.slane %v2244_v36, 7 }
 0xacc   : > { %v2195_v6 = vpop.permute.xlu0 %2194 }
 0xacd   : > { %v2442_v37 = vsel %vm4021_vm0, %v2277_v35, %v2275_v32  ;;  %v2243_v20 = vsel %vm2242_vm8, %v3622_v11, %v2195_v6 }
 0xace   : > { %v2276_v17 = vsel %vm4022_vm10, %v2275_v32, %v2243_v20  ;;  %v2310_v2 = vsel %vm4023_vm3, %v2275_v32, %v2243_v20  ;;  %v2332_v27 = vsel %vm4024_vm14, %v2275_v32, %v2243_v20  ;;  %v2354_v38 = vsel %vm2282_vm1, %v2275_v32, %v2243_v20  ;;  %2585 = vst.msk [vmem:[%s3678_s17 + $0x69] sm:$0x80] %vm2459_vm9, %v2243_v20  ;;  %vm4031_vm9 = vmmov %vm4021_vm0 }
 0xacf   : > { %v2278_v19 = vsel %vm4025_vm13, %v2277_v35, %v2276_v17  ;;  %v2311_v25 = vsel %vm4026_vm5, %v2277_v35, %v2310_v2  ;;  %v2333_v40 = vsel %vm2282_vm1, %v2277_v35, %v2332_v27  ;;  %v2355_v28 = vsel %vm2285_vm12, %v2277_v35, %v2354_v38  ;;  %vm4033_vm10 = vmmov %vm4026_vm5 }
 0xad0   : > { %v2376_v11 = vsel %vm2285_vm12, %v2275_v32, %v2243_v20  ;;  %v2398_v44 = vsel %vm4027_vm4, %v2275_v32, %v2243_v20  ;;  %v2420_v45 = vsel %vm4028_vm15, %v2275_v32, %v2243_v20  ;;  %vm4035_vm14 = vmmov %vm4030_vm7  ;;  %vm2307_vm15 = vcmask 523264  }
 0xad1   : > { %v2377_v46 = vsel %vm4029_vm11, %v2277_v35, %v2376_v11  ;;  %v2399_v29 = vsel %vm4030_vm7, %v2277_v35, %v2398_v44  ;;  %2582 = vst.msk [vmem:[%s3678_s17 + $0x5a] sm:$0xc0] %vm2437_vm6, %v2420_v45  ;;  %vm2393_vm6 = vcmask 523268   ;;  %vm4036_vm13 = vmmov %vm4021_vm0  ;;  %vm2327_vm11 = vcmask 523265  }
 0xad2   : > { %2579 = vst.msk [vmem:[%s3678_s17 + $0x4b] sm:$0xe0] %vm2415_vm2, %v2399_v29  ;;  %vm4032_vm2 = vmmov %vm4023_vm3 }
 0xad3   : > { %vm4034_vm3 = vmmov %vm4027_vm4  ;;  %vm2371_vm4 = vcmask 523267  }
 0xad4   : > { %vm4037_vm5 = vmmov %vm4032_vm2 }
 0xad5   : > { %vm4038_vm7 = vmmov %vm4033_vm10 }
 0xadb   : > { %v2215_v12 = vpop.permute.xlu1 %2214 }
 0xadc   : > { %v2253_v48 = vsel %vm2242_vm8, %v3637_v26, %v2215_v12  ;;  %v2213_v15 = vpop.permute.xlu0 %2212 }
 0xadd   : > { %v3703_v18 = vrot.slane %v2253_v48, 6  ;;  %v2252_v50 = vsel %vm2242_vm8, %v3635_v42, %v2213_v15 }
 0xade   : > { %v3707_v51 = vrot.slane %v2252_v50, 7 }
 0xadf   : > { %v2211_v43 = vpop.permute.xlu1 %2210 }
 0xae0   : > { %v2449_v41 = vsel %vm4031_vm9, %v3703_v18, %v3707_v51  ;;  %v3714_v14 = vsel %vm2242_vm8, %v3645_v54, %v2211_v43  ;;  %v2207_v49 = vpop.permute.xlu0 %2206  ;;  %vm4039_vm9 = vmmov %vm4021_vm0 }
 0xae1   : > { %v2292_v26 = vsel %vm4021_vm0, %v3707_v51, %v3714_v14  ;;  %v2249_v1 = vsel %vm2242_vm8, %v3649_v59, %v2207_v49  ;;  %vm4040_vm0 = vmmov %vm4032_vm2 }
 0xae2   : > { %v2294_v39 = vsel %vm4032_vm2, %v3703_v18, %v2292_v26  ;;  %v2287_v9 = vrot.slane %v2249_v1, 2  ;;  %vm4041_vm2 = vmmov %vm4039_vm9 }
 0xae3   : > { %v2201_v42 = vpop.permute.xlu1 %2200 }
 0xae4   : > { %v2246_v56 = vsel %vm2242_vm8, %v3624_v16, %v2201_v42 }
 0xae5   : > { %v2279_v57 = vrot.slane %v2246_v56, 5 }
 0xae6   : > { %v2217_v54 = vpop.permute.xlu0 %2216 }
 0xae7   : > { %v2280_v62 = vsel %vm4033_vm10, %v2279_v57, %v2278_v19  ;;  %v2312_v4 = vsel %vm2282_vm1, %v2279_v57, %v2311_v25  ;;  %v2334_v5 = vsel %vm2285_vm12, %v2279_v57, %v2333_v40  ;;  %v2356_v63 = vsel %vm4034_vm3, %v2279_v57, %v2355_v28  ;;  %v2209_v3 = vpop.permute.xlu1 %2208  ;;  %vm4043_vm10 = vmmov %vm4040_vm0 }
 0xae8   : > { %v2378_v52 = vsel %vm4035_vm14, %v2279_v57, %v2377_v46  ;;  %v2421_v7 = vsel %vm4036_vm13, %v2279_v57, %v2277_v35  ;;  %v2443_v16 = vsel %vm4037_vm5, %v2279_v57, %v2442_v37  ;;  %v2254_v59 = vsel %vm2242_vm8, %v3633_v22, %v2217_v54  ;;  %vm4044_vm3 = vmmov %vm4040_vm0 }
 0xae9   : > { %2576 = vst.msk [vmem:[%s3678_s17 + $0x3c] sm:$0xf0] %vm2393_vm6, %v2378_v52  ;;  %v3735_v8 = vrot.slane %v2254_v59, 5  ;;  %v2250_v60 = vsel %vm2242_vm8, %v3643_v47, %v2209_v3  ;;  %vm4042_vm6 = vmmov %vm4041_vm2  ;;  %vm2349_vm14 = vcmask 523266   ;;  %vm4046_vm5 = vcmask 1046534  }
 0xaea   : > { %v2289_v61 = vrot.slane %v2250_v60, 1  ;;  %v2203_v13 = vpop.permute.xlu0 %2202  ;;  %vm4045_vm13 = vmmov %vm4038_vm7 }
 0xaeb   : > { %v3741_v23 = vsel %vm4038_vm7, %v3735_v8, %v2294_v39  ;;  %v3746_v22 = vsel %vm4039_vm9, %v3735_v8, %v3703_v18  ;;  %v3750_v24 = vsel %vm4040_vm0, %v3735_v8, %v2449_v41  ;;  %v2247_v47 = vsel %vm2242_vm8, %v3641_v53, %v2203_v13  ;;  %v2205_v30 = vpop.permute.xlu1 %2204  ;;  %vm4048_vm9 = vmmov %vm4041_vm2 }
 0xaec   : > { %v2316_v31 = vsel %vm4041_vm2, %v3714_v14, %v2289_v61  ;;  %v2337_v33 = vsel %vm4042_vm6, %v2289_v61, %v2287_v9  ;;  %v2281_v34 = vrot.slane %v2247_v47, 4  ;;  %v2248_v35 = vsel %vm2242_vm8, %v3647_v55, %v2205_v30  ;;  %vm4049_vm2 = vmmov %vm4045_vm13 }
 0xaed   : > { %v2317_v36 = vsel %vm4043_vm10, %v3707_v51, %v2316_v31  ;;  %v2338_v32 = vsel %vm4044_vm3, %v3714_v14, %v2337_v33  ;;  %v2284_v6 = vrot.slane %v2248_v35, 3  ;;  %vm4047_vm7 = vcmask 1047559   ;;  %vm4050_vm6 = vmmov %vm4046_vm5 }
 0xaee   : > { %v2339_v53 = vsel %vm4045_vm13, %v3707_v51, %v2338_v32  ;;  %v2283_v37 = vsel %vm2282_vm1, %v2281_v34, %v2280_v62  ;;  %v2313_v20 = vsel %vm2285_vm12, %v2281_v34, %v2312_v4  ;;  %v2335_v17 = vsel %vm4046_vm5, %v2281_v34, %v2334_v5  ;;  %vm4051_vm10 = vmmov %vm4047_vm7  ;;  %v2221_v29 = vpop.permute.xlu0 %2220 }
 0xaef   : > { %v2357_v55 = vsel %vm4047_vm7, %v2281_v34, %v2356_v63  ;;  %v2400_v2 = vsel %vm4048_vm9, %v2281_v34, %v2279_v57  ;;  %v2422_v27 = vsel %vm4040_vm0, %v2281_v34, %v2421_v7  ;;  %v2444_v38 = vsel %vm4049_vm2, %v2281_v34, %v2443_v16  ;;  %vm4052_vm3 = vmmov %vm4048_vm9  ;;  %v2219_v12 = vpop.permute.xlu1 %2218 }
 0xaf0   : > { %2573 = vst.msk [vmem:[%s3678_s17 + $0x2d] sm:$0xf8] %vm2371_vm4, %v2357_v55  ;;  %v2286_v19 = vsel %vm2285_vm12, %v2284_v6, %v2283_v37  ;;  %v2314_v25 = vsel %vm4050_vm6, %v2284_v6, %v2313_v20  ;;  %v2336_v40 = vsel %vm4051_vm10, %v2284_v6, %v2335_v17  ;;  %v2358_v28 = vsel %vm4052_vm3, %v2287_v9, %v2284_v6  ;;  %vm4053_vm13 = vmmov %vm4046_vm5 }
 0xaf1   : > { %v2288_v11 = vsel %vm4053_vm13, %v2287_v9, %v2286_v19  ;;  %vm4054_vm5 = vmmov %vm4047_vm7  ;;  %2570 = vst.msk [vmem:[%s3678_s17 + $0x1e] sm:$0xfc] %vm2349_vm14, %v2336_v40  ;;  %v2445_v49 = vsel %vm2282_vm1, %v2284_v6, %v2444_v38  ;;  %v2255_v47 = vsel %vm2242_vm8, %v3654_v58, %v2219_v12  ;;  %v2340_v31 = vsel %vm2282_vm1, %v3703_v18, %v2339_v53 }
 0xaf2   : > { %v2315_v44 = vsel %vm4054_vm5, %v2287_v9, %v2314_v25  ;;  %vm4055_vm7 = vmmov %vm4040_vm0  ;;  %v2446_v1 = vsel %vm2285_vm12, %v2287_v9, %v2445_v49 }
 0xaf3   : > { %v2359_v45 = vsel %vm4055_vm7, %v2289_v61, %v2358_v28  ;;  %vm4056_vm9 = vmmov %vm4052_vm3  ;;  %2567 = vst.msk [vmem:[%s3678_s17 + $0xf] sm:$0xfe] %vm2327_vm11, %v2315_v44  ;;  %vm2330_vm11 = vcmask 516096   ;;  %v2447_v5 = vsel %vm4053_vm13, %v2289_v61, %v2446_v1  ;;  %v2223_v13 = vpop.permute.xlu1 %2222 }
 0xaf4   : > { %v2379_v46 = vsel %vm4056_vm9, %v2284_v6, %v2281_v34  ;;  %vm4057_vm4 = vmmov %vm4054_vm5  ;;  %v2341_v34 = vsel %vm2285_vm12, %v3735_v8, %v2340_v31  ;;  %v2257_v32 = vsel %vm2242_vm8, %v3660_v21, %v2223_v13 }
 0xaf5   : > { %v2290_v48 = vsel %vm4057_vm4, %v2289_v61, %v2288_v11  ;;  %vm4058_vm0 = vmmov %vm4049_vm2  ;;  %v2448_v7 = vsel %vm4057_vm4, %v3714_v14, %v2447_v5 }
 0xaf6   : > { %v2360_v15 = vsel %vm4058_vm0, %v3714_v14, %v2359_v45  ;;  %vm4059_vm2 = vmmov %vm4055_vm7  ;;  %2308 = vst.msk [vmem:[%s3678_s17] sm:$0xff] %vm2307_vm15, %v2290_v48 }
 0xaf7   : > { %v2380_v50 = vsel %vm4059_vm2, %v2287_v9, %v2379_v46  ;;  %vm4060_vm6 = vmmov %vm4059_vm2  ;;  %2586 = vst.msk [vmem:[%s3678_s17 + $0x71] sm:$0xff] %vm2307_vm15, %v2448_v7  ;;  %v2361_v35 = vsel %vm2282_vm1, %v3707_v51, %v2360_v15 }
 0xaf8   : > { %v2401_v43 = vsel %vm4060_vm6, %v2284_v6, %v2400_v2  ;;  %vm4061_vm14 = vmmov %vm4058_vm0  ;;  %v2362_v58 = vsel %vm2285_vm12, %v3703_v18, %v2361_v35 }
 0xaf9   : > { %v2381_v41 = vsel %vm4061_vm14, %v2289_v61, %v2380_v50  ;;  %vm4062_vm10 = vmmov %vm4058_vm0 }
 0xafa   : > { %v2402_v26 = vsel %vm4062_vm10, %v2287_v9, %v2401_v43  ;;  %vm4063_vm3 = vmmov %vm4058_vm0  ;;  %v2382_v42 = vsel %vm2282_vm1, %v3714_v14, %v2381_v41  ;;  %vm2352_vm0 = vcmask 517120   ;;  %vm2374_vm10 = vcmask 518144  }
 0xafb   : > { %v2423_v39 = vsel %vm4063_vm3, %v2284_v6, %v2422_v27  ;;  %v2403_v56 = vsel %vm2282_vm1, %v2289_v61, %v2402_v26  ;;  %v2383_v54 = vsel %vm2285_vm12, %v3707_v51, %v2382_v42  ;;  %vm4064_vm5 = vmmov %vm4053_vm13  ;;  %v2318_v30 = vsel %vm4063_vm3, %v3703_v18, %v2317_v36 }
 0xafc   : > { %v2424_v57 = vsel %vm2282_vm1, %v2287_v9, %v2423_v39  ;;  %v2404_v62 = vsel %vm2285_vm12, %v3714_v14, %v2403_v56  ;;  %v2384_v63 = vsel %vm4064_vm5, %v3703_v18, %v2383_v54  ;;  %vm4065_vm7 = vmmov %vm4064_vm5  ;;  %v2256_v9 = vsel %vm2242_vm8, %v3658_v0, %v2221_v29 }
 0xafd   : > { %v2425_v4 = vsel %vm2285_vm12, %v2289_v61, %v2424_v57  ;;  %v2405_v3 = vsel %vm4065_vm7, %v3707_v51, %v2404_v62  ;;  %vm4066_vm9 = vmmov %vm4064_vm5  ;;  %v2225_v61 = vpop.permute.xlu0 %2224  ;;  %v2297_v0 = vrot.slane %v2255_v47, 4  ;;  %v2319_v33 = vsel %vm2282_vm1, %v3735_v8, %v2318_v30 }
 0xafe   : > { %v2426_v52 = vsel %vm4066_vm9, %v3714_v14, %v2425_v4  ;;  %vm4067_vm2 = vmmov %vm4057_vm4  ;;  %v2299_v14 = vrot.slane %v2256_v9, 3  ;;  %v2258_v36 = vsel %vm2242_vm8, %v3656_v10, %v2225_v61  ;;  %vm2396_vm13 = vcmask 519168  }
 0xaff   : > { %v2385_v16 = vsel %vm4067_vm2, %v3735_v8, %v2384_v63  ;;  %vm4068_vm6 = vmmov %vm4067_vm2  ;;  %v2298_v6 = vsel %vm2282_vm1, %v2297_v0, %v3741_v23  ;;  %v2320_v53 = vsel %vm2285_vm12, %v2297_v0, %v2319_v33  ;;  %v2342_v37 = vsel %vm4064_vm5, %v2297_v0, %v2341_v34 }
 0xb00   : > { %v2406_v59 = vsel %vm4068_vm6, %v3703_v18, %v2405_v3  ;;  %vm4069_vm14 = vmmov %vm4067_vm2  ;;  %2577 = vst.msk [vmem:[%s3678_s17 + $0x44] sm:$0xff] %vm2307_vm15, %v2385_v16  ;;  %vm4075_vm8 = vcmask 1042434   ;;  %v2303_v55 = vrot.slane %v2258_v36, 1  ;;  %v2300_v2 = vsel %vm2285_vm12, %v2299_v14, %v2298_v6 }
 0xb01   : > { %v2427_v60 = vsel %vm4069_vm14, %v3707_v51, %v2426_v52  ;;  %2580 = vst.msk [vmem:[%s3678_s17 + $0x53] sm:$0xff] %vm2307_vm15, %v2406_v59  ;;  %vm4070_vm7 = vmmov %vm4064_vm5  ;;  %v2429_v23 = vsel %vm4075_vm8, %v2297_v0, %v3746_v22  ;;  %v2301_v27 = vrot.slane %v2257_v32, 2 }
 0xb02   : > { %2583 = vst.msk [vmem:[%s3678_s17 + $0x62] sm:$0xff] %vm2307_vm15, %v2427_v60  ;;  %v2363_v51 = vsel %vm4070_vm7, %v3735_v8, %v2362_v58  ;;  %vm4071_vm9 = vmmov %vm4067_vm2 }
 0xb03   : > { %v2343_v18 = vsel %vm4071_vm9, %v2299_v14, %v2342_v37  ;;  %vm4072_vm4 = vmmov %vm4067_vm2  ;;  %vm4073_vm2 = vcmask 1041409   ;;  %2569 = vst.msk [vmem:[%s3678_s17 + $0x1f] sm:$0x1] %vm2330_vm11, %v2303_v55  ;;  %vm2418_vm9 = vcmask 520192   ;;  %vm4085_vm11 = vcmask 1042434  }
 0xb04   : > { %v2364_v20 = vsel %vm4072_vm4, %v2297_v0, %v2363_v51  ;;  %v2386_v10 = vsel %vm4073_vm2, %v2299_v14, %v2297_v0  ;;  %vm4074_vm6 = vmmov %vm4073_vm2  ;;  %2571 = vst.msk [vmem:[%s3678_s17 + $0x26] sm:$0xff] %vm2307_vm15, %v2343_v18  ;;  %vm2440_vm4 = vcmask 521216   ;;  %vm2462_vm2 = vcmask 522240  }
 0xb05   : > { %v2407_v21 = vsel %vm4074_vm6, %v2297_v0, %v3735_v8  ;;  %2574 = vst.msk [vmem:[%s3678_s17 + $0x35] sm:$0xff] %vm2307_vm15, %v2364_v20  ;;  %vm4076_vm14 = vmmov %vm4063_vm3 }
 0xb06   : > { %v2451_v17 = vsel %vm4076_vm14, %v2297_v0, %v3750_v24  ;;  %vm4077_vm3 = vmmov %vm4064_vm5 }
 0xb07   : > { %v2321_v38 = vsel %vm4077_vm3, %v2299_v14, %v2320_v53  ;;  %vm4078_vm5 = vmmov %vm4075_vm8  ;;  %v2452_v22 = vsel %vm2282_vm1, %v2299_v14, %v2451_v17  ;;  %vm4081_vm8 = vcmask 1047559  }
 0xb08   : > { %v2408_v8 = vsel %vm4078_vm5, %v2299_v14, %v2407_v21  ;;  %vm4079_vm7 = vmmov %vm4076_vm14  ;;  %v2322_v25 = vsel %vm4081_vm8, %v2301_v27, %v2321_v38  ;;  %vm4082_vm14 = vcmask 1041409   ;;  %v2453_v15 = vsel %vm2285_vm12, %v2301_v27, %v2452_v22 }
 0xb09   : > { %v2430_v19 = vsel %vm4079_vm7, %v2299_v14, %v2429_v23  ;;  %vm4080_vm6 = vmmov %vm4077_vm3  ;;  %v2344_v40 = vsel %vm4082_vm14, %v2303_v55, %v2301_v27  ;;  %2568 = vst.msk [vmem:[%s3678_s17 + $0x17] sm:$0xff] %vm2307_vm15, %v2322_v25 }
 0xb0a   : > { %v2302_v24 = vsel %vm4080_vm6, %v2301_v27, %v2300_v2  ;;  %vm4083_vm3 = vmmov %vm4082_vm14  ;;  %2572 = vst.msk [vmem:[%s3678_s17 + $0x2e] sm:$0x3] %vm2352_vm0, %v2344_v40  ;;  %vm4087_vm6 = vcmask 1043459   ;;  %v2431_v48 = vsel %vm2282_vm1, %v2301_v27, %v2430_v19  ;;  %vm4089_vm0 = vcmask 1046534  }
 0xb0b   : > { %v2365_v28 = vsel %vm4083_vm3, %v2301_v27, %v2299_v14  ;;  %vm4084_vm5 = vmmov %vm4081_vm8  ;;  %v2409_v46 = vsel %vm4087_vm6, %v2301_v27, %v2408_v8  ;;  %v2432_v50 = vsel %vm2285_vm12, %v2303_v55, %v2431_v48  ;;  %v2454_v43 = vsel %vm4089_vm0, %v2303_v55, %v2453_v15 }
 0xb0c   : > { %v2304_v11 = vsel %vm4084_vm5, %v2303_v55, %v2302_v24  ;;  %v2366_v44 = vsel %vm4085_vm11, %v2303_v55, %v2365_v28  ;;  %vm4086_vm7 = vmmov %vm4085_vm11  ;;  %v2410_v12 = vsel %vm2282_vm1, %v2303_v55, %v2409_v46  ;;  %2584 = vst.msk [vmem:[%s3678_s17 + $0x6a] sm:$0x3f] %vm2440_vm4, %v2432_v50 }
 0xb0d   : > { %v2387_v45 = vsel %vm4086_vm7, %v2301_v27, %v2386_v10  ;;  %2309 = vst.msk [vmem:[%s3678_s17 + $0x8] sm:$0xff] %vm2307_vm15, %v2304_v11  ;;  %vm4088_vm8 = vmmov %vm4087_vm6 }
 0xb0e   : > { %2575 = vst.msk [vmem:[%s3678_s17 + $0x3d] sm:$0x7] %vm2374_vm10, %v2366_v44  ;;  %v2388_v29 = vsel %vm4088_vm8, %v2303_v55, %v2387_v45 }
 0xb0f   : > { %2578 = vst.msk [vmem:[%s3678_s17 + $0x4c] sm:$0xf] %vm2396_vm13, %v2388_v29 }
 0xb10   : > { %2581 = vst.msk [vmem:[%s3678_s17 + $0x5b] sm:$0x1f] %vm2418_vm9, %v2410_v12 }
 0xb11   : > { %2587 = vst.msk [vmem:[%s3678_s17 + $0x79] sm:$0x7f] %vm2462_vm2, %v2454_v43 }
 0xb12 PF: > { %s22_s21 = sadd.s32 1, %s2725_s21  }
 0xb13   : > { %p19_p4 = scmp.ge.s32.totalorder %s22_s21, 4  }
 0xb15   :  { %21 = sbr.rel (!%p19_p4) target bundleno = 1 (0x1), region = 108 }

</bundles_post_ra>
